<compile_context>
chip_gen: v7x
topology: tpu7x:2x2x1
jax: 0.10.0
libtpu: 0.0.40
codegen_flags: <defaults>
</compile_context>

<pallas_src>
import functools

import jax
import jax.numpy as jnp
from jax.experimental import pallas as pl
from jax.experimental.pallas import tpu as pltpu

EPS = 1e-5
NUM_GROUPS = 32
MATMUL_DTYPE = jnp.bfloat16
VMEM_LIMIT = 48 * 1024 * 1024


# ----------------------------- in-kernel helpers -----------------------------

def _swish(x):
    return x * jax.nn.sigmoid(x)


def _group_norm(x, gamma, beta, m, mt, cnt):
    """Two-pass GroupNorm; x: (N, C) f32, channels last.

    m:  (C, G) one-hot channel->group membership, mt: (G, C) transpose.
    cnt: elements per group (N * channels_per_group), Python float.
    """
    s = jnp.sum(x, axis=0, keepdims=True)                               # (1, C)
    gmean = jnp.dot(s, m, preferred_element_type=jnp.float32) / cnt     # (1, G)
    mean_c = jnp.dot(gmean, mt, preferred_element_type=jnp.float32)     # (1, C)
    d = x - mean_c
    sq = jnp.sum(d * d, axis=0, keepdims=True)                          # (1, C)
    gvar = jnp.dot(sq, m, preferred_element_type=jnp.float32) / cnt     # (1, G)
    var_c = jnp.dot(gvar, mt, preferred_element_type=jnp.float32)       # (1, C)
    inv_c = jax.lax.rsqrt(var_c + EPS)
    return d * inv_c * gamma + beta


# --------------------------------- kernels -----------------------------------

def _resblock_kernel(x_ref, bias1_ref,
                     g1_ref, be1_ref, m1_ref, m1t_ref, w1_ref,
                     g2_ref, be2_ref, m2_ref, m2t_ref, w2_ref, c2b_ref,
                     *rest, H, W, cg_in, cg_out, has_sc):
    if has_sc:
        ws_ref, bs_ref, out_ref, pad1_ref, pad2_ref = rest
    else:
        out_ref, pad1_ref, pad2_ref = rest

    HW = H * W
    x = x_ref[0]                                                        # (HW, Cin) f32

    # Column index (w) of every flat spatial position; masks for the two
    # horizontally-shifted conv taps (they read across row boundaries).
    widx = jax.lax.broadcasted_iota(jnp.int32, (HW, 1), 0) % W
    not_first_col = widx != 0
    not_last_col = widx != (W - 1)

    def conv3x3(y, pad_ref, w_ref):
        """3x3 same-padded conv as 9 (HW, Cin) x (Cin, Cout) MXU matmuls.

        pad_ref is a flat buffer of shape (HW + 2*(W+1), Cin): one zero row of
        width W (+1 extra element) above and below the image. Tap (dh, dw)
        is the contiguous window starting at dh*W + dw; dw=0/2 taps are
        masked at the image's left/right columns.
        """
        cout = w_ref.shape[3]
        halo = jnp.zeros((W + 1, pad_ref.shape[1]), pad_ref.dtype)
        pad_ref[0:W + 1, :] = halo
        pad_ref[W + 1 + HW:W + 1 + HW + W + 1, :] = halo
        pad_ref[W + 1:W + 1 + HW, :] = y.astype(pad_ref.dtype)
        acc = jnp.zeros((HW, cout), jnp.float32)
        for dh in range(3):
            for dw in range(3):
                blk = pad_ref[dh * W + dw:dh * W + dw + HW, :]
                if dw == 0:
                    blk = jnp.where(not_first_col, blk, jnp.zeros_like(blk))
                elif dw == 2:
                    blk = jnp.where(not_last_col, blk, jnp.zeros_like(blk))
                acc = acc + jnp.dot(blk, w_ref[dh, dw],
                                    preferred_element_type=jnp.float32)
        return acc

    # --- block1: GroupNorm + Swish + Conv3x3, plus (conv1 bias + temb proj) ---
    y1 = _swish(_group_norm(x, g1_ref[...], be1_ref[...],
                            m1_ref[...], m1t_ref[...], float(HW * cg_in)))
    h = conv3x3(y1, pad1_ref, w1_ref) + bias1_ref[0]

    # --- block2: GroupNorm + Swish + (Dropout) + Conv3x3 + conv2 bias ---
    # TODO(synk): nn.Dropout treated as identity (inference mode).
    y2 = _swish(_group_norm(h, g2_ref[...], be2_ref[...],
                            m2_ref[...], m2t_ref[...], float(HW * cg_out)))
    h2 = conv3x3(y2, pad2_ref, w2_ref) + c2b_ref[...]

    # --- shortcut add ---
    if has_sc:
        sc = jnp.dot(x.astype(ws_ref.dtype), ws_ref[...],
                     preferred_element_type=jnp.float32) + bs_ref[...]
    else:
        sc = x                                                          # identity
    out_ref[0] = (h2 + sc).astype(out_ref.dtype)


def _attn_kernel(h_ref, g_ref, b_ref, m_ref, mt_ref,
                 wq_ref, wk_ref, wv_ref, wp_ref,
                 bq_ref, bk_ref, bv_ref, bp_ref,
                 out_ref, q_sc, k_sc, v_sc,
                 *, N, C, cg, tq):
    qi = pl.program_id(1)

    # GroupNorm + q/k/v projections once per image; cached in VMEM scratch
    # (scratch persists across the inner q-tile grid axis).
    @pl.when(qi == 0)
    def _():
        x = h_ref[0]                                                    # (N, C) f32
        hn = _group_norm(x, g_ref[...], b_ref[...],
                         m_ref[...], mt_ref[...], float(N * cg))
        hb = hn.astype(q_sc.dtype)
        q_sc[...] = (jnp.dot(hb, wq_ref[...], preferred_element_type=jnp.float32)
                     + bq_ref[...]).astype(q_sc.dtype)
        k_sc[...] = (jnp.dot(hb, wk_ref[...], preferred_element_type=jnp.float32)
                     + bk_ref[...]).astype(k_sc.dtype)
        v_sc[...] = (jnp.dot(hb, wv_ref[...], preferred_element_type=jnp.float32)
                     + bv_ref[...]).astype(v_sc.dtype)

    row0 = pl.multiple_of(qi * tq, tq)
    q_t = q_sc[pl.ds(row0, tq), :]                                      # (tq, C)
    scores = jax.lax.dot_general(q_t, k_sc[...], (((1,), (1,)), ((), ())),
                                 preferred_element_type=jnp.float32)    # (tq, N)
    scores = scores * (float(C) ** -0.5)
    scores = scores - jnp.max(scores, axis=-1, keepdims=True)
    p = jnp.exp(scores)
    p = p * pl.reciprocal(jnp.sum(p, axis=-1, keepdims=True), approx=True)
    o = jnp.dot(p.astype(v_sc.dtype), v_sc[...],
                preferred_element_type=jnp.float32)                     # (tq, C)
    o = jnp.dot(o.astype(wp_ref.dtype), wp_ref[...],
                preferred_element_type=jnp.float32) + bp_ref[...]
    x_t = h_ref[0, pl.ds(row0, tq), :]                                  # residual
    out_ref[0] = (x_t + o).astype(out_ref.dtype)


# ------------------------------- JAX wrapper ----------------------------------

def _group_matrix(channels, groups):
    cg = channels // groups
    m = (jnp.arange(channels)[:, None] // cg) == jnp.arange(groups)[None, :]
    return m.astype(jnp.float32)


def _fs1(shape):   # full-array spec, 1-D grid
    return pl.BlockSpec(shape, lambda b, _n=len(shape): (0,) * _n)


def _fs2(shape):   # full-array spec, 2-D grid
    return pl.BlockSpec(shape, lambda b, q, _n=len(shape): (0,) * _n)


def res_block_forward(x_nchw, temb, params, *, attn):
    B, Cin, H, W = x_nchw.shape
    Cout = params["conv1_b"].shape[0]
    G = NUM_GROUPS
    assert Cin % G == 0 and Cout % G == 0, "GroupNorm(32) requires C % 32 == 0"
    cg_in, cg_out = Cin // G, Cout // G
    HW = H * W
    PAD = HW + 2 * (W + 1)

    # channels-last, flattened spatial
    x = jnp.transpose(x_nchw, (0, 2, 3, 1)).reshape(B, HW, Cin).astype(jnp.float32)

    # temb path hoisted out of the kernel: Swish + Linear + conv1 bias.
    t = temb.astype(jnp.float32)
    tproj = (t * jax.nn.sigmoid(t)) @ params["temb_w"].T + params["temb_b"]
    bias1 = (tproj + params["conv1_b"]).reshape(B, 1, Cout).astype(jnp.float32)

    m1, m2 = _group_matrix(Cin, G), _group_matrix(Cout, G)

    w1 = jnp.transpose(params["conv1_w"], (2, 3, 1, 0)).astype(MATMUL_DTYPE)
    w2 = jnp.transpose(params["conv2_w"], (2, 3, 1, 0)).astype(MATMUL_DTYPE)
    c2b = params["conv2_b"].reshape(1, Cout).astype(jnp.float32)
    g1 = params["gn1_g"].reshape(1, Cin).astype(jnp.float32)
    be1 = params["gn1_b"].reshape(1, Cin).astype(jnp.float32)
    g2 = params["gn2_g"].reshape(1, Cout).astype(jnp.float32)
    be2 = params["gn2_b"].reshape(1, Cout).astype(jnp.float32)

    has_sc = "sc_w" in params
    inputs = [x, bias1, g1, be1, m1, m1.T, w1, g2, be2, m2, m2.T, w2, c2b]
    in_specs = [
        pl.BlockSpec((1, HW, Cin), lambda b: (b, 0, 0)),
        pl.BlockSpec((1, 1, Cout), lambda b: (b, 0, 0)),
        _fs1((1, Cin)), _fs1((1, Cin)), _fs1((Cin, G)), _fs1((G, Cin)),
        _fs1((3, 3, Cin, Cout)),
        _fs1((1, Cout)), _fs1((1, Cout)), _fs1((Cout, G)), _fs1((G, Cout)),
        _fs1((3, 3, Cout, Cout)), _fs1((1, Cout)),
    ]
    if has_sc:
        ws = params["sc_w"][:, :, 0, 0].T.astype(MATMUL_DTYPE)
        bs = params["sc_b"].reshape(1, Cout).astype(jnp.float32)
        inputs += [ws, bs]
        in_specs += [_fs1((Cin, Cout)), _fs1((1, Cout))]

    kern1 = functools.partial(_resblock_kernel, H=H, W=W,
                              cg_in=cg_in, cg_out=cg_out, has_sc=has_sc)
    h = pl.pallas_call(
        kern1,
        out_shape=jax.ShapeDtypeStruct((B, HW, Cout), jnp.float32),
        grid=(B,),
        in_specs=in_specs,
        out_specs=pl.BlockSpec((1, HW, Cout), lambda b: (b, 0, 0)),
        scratch_shapes=[pltpu.VMEM((PAD, Cin), MATMUL_DTYPE),
                        pltpu.VMEM((PAD, Cout), MATMUL_DTYPE)],
        compiler_params=pltpu.CompilerParams(
            dimension_semantics=("parallel",),
            vmem_limit_bytes=VMEM_LIMIT),
    )(*inputs)

    if attn:
        N = HW
        TQ = N if N <= 256 else 256
        if N % TQ:
            TQ = N
        NQ = N // TQ

        ga = params["attn_gn_g"].reshape(1, Cout).astype(jnp.float32)
        ba = params["attn_gn_b"].reshape(1, Cout).astype(jnp.float32)
        wq = params["attn_wq"][:, :, 0, 0].T.astype(MATMUL_DTYPE)
        wk = params["attn_wk"][:, :, 0, 0].T.astype(MATMUL_DTYPE)
        wv = params["attn_wv"][:, :, 0, 0].T.astype(MATMUL_DTYPE)
        wp = params["attn_wp"][:, :, 0, 0].T.astype(MATMUL_DTYPE)
        bq = params["attn_bq"].reshape(1, Cout).astype(jnp.float32)
        bk = params["attn_bk"].reshape(1, Cout).astype(jnp.float32)
        bv = params["attn_bv"].reshape(1, Cout).astype(jnp.float32)
        bp = params["attn_bp"].reshape(1, Cout).astype(jnp.float32)

        kern2 = functools.partial(_attn_kernel, N=N, C=Cout, cg=cg_out, tq=TQ)
        h = pl.pallas_call(
            kern2,
            out_shape=jax.ShapeDtypeStruct((B, N, Cout), jnp.float32),
            grid=(B, NQ),
            in_specs=[
                pl.BlockSpec((1, N, Cout), lambda b, q: (b, 0, 0)),
                _fs2((1, Cout)), _fs2((1, Cout)),
                _fs2((Cout, G)), _fs2((G, Cout)),
                _fs2((Cout, Cout)), _fs2((Cout, Cout)),
                _fs2((Cout, Cout)), _fs2((Cout, Cout)),
                _fs2((1, Cout)), _fs2((1, Cout)), _fs2((1, Cout)), _fs2((1, Cout)),
            ],
            out_specs=pl.BlockSpec((1, TQ, Cout), lambda b, q: (b, q, 0)),
            scratch_shapes=[pltpu.VMEM((N, Cout), MATMUL_DTYPE),
                            pltpu.VMEM((N, Cout), MATMUL_DTYPE),
                            pltpu.VMEM((N, Cout), MATMUL_DTYPE)],
            compiler_params=pltpu.CompilerParams(
                dimension_semantics=("parallel", "arbitrary"),
                vmem_limit_bytes=VMEM_LIMIT),
        )(h, ga, ba, m2, m2.T, wq, wk, wv, wp, bq, bk, bv, bp)

    out = h.reshape(B, H, W, Cout)
    return jnp.transpose(out, (0, 3, 1, 2))                             # NCHW


# ------------------------------ parameter init --------------------------------

def init_params(key, in_ch, out_ch, tdim, attn):
    def xavier(k, shape, fan_in, fan_out, gain=1.0):
        a = gain * (6.0 / (fan_in + fan_out)) ** 0.5
        return jax.random.uniform(k, shape, jnp.float32, -a, a)

    ks = jax.random.split(key, 8)
    p = {}
    p["gn1_g"] = jnp.ones((in_ch,), jnp.float32)
    p["gn1_b"] = jnp.zeros((in_ch,), jnp.float32)
    p["conv1_w"] = xavier(ks[0], (out_ch, in_ch, 3, 3), in_ch * 9, out_ch * 9)
    p["conv1_b"] = jnp.zeros((out_ch,), jnp.float32)
    p["temb_w"] = xavier(ks[1], (out_ch, tdim), tdim, out_ch)
    p["temb_b"] = jnp.zeros((out_ch,), jnp.float32)
    # block2 conv is initialized with gain 1e-5 in the PyTorch module
    p["gn2_g"] = jnp.ones((out_ch,), jnp.float32)
    p["gn2_b"] = jnp.zeros((out_ch,), jnp.float32)
    p["conv2_w"] = xavier(ks[2], (out_ch, out_ch, 3, 3), out_ch * 9, out_ch * 9, gain=1e-5)
    p["conv2_b"] = jnp.zeros((out_ch,), jnp.float32)
    if in_ch != out_ch:
        p["sc_w"] = xavier(ks[3], (out_ch, in_ch, 1, 1), in_ch, out_ch)
        p["sc_b"] = jnp.zeros((out_ch,), jnp.float32)
    if attn:
        p["attn_gn_g"] = jnp.ones((out_ch,), jnp.float32)
        p["attn_gn_b"] = jnp.zeros((out_ch,), jnp.float32)
        for i, name in enumerate(["q", "k", "v", "p"]):
            p[f"attn_w{name}"] = xavier(ks[4 + i], (out_ch, out_ch, 1, 1), out_ch, out_ch)
            p[f"attn_b{name}"] = jnp.zeros((out_ch,), jnp.float32)
    return p


# ----------------------------------- main --------------------------------------

if __name__ == "__main__":
    B, in_ch, out_ch, H, W, tdim = 2, 32, 64, 8, 8, 32
    key = jax.random.PRNGKey(0)
    k1, k2, k3 = jax.random.split(key, 3)
    x = jax.random.normal(k1, (B, in_ch, H, W), jnp.float32)      # NCHW like PyTorch
    temb = jax.random.normal(k2, (B, tdim), jnp.float32)
    params = init_params(k3, in_ch, out_ch, tdim, attn=True)

    out = res_block_forward(x, temb, params, attn=True)
    out = jax.block_until_ready(out)
    assert out.shape == (B, out_ch, H, W)
    assert jnp.all(jnp.isfinite(out))
    print("KERNEL_OK")
</pallas_src>

<mosaic_0001>
module attributes {stable_mosaic.version = 11 : i64} {
  func.func @_resblock_kernel(%arg0: i32, %arg1: memref<1x64x32xf32, #tpu.memory_space<vmem>>, %arg2: memref<1x1x64xf32, #tpu.memory_space<vmem>>, %arg3: memref<1x32xf32, #tpu.memory_space<vmem>>, %arg4: memref<1x32xf32, #tpu.memory_space<vmem>>, %arg5: memref<32x32xf32, #tpu.memory_space<vmem>>, %arg6: memref<32x32xf32, #tpu.memory_space<vmem>>, %arg7: memref<3x3x32x64xbf16, #tpu.memory_space<vmem>>, %arg8: memref<1x64xf32, #tpu.memory_space<vmem>>, %arg9: memref<1x64xf32, #tpu.memory_space<vmem>>, %arg10: memref<64x32xf32, #tpu.memory_space<vmem>>, %arg11: memref<32x64xf32, #tpu.memory_space<vmem>>, %arg12: memref<3x3x64x64xbf16, #tpu.memory_space<vmem>>, %arg13: memref<1x64xf32, #tpu.memory_space<vmem>>, %arg14: memref<32x64xbf16, #tpu.memory_space<vmem>>, %arg15: memref<1x64xf32, #tpu.memory_space<vmem>>, %arg16: memref<1x64x64xf32, #tpu.memory_space<vmem>>, %arg17: memref<82x32xbf16, #tpu.memory_space<vmem>>, %arg18: memref<82x64xbf16, #tpu.memory_space<vmem>>) attributes {dimension_semantics = [#tpu.dimension_semantics<parallel>], iteration_bounds = array<i64: 2>, scalar_prefetch = 0 : i64, scratch_operands = 2 : i64, tpu.core_type = #tpu.core_type<tc>, window_params = [{transform_indices = @transform_0, window_bounds = array<i64: 1, 64, 32>}, {transform_indices = @transform_1, window_bounds = array<i64: 1, 1, 64>}, {pipeline_mode = #tpu.pipeline_mode<synchronous>, transform_indices = @transform_2, window_bounds = array<i64: 1, 32>}, {pipeline_mode = #tpu.pipeline_mode<synchronous>, transform_indices = @transform_3, window_bounds = array<i64: 1, 32>}, {pipeline_mode = #tpu.pipeline_mode<synchronous>, transform_indices = @transform_4, window_bounds = array<i64: 32, 32>}, {pipeline_mode = #tpu.pipeline_mode<synchronous>, transform_indices = @transform_5, window_bounds = array<i64: 32, 32>}, {pipeline_mode = #tpu.pipeline_mode<synchronous>, transform_indices = @transform_6, window_bounds = array<i64: 3, 3, 32, 64>}, {pipeline_mode = #tpu.pipeline_mode<synchronous>, transform_indices = @transform_7, window_bounds = array<i64: 1, 64>}, {pipeline_mode = #tpu.pipeline_mode<synchronous>, transform_indices = @transform_8, window_bounds = array<i64: 1, 64>}, {pipeline_mode = #tpu.pipeline_mode<synchronous>, transform_indices = @transform_9, window_bounds = array<i64: 64, 32>}, {pipeline_mode = #tpu.pipeline_mode<synchronous>, transform_indices = @transform_10, window_bounds = array<i64: 32, 64>}, {pipeline_mode = #tpu.pipeline_mode<synchronous>, transform_indices = @transform_11, window_bounds = array<i64: 3, 3, 64, 64>}, {pipeline_mode = #tpu.pipeline_mode<synchronous>, transform_indices = @transform_12, window_bounds = array<i64: 1, 64>}, {pipeline_mode = #tpu.pipeline_mode<synchronous>, transform_indices = @transform_13, window_bounds = array<i64: 32, 64>}, {pipeline_mode = #tpu.pipeline_mode<synchronous>, transform_indices = @transform_14, window_bounds = array<i64: 1, 64>}, {transform_indices = @transform_15, window_bounds = array<i64: 1, 64, 64>}]} {
    %c0 = arith.constant 0 : index
    %c0_0 = arith.constant 0 : index
    %c0_1 = arith.constant 0 : index
    %0 = vector.load %arg1[%c0, %c0_0, %c0_1] : memref<1x64x32xf32, #tpu.memory_space<vmem>>, vector<1x64x32xf32>
    %1 = vector.shape_cast %0 : vector<1x64x32xf32> to vector<64x32xf32>
    %2 = tpu.iota {dimensions = array<i32: 0>} : vector<64x1xi32>
    %c8_i32 = arith.constant 8 : i32
    %c0_i32 = arith.constant 0 : i32
    %3 = arith.cmpi eq, %c8_i32, %c0_i32 : i32
    %c1_i32 = arith.constant 1 : i32
    %4 = arith.select %3, %c1_i32, %c8_i32 : i32
    %5 = vector.broadcast %4 : i32 to vector<64x1xi32>
    %6 = arith.remsi %2, %5 : vector<64x1xi32>
    %c0_i32_2 = arith.constant 0 : i32
    %7 = vector.broadcast %c0_i32_2 : i32 to vector<64x1xi32>
    %8 = arith.cmpi ne, %6, %7 : vector<64x1xi32>
    %c0_i32_3 = arith.constant 0 : i32
    %9 = vector.broadcast %c0_i32_3 : i32 to vector<64x1xi32>
    %10 = arith.cmpi slt, %6, %9 : vector<64x1xi32>
    %c0_i32_4 = arith.constant 0 : i32
    %11 = arith.cmpi slt, %4, %c0_i32_4 : i32
    %12 = vector.broadcast %11 : i1 to vector<64x1xi1>
    %13 = vector.broadcast %12 : vector<64x1xi1> to vector<64x1xi1>
    %14 = arith.xori %10, %13 : vector<64x1xi1>
    %15 = arith.andi %14, %8 : vector<64x1xi1>
    %16 = vector.broadcast %4 : i32 to vector<64x1xi32>
    %17 = arith.addi %6, %16 : vector<64x1xi32>
    %18 = arith.select %15, %17, %6 : vector<64x1xi1>, vector<64x1xi32>
    %c0_i32_5 = arith.constant 0 : i32
    %19 = vector.broadcast %c0_i32_5 : i32 to vector<64x1xi32>
    %20 = arith.cmpi ne, %18, %19 : vector<64x1xi32>
    %c7_i32 = arith.constant 7 : i32
    %21 = vector.broadcast %c7_i32 : i32 to vector<64x1xi32>
    %22 = arith.cmpi ne, %18, %21 : vector<64x1xi32>
    %c0_6 = arith.constant 0 : index
    %c0_7 = arith.constant 0 : index
    %23 = vector.load %arg3[%c0_6, %c0_7] : memref<1x32xf32, #tpu.memory_space<vmem>>, vector<1x32xf32>
    %c0_8 = arith.constant 0 : index
    %c0_9 = arith.constant 0 : index
    %24 = vector.load %arg4[%c0_8, %c0_9] : memref<1x32xf32, #tpu.memory_space<vmem>>, vector<1x32xf32>
    %c0_10 = arith.constant 0 : index
    %c0_11 = arith.constant 0 : index
    %25 = vector.load %arg5[%c0_10, %c0_11] : memref<32x32xf32, #tpu.memory_space<vmem>>, vector<32x32xf32>
    %c0_12 = arith.constant 0 : index
    %c0_13 = arith.constant 0 : index
    %26 = vector.load %arg6[%c0_12, %c0_13] : memref<32x32xf32, #tpu.memory_space<vmem>>, vector<32x32xf32>
    %cst = arith.constant dense<0.000000e+00> : vector<32xf32>
    %27 = vector.multi_reduction <add>, %1, %cst [0] : vector<64x32xf32> to vector<32xf32>
    %28 = vector.shape_cast %27 : vector<32xf32> to vector<1x32xf32>
    %cst_14 = arith.constant dense<0.000000e+00> : vector<1x32xf32>
    %29 = tpu.matmul %28, %25, %cst_14 {dimension_numbers = #tpu.dot_dimension_numbers<[1], [0], [0], [1], [0, 0, 1, 1], [], []>} : vector<1x32xf32>, vector<32x32xf32>, vector<1x32xf32> -> vector<1x32xf32>
    %cst_15 = arith.constant 6.400000e+01 : f32
    %30 = vector.broadcast %cst_15 : f32 to vector<1x32xf32>
    %31 = arith.divf %29, %30 : vector<1x32xf32>
    %cst_16 = arith.constant dense<0.000000e+00> : vector<1x32xf32>
    %32 = tpu.matmul %31, %26, %cst_16 {dimension_numbers = #tpu.dot_dimension_numbers<[1], [0], [0], [1], [0, 0, 1, 1], [], []>} : vector<1x32xf32>, vector<32x32xf32>, vector<1x32xf32> -> vector<1x32xf32>
    %33 = vector.broadcast %32 : vector<1x32xf32> to vector<64x32xf32>
    %34 = arith.subf %1, %33 : vector<64x32xf32>
    %35 = arith.mulf %34, %34 : vector<64x32xf32>
    %cst_17 = arith.constant dense<0.000000e+00> : vector<32xf32>
    %36 = vector.multi_reduction <add>, %35, %cst_17 [0] : vector<64x32xf32> to vector<32xf32>
    %37 = vector.shape_cast %36 : vector<32xf32> to vector<1x32xf32>
    %cst_18 = arith.constant dense<0.000000e+00> : vector<1x32xf32>
    %38 = tpu.matmul %37, %25, %cst_18 {dimension_numbers = #tpu.dot_dimension_numbers<[1], [0], [0], [1], [0, 0, 1, 1], [], []>} : vector<1x32xf32>, vector<32x32xf32>, vector<1x32xf32> -> vector<1x32xf32>
    %cst_19 = arith.constant 6.400000e+01 : f32
    %39 = vector.broadcast %cst_19 : f32 to vector<1x32xf32>
    %40 = arith.divf %38, %39 : vector<1x32xf32>
    %cst_20 = arith.constant dense<0.000000e+00> : vector<1x32xf32>
    %41 = tpu.matmul %40, %26, %cst_20 {dimension_numbers = #tpu.dot_dimension_numbers<[1], [0], [0], [1], [0, 0, 1, 1], [], []>} : vector<1x32xf32>, vector<32x32xf32>, vector<1x32xf32> -> vector<1x32xf32>
    %cst_21 = arith.constant 9.99999974E-6 : f32
    %42 = vector.broadcast %cst_21 : f32 to vector<1x32xf32>
    %43 = arith.addf %41, %42 : vector<1x32xf32>
    %44 = math.rsqrt %43 : vector<1x32xf32>
    %45 = vector.broadcast %44 : vector<1x32xf32> to vector<64x32xf32>
    %46 = arith.mulf %34, %45 : vector<64x32xf32>
    %47 = vector.broadcast %23 : vector<1x32xf32> to vector<64x32xf32>
    %48 = arith.mulf %46, %47 : vector<64x32xf32>
    %49 = vector.broadcast %24 : vector<1x32xf32> to vector<64x32xf32>
    %50 = arith.addf %48, %49 : vector<64x32xf32>
    %51 = arith.negf %50 : vector<64x32xf32>
    %52 = math.exp %51 : vector<64x32xf32>
    %cst_22 = arith.constant 1.000000e+00 : f32
    %53 = vector.broadcast %cst_22 : f32 to vector<64x32xf32>
    %54 = arith.addf %53, %52 : vector<64x32xf32>
    %55 = arith.divf %53, %54 : vector<64x32xf32>
    %56 = arith.mulf %50, %55 : vector<64x32xf32>
    %cst_23 = arith.constant 0.000000e+00 : bf16
    %57 = vector.broadcast %cst_23 : bf16 to vector<9x32xbf16>
    %c0_24 = arith.constant 0 : index
    %c0_25 = arith.constant 0 : index
    %58 = vector.load %arg17[%c0_24, %c0_25] : memref<82x32xbf16, #tpu.memory_space<vmem>>, vector<9x32xbf16>
    tpu.vector_store %arg17[%c0_24, %c0_25], %57 {strides = array<i32>} : memref<82x32xbf16, #tpu.memory_space<vmem>>, vector<9x32xbf16>,
    %c73 = arith.constant 73 : index
    %c0_26 = arith.constant 0 : index
    %59 = vector.load %arg17[%c73, %c0_26] : memref<82x32xbf16, #tpu.memory_space<vmem>>, vector<9x32xbf16>
    tpu.vector_store %arg17[%c73, %c0_26], %57 {strides = array<i32>} : memref<82x32xbf16, #tpu.memory_space<vmem>>, vector<9x32xbf16>,
    %60 = arith.truncf %56 : vector<64x32xf32> to vector<64x32xbf16>
    %c9 = arith.constant 9 : index
    %c0_27 = arith.constant 0 : index
    %61 = vector.load %arg17[%c9, %c0_27] : memref<82x32xbf16, #tpu.memory_space<vmem>>, vector<64x32xbf16>
    tpu.vector_store %arg17[%c9, %c0_27], %60 {strides = array<i32>} : memref<82x32xbf16, #tpu.memory_space<vmem>>, vector<64x32xbf16>,
    %cst_28 = arith.constant 0.000000e+00 : f32
    %62 = vector.broadcast %cst_28 : f32 to vector<64x64xf32>
    %c0_29 = arith.constant 0 : index
    %c0_30 = arith.constant 0 : index
    %63 = vector.load %arg17[%c0_29, %c0_30] : memref<82x32xbf16, #tpu.memory_space<vmem>>, vector<64x32xbf16>
    %cst_31 = arith.constant 0.000000e+00 : bf16
    %64 = vector.broadcast %cst_31 : bf16 to vector<64x32xbf16>
    %65 = vector.shape_cast %20 : vector<64x1xi1> to vector<64x1xi1>
    %66 = vector.broadcast %65 : vector<64x1xi1> to vector<64x32xi1>
    %67 = arith.select %66, %63, %64 : vector<64x32xi1>, vector<64x32xbf16>
    %c0_32 = arith.constant 0 : index
    %c0_33 = arith.constant 0 : index
    %c0_34 = arith.constant 0 : index
    %c0_35 = arith.constant 0 : index
    %68 = vector.load %arg7[%c0_32, %c0_33, %c0_34, %c0_35] : memref<3x3x32x64xbf16, #tpu.memory_space<vmem>>, vector<1x1x32x64xbf16>
    %69 = vector.shape_cast %68 : vector<1x1x32x64xbf16> to vector<32x64xbf16>
    %cst_36 = arith.constant dense<0.000000e+00> : vector<64x64xf32>
    %70 = tpu.matmul %67, %69, %cst_36 {dimension_numbers = #tpu.dot_dimension_numbers<[1], [0], [0], [1], [0, 0, 1, 1], [], []>} : vector<64x32xbf16>, vector<32x64xbf16>, vector<64x64xf32> -> vector<64x64xf32>
    %71 = arith.addf %62, %70 : vector<64x64xf32>
    %c1 = arith.constant 1 : index
    %c0_37 = arith.constant 0 : index
    %72 = vector.load %arg17[%c1, %c0_37] : memref<82x32xbf16, #tpu.memory_space<vmem>>, vector<64x32xbf16>
    %c0_38 = arith.constant 0 : index
    %c1_39 = arith.constant 1 : index
    %c0_40 = arith.constant 0 : index
    %c0_41 = arith.constant 0 : index
    %73 = vector.load %arg7[%c0_38, %c1_39, %c0_40, %c0_41] : memref<3x3x32x64xbf16, #tpu.memory_space<vmem>>, vector<1x1x32x64xbf16>
    %74 = vector.shape_cast %73 : vector<1x1x32x64xbf16> to vector<32x64xbf16>
    %cst_42 = arith.constant dense<0.000000e+00> : vector<64x64xf32>
    %75 = tpu.matmul %72, %74, %cst_42 {dimension_numbers = #tpu.dot_dimension_numbers<[1], [0], [0], [1], [0, 0, 1, 1], [], []>} : vector<64x32xbf16>, vector<32x64xbf16>, vector<64x64xf32> -> vector<64x64xf32>
    %76 = arith.addf %71, %75 : vector<64x64xf32>
    %c2 = arith.constant 2 : index
    %c0_43 = arith.constant 0 : index
    %77 = vector.load %arg17[%c2, %c0_43] : memref<82x32xbf16, #tpu.memory_space<vmem>>, vector<64x32xbf16>
    %cst_44 = arith.constant 0.000000e+00 : bf16
    %78 = vector.broadcast %cst_44 : bf16 to vector<64x32xbf16>
    %79 = vector.shape_cast %22 : vector<64x1xi1> to vector<64x1xi1>
    %80 = vector.broadcast %79 : vector<64x1xi1> to vector<64x32xi1>
    %81 = arith.select %80, %77, %78 : vector<64x32xi1>, vector<64x32xbf16>
    %c0_45 = arith.constant 0 : index
    %c2_46 = arith.constant 2 : index
    %c0_47 = arith.constant 0 : index
    %c0_48 = arith.constant 0 : index
    %82 = vector.load %arg7[%c0_45, %c2_46, %c0_47, %c0_48] : memref<3x3x32x64xbf16, #tpu.memory_space<vmem>>, vector<1x1x32x64xbf16>
    %83 = vector.shape_cast %82 : vector<1x1x32x64xbf16> to vector<32x64xbf16>
    %cst_49 = arith.constant dense<0.000000e+00> : vector<64x64xf32>
    %84 = tpu.matmul %81, %83, %cst_49 {dimension_numbers = #tpu.dot_dimension_numbers<[1], [0], [0], [1], [0, 0, 1, 1], [], []>} : vector<64x32xbf16>, vector<32x64xbf16>, vector<64x64xf32> -> vector<64x64xf32>
    %85 = arith.addf %76, %84 : vector<64x64xf32>
    %c8 = arith.constant 8 : index
    %c0_50 = arith.constant 0 : index
    %86 = vector.load %arg17[%c8, %c0_50] : memref<82x32xbf16, #tpu.memory_space<vmem>>, vector<64x32xbf16>
    %cst_51 = arith.constant 0.000000e+00 : bf16
    %87 = vector.broadcast %cst_51 : bf16 to vector<64x32xbf16>
    %88 = vector.shape_cast %20 : vector<64x1xi1> to vector<64x1xi1>
    %89 = vector.broadcast %88 : vector<64x1xi1> to vector<64x32xi1>
    %90 = arith.select %89, %86, %87 : vector<64x32xi1>, vector<64x32xbf16>
    %c1_52 = arith.constant 1 : index
    %c0_53 = arith.constant 0 : index
    %c0_54 = arith.constant 0 : index
    %c0_55 = arith.constant 0 : index
    %91 = vector.load %arg7[%c1_52, %c0_53, %c0_54, %c0_55] : memref<3x3x32x64xbf16, #tpu.memory_space<vmem>>, vector<1x1x32x64xbf16>
    %92 = vector.shape_cast %91 : vector<1x1x32x64xbf16> to vector<32x64xbf16>
    %cst_56 = arith.constant dense<0.000000e+00> : vector<64x64xf32>
    %93 = tpu.matmul %90, %92, %cst_56 {dimension_numbers = #tpu.dot_dimension_numbers<[1], [0], [0], [1], [0, 0, 1, 1], [], []>} : vector<64x32xbf16>, vector<32x64xbf16>, vector<64x64xf32> -> vector<64x64xf32>
    %94 = arith.addf %85, %93 : vector<64x64xf32>
    %c9_57 = arith.constant 9 : index
    %c0_58 = arith.constant 0 : index
    %95 = vector.load %arg17[%c9_57, %c0_58] : memref<82x32xbf16, #tpu.memory_space<vmem>>, vector<64x32xbf16>
    %c1_59 = arith.constant 1 : index
    %c1_60 = arith.constant 1 : index
    %c0_61 = arith.constant 0 : index
    %c0_62 = arith.constant 0 : index
    %96 = vector.load %arg7[%c1_59, %c1_60, %c0_61, %c0_62] : memref<3x3x32x64xbf16, #tpu.memory_space<vmem>>, vector<1x1x32x64xbf16>
    %97 = vector.shape_cast %96 : vector<1x1x32x64xbf16> to vector<32x64xbf16>
    %cst_63 = arith.constant dense<0.000000e+00> : vector<64x64xf32>
    %98 = tpu.matmul %95, %97, %cst_63 {dimension_numbers = #tpu.dot_dimension_numbers<[1], [0], [0], [1], [0, 0, 1, 1], [], []>} : vector<64x32xbf16>, vector<32x64xbf16>, vector<64x64xf32> -> vector<64x64xf32>
    %99 = arith.addf %94, %98 : vector<64x64xf32>
    %c10 = arith.constant 10 : index
    %c0_64 = arith.constant 0 : index
    %100 = vector.load %arg17[%c10, %c0_64] : memref<82x32xbf16, #tpu.memory_space<vmem>>, vector<64x32xbf16>
    %cst_65 = arith.constant 0.000000e+00 : bf16
    %101 = vector.broadcast %cst_65 : bf16 to vector<64x32xbf16>
    %102 = vector.shape_cast %22 : vector<64x1xi1> to vector<64x1xi1>
    %103 = vector.broadcast %102 : vector<64x1xi1> to vector<64x32xi1>
    %104 = arith.select %103, %100, %101 : vector<64x32xi1>, vector<64x32xbf16>
    %c1_66 = arith.constant 1 : index
    %c2_67 = arith.constant 2 : index
    %c0_68 = arith.constant 0 : index
    %c0_69 = arith.constant 0 : index
    %105 = vector.load %arg7[%c1_66, %c2_67, %c0_68, %c0_69] : memref<3x3x32x64xbf16, #tpu.memory_space<vmem>>, vector<1x1x32x64xbf16>
    %106 = vector.shape_cast %105 : vector<1x1x32x64xbf16> to vector<32x64xbf16>
    %cst_70 = arith.constant dense<0.000000e+00> : vector<64x64xf32>
    %107 = tpu.matmul %104, %106, %cst_70 {dimension_numbers = #tpu.dot_dimension_numbers<[1], [0], [0], [1], [0, 0, 1, 1], [], []>} : vector<64x32xbf16>, vector<32x64xbf16>, vector<64x64xf32> -> vector<64x64xf32>
    %108 = arith.addf %99, %107 : vector<64x64xf32>
    %c16 = arith.constant 16 : index
    %c0_71 = arith.constant 0 : index
    %109 = vector.load %arg17[%c16, %c0_71] : memref<82x32xbf16, #tpu.memory_space<vmem>>, vector<64x32xbf16>
    %cst_72 = arith.constant 0.000000e+00 : bf16
    %110 = vector.broadcast %cst_72 : bf16 to vector<64x32xbf16>
    %111 = vector.shape_cast %20 : vector<64x1xi1> to vector<64x1xi1>
    %112 = vector.broadcast %111 : vector<64x1xi1> to vector<64x32xi1>
    %113 = arith.select %112, %109, %110 : vector<64x32xi1>, vector<64x32xbf16>
    %c2_73 = arith.constant 2 : index
    %c0_74 = arith.constant 0 : index
    %c0_75 = arith.constant 0 : index
    %c0_76 = arith.constant 0 : index
    %114 = vector.load %arg7[%c2_73, %c0_74, %c0_75, %c0_76] : memref<3x3x32x64xbf16, #tpu.memory_space<vmem>>, vector<1x1x32x64xbf16>
    %115 = vector.shape_cast %114 : vector<1x1x32x64xbf16> to vector<32x64xbf16>
    %cst_77 = arith.constant dense<0.000000e+00> : vector<64x64xf32>
    %116 = tpu.matmul %113, %115, %cst_77 {dimension_numbers = #tpu.dot_dimension_numbers<[1], [0], [0], [1], [0, 0, 1, 1], [], []>} : vector<64x32xbf16>, vector<32x64xbf16>, vector<64x64xf32> -> vector<64x64xf32>
    %117 = arith.addf %108, %116 : vector<64x64xf32>
    %c17 = arith.constant 17 : index
    %c0_78 = arith.constant 0 : index
    %118 = vector.load %arg17[%c17, %c0_78] : memref<82x32xbf16, #tpu.memory_space<vmem>>, vector<64x32xbf16>
    %c2_79 = arith.constant 2 : index
    %c1_80 = arith.constant 1 : index
    %c0_81 = arith.constant 0 : index
    %c0_82 = arith.constant 0 : index
    %119 = vector.load %arg7[%c2_79, %c1_80, %c0_81, %c0_82] : memref<3x3x32x64xbf16, #tpu.memory_space<vmem>>, vector<1x1x32x64xbf16>
    %120 = vector.shape_cast %119 : vector<1x1x32x64xbf16> to vector<32x64xbf16>
    %cst_83 = arith.constant dense<0.000000e+00> : vector<64x64xf32>
    %121 = tpu.matmul %118, %120, %cst_83 {dimension_numbers = #tpu.dot_dimension_numbers<[1], [0], [0], [1], [0, 0, 1, 1], [], []>} : vector<64x32xbf16>, vector<32x64xbf16>, vector<64x64xf32> -> vector<64x64xf32>
    %122 = arith.addf %117, %121 : vector<64x64xf32>
    %c18 = arith.constant 18 : index
    %c0_84 = arith.constant 0 : index
    %123 = vector.load %arg17[%c18, %c0_84] : memref<82x32xbf16, #tpu.memory_space<vmem>>, vector<64x32xbf16>
    %cst_85 = arith.constant 0.000000e+00 : bf16
    %124 = vector.broadcast %cst_85 : bf16 to vector<64x32xbf16>
    %125 = vector.shape_cast %22 : vector<64x1xi1> to vector<64x1xi1>
    %126 = vector.broadcast %125 : vector<64x1xi1> to vector<64x32xi1>
    %127 = arith.select %126, %123, %124 : vector<64x32xi1>, vector<64x32xbf16>
    %c2_86 = arith.constant 2 : index
    %c2_87 = arith.constant 2 : index
    %c0_88 = arith.constant 0 : index
    %c0_89 = arith.constant 0 : index
    %128 = vector.load %arg7[%c2_86, %c2_87, %c0_88, %c0_89] : memref<3x3x32x64xbf16, #tpu.memory_space<vmem>>, vector<1x1x32x64xbf16>
    %129 = vector.shape_cast %128 : vector<1x1x32x64xbf16> to vector<32x64xbf16>
    %cst_90 = arith.constant dense<0.000000e+00> : vector<64x64xf32>
    %130 = tpu.matmul %127, %129, %cst_90 {dimension_numbers = #tpu.dot_dimension_numbers<[1], [0], [0], [1], [0, 0, 1, 1], [], []>} : vector<64x32xbf16>, vector<32x64xbf16>, vector<64x64xf32> -> vector<64x64xf32>
    %131 = arith.addf %122, %130 : vector<64x64xf32>
    %c0_91 = arith.constant 0 : index
    %c0_92 = arith.constant 0 : index
    %c0_93 = arith.constant 0 : index
    %132 = vector.load %arg2[%c0_91, %c0_92, %c0_93] : memref<1x1x64xf32, #tpu.memory_space<vmem>>, vector<1x1x64xf32>
    %133 = vector.shape_cast %132 : vector<1x1x64xf32> to vector<1x64xf32>
    %134 = vector.broadcast %133 : vector<1x64xf32> to vector<64x64xf32>
    %135 = arith.addf %131, %134 : vector<64x64xf32>
    %c0_94 = arith.constant 0 : index
    %c0_95 = arith.constant 0 : index
    %136 = vector.load %arg8[%c0_94, %c0_95] : memref<1x64xf32, #tpu.memory_space<vmem>>, vector<1x64xf32>
    %c0_96 = arith.constant 0 : index
    %c0_97 = arith.constant 0 : index
    %137 = vector.load %arg9[%c0_96, %c0_97] : memref<1x64xf32, #tpu.memory_space<vmem>>, vector<1x64xf32>
    %c0_98 = arith.constant 0 : index
    %c0_99 = arith.constant 0 : index
    %138 = vector.load %arg10[%c0_98, %c0_99] : memref<64x32xf32, #tpu.memory_space<vmem>>, vector<64x32xf32>
    %c0_100 = arith.constant 0 : index
    %c0_101 = arith.constant 0 : index
    %139 = vector.load %arg11[%c0_100, %c0_101] : memref<32x64xf32, #tpu.memory_space<vmem>>, vector<32x64xf32>
    %cst_102 = arith.constant dense<0.000000e+00> : vector<64xf32>
    %140 = vector.multi_reduction <add>, %135, %cst_102 [0] : vector<64x64xf32> to vector<64xf32>
    %141 = vector.shape_cast %140 : vector<64xf32> to vector<1x64xf32>
    %cst_103 = arith.constant dense<0.000000e+00> : vector<1x32xf32>
    %142 = tpu.matmul %141, %138, %cst_103 {dimension_numbers = #tpu.dot_dimension_numbers<[1], [0], [0], [1], [0, 0, 1, 1], [], []>} : vector<1x64xf32>, vector<64x32xf32>, vector<1x32xf32> -> vector<1x32xf32>
    %cst_104 = arith.constant 1.280000e+02 : f32
    %143 = vector.broadcast %cst_104 : f32 to vector<1x32xf32>
    %144 = arith.divf %142, %143 : vector<1x32xf32>
    %cst_105 = arith.constant dense<0.000000e+00> : vector<1x64xf32>
    %145 = tpu.matmul %144, %139, %cst_105 {dimension_numbers = #tpu.dot_dimension_numbers<[1], [0], [0], [1], [0, 0, 1, 1], [], []>} : vector<1x32xf32>, vector<32x64xf32>, vector<1x64xf32> -> vector<1x64xf32>
    %146 = vector.broadcast %145 : vector<1x64xf32> to vector<64x64xf32>
    %147 = arith.subf %135, %146 : vector<64x64xf32>
    %148 = arith.mulf %147, %147 : vector<64x64xf32>
    %cst_106 = arith.constant dense<0.000000e+00> : vector<64xf32>
    %149 = vector.multi_reduction <add>, %148, %cst_106 [0] : vector<64x64xf32> to vector<64xf32>
    %150 = vector.shape_cast %149 : vector<64xf32> to vector<1x64xf32>
    %cst_107 = arith.constant dense<0.000000e+00> : vector<1x32xf32>
    %151 = tpu.matmul %150, %138, %cst_107 {dimension_numbers = #tpu.dot_dimension_numbers<[1], [0], [0], [1], [0, 0, 1, 1], [], []>} : vector<1x64xf32>, vector<64x32xf32>, vector<1x32xf32> -> vector<1x32xf32>
    %cst_108 = arith.constant 1.280000e+02 : f32
    %152 = vector.broadcast %cst_108 : f32 to vector<1x32xf32>
    %153 = arith.divf %151, %152 : vector<1x32xf32>
    %cst_109 = arith.constant dense<0.000000e+00> : vector<1x64xf32>
    %154 = tpu.matmul %153, %139, %cst_109 {dimension_numbers = #tpu.dot_dimension_numbers<[1], [0], [0], [1], [0, 0, 1, 1], [], []>} : vector<1x32xf32>, vector<32x64xf32>, vector<1x64xf32> -> vector<1x64xf32>
    %cst_110 = arith.constant 9.99999974E-6 : f32
    %155 = vector.broadcast %cst_110 : f32 to vector<1x64xf32>
    %156 = arith.addf %154, %155 : vector<1x64xf32>
    %157 = math.rsqrt %156 : vector<1x64xf32>
    %158 = vector.broadcast %157 : vector<1x64xf32> to vector<64x64xf32>
    %159 = arith.mulf %147, %158 : vector<64x64xf32>
    %160 = vector.broadcast %136 : vector<1x64xf32> to vector<64x64xf32>
    %161 = arith.mulf %159, %160 : vector<64x64xf32>
    %162 = vector.broadcast %137 : vector<1x64xf32> to vector<64x64xf32>
    %163 = arith.addf %161, %162 : vector<64x64xf32>
    %164 = arith.negf %163 : vector<64x64xf32>
    %165 = math.exp %164 : vector<64x64xf32>
    %cst_111 = arith.constant 1.000000e+00 : f32
    %166 = vector.broadcast %cst_111 : f32 to vector<64x64xf32>
    %167 = arith.addf %166, %165 : vector<64x64xf32>
    %168 = arith.divf %166, %167 : vector<64x64xf32>
    %169 = arith.mulf %163, %168 : vector<64x64xf32>
    %cst_112 = arith.constant 0.000000e+00 : bf16
    %170 = vector.broadcast %cst_112 : bf16 to vector<9x64xbf16>
    %c0_113 = arith.constant 0 : index
    %c0_114 = arith.constant 0 : index
    %171 = vector.load %arg18[%c0_113, %c0_114] : memref<82x64xbf16, #tpu.memory_space<vmem>>, vector<9x64xbf16>
    tpu.vector_store %arg18[%c0_113, %c0_114], %170 {strides = array<i32>} : memref<82x64xbf16, #tpu.memory_space<vmem>>, vector<9x64xbf16>,
    %c73_115 = arith.constant 73 : index
    %c0_116 = arith.constant 0 : index
    %172 = vector.load %arg18[%c73_115, %c0_116] : memref<82x64xbf16, #tpu.memory_space<vmem>>, vector<9x64xbf16>
    tpu.vector_store %arg18[%c73_115, %c0_116], %170 {strides = array<i32>} : memref<82x64xbf16, #tpu.memory_space<vmem>>, vector<9x64xbf16>,
    %173 = arith.truncf %169 : vector<64x64xf32> to vector<64x64xbf16>
    %c9_117 = arith.constant 9 : index
    %c0_118 = arith.constant 0 : index
    %174 = vector.load %arg18[%c9_117, %c0_118] : memref<82x64xbf16, #tpu.memory_space<vmem>>, vector<64x64xbf16>
    tpu.vector_store %arg18[%c9_117, %c0_118], %173 {strides = array<i32>} : memref<82x64xbf16, #tpu.memory_space<vmem>>, vector<64x64xbf16>,
    %cst_119 = arith.constant 0.000000e+00 : f32
    %175 = vector.broadcast %cst_119 : f32 to vector<64x64xf32>
    %c0_120 = arith.constant 0 : index
    %c0_121 = arith.constant 0 : index
    %176 = vector.load %arg18[%c0_120, %c0_121] : memref<82x64xbf16, #tpu.memory_space<vmem>>, vector<64x64xbf16>
    %cst_122 = arith.constant 0.000000e+00 : bf16
    %177 = vector.broadcast %cst_122 : bf16 to vector<64x64xbf16>
    %178 = vector.shape_cast %20 : vector<64x1xi1> to vector<64x1xi1>
    %179 = vector.broadcast %178 : vector<64x1xi1> to vector<64x64xi1>
    %180 = arith.select %179, %176, %177 : vector<64x64xi1>, vector<64x64xbf16>
    %c0_123 = arith.constant 0 : index
    %c0_124 = arith.constant 0 : index
    %c0_125 = arith.constant 0 : index
    %c0_126 = arith.constant 0 : index
    %181 = vector.load %arg12[%c0_123, %c0_124, %c0_125, %c0_126] : memref<3x3x64x64xbf16, #tpu.memory_space<vmem>>, vector<1x1x64x64xbf16>
    %182 = vector.shape_cast %181 : vector<1x1x64x64xbf16> to vector<64x64xbf16>
    %cst_127 = arith.constant dense<0.000000e+00> : vector<64x64xf32>
    %183 = tpu.matmul %180, %182, %cst_127 {dimension_numbers = #tpu.dot_dimension_numbers<[1], [0], [0], [1], [0, 0, 1, 1], [], []>} : vector<64x64xbf16>, vector<64x64xbf16>, vector<64x64xf32> -> vector<64x64xf32>
    %184 = arith.addf %175, %183 : vector<64x64xf32>
    %c1_128 = arith.constant 1 : index
    %c0_129 = arith.constant 0 : index
    %185 = vector.load %arg18[%c1_128, %c0_129] : memref<82x64xbf16, #tpu.memory_space<vmem>>, vector<64x64xbf16>
    %c0_130 = arith.constant 0 : index
    %c1_131 = arith.constant 1 : index
    %c0_132 = arith.constant 0 : index
    %c0_133 = arith.constant 0 : index
    %186 = vector.load %arg12[%c0_130, %c1_131, %c0_132, %c0_133] : memref<3x3x64x64xbf16, #tpu.memory_space<vmem>>, vector<1x1x64x64xbf16>
    %187 = vector.shape_cast %186 : vector<1x1x64x64xbf16> to vector<64x64xbf16>
    %cst_134 = arith.constant dense<0.000000e+00> : vector<64x64xf32>
    %188 = tpu.matmul %185, %187, %cst_134 {dimension_numbers = #tpu.dot_dimension_numbers<[1], [0], [0], [1], [0, 0, 1, 1], [], []>} : vector<64x64xbf16>, vector<64x64xbf16>, vector<64x64xf32> -> vector<64x64xf32>
    %189 = arith.addf %184, %188 : vector<64x64xf32>
    %c2_135 = arith.constant 2 : index
    %c0_136 = arith.constant 0 : index
    %190 = vector.load %arg18[%c2_135, %c0_136] : memref<82x64xbf16, #tpu.memory_space<vmem>>, vector<64x64xbf16>
    %cst_137 = arith.constant 0.000000e+00 : bf16
    %191 = vector.broadcast %cst_137 : bf16 to vector<64x64xbf16>
    %192 = vector.shape_cast %22 : vector<64x1xi1> to vector<64x1xi1>
    %193 = vector.broadcast %192 : vector<64x1xi1> to vector<64x64xi1>
    %194 = arith.select %193, %190, %191 : vector<64x64xi1>, vector<64x64xbf16>
    %c0_138 = arith.constant 0 : index
    %c2_139 = arith.constant 2 : index
    %c0_140 = arith.constant 0 : index
    %c0_141 = arith.constant 0 : index
    %195 = vector.load %arg12[%c0_138, %c2_139, %c0_140, %c0_141] : memref<3x3x64x64xbf16, #tpu.memory_space<vmem>>, vector<1x1x64x64xbf16>
    %196 = vector.shape_cast %195 : vector<1x1x64x64xbf16> to vector<64x64xbf16>
    %cst_142 = arith.constant dense<0.000000e+00> : vector<64x64xf32>
    %197 = tpu.matmul %194, %196, %cst_142 {dimension_numbers = #tpu.dot_dimension_numbers<[1], [0], [0], [1], [0, 0, 1, 1], [], []>} : vector<64x64xbf16>, vector<64x64xbf16>, vector<64x64xf32> -> vector<64x64xf32>
    %198 = arith.addf %189, %197 : vector<64x64xf32>
    %c8_143 = arith.constant 8 : index
    %c0_144 = arith.constant 0 : index
    %199 = vector.load %arg18[%c8_143, %c0_144] : memref<82x64xbf16, #tpu.memory_space<vmem>>, vector<64x64xbf16>
    %cst_145 = arith.constant 0.000000e+00 : bf16
    %200 = vector.broadcast %cst_145 : bf16 to vector<64x64xbf16>
    %201 = vector.shape_cast %20 : vector<64x1xi1> to vector<64x1xi1>
    %202 = vector.broadcast %201 : vector<64x1xi1> to vector<64x64xi1>
    %203 = arith.select %202, %199, %200 : vector<64x64xi1>, vector<64x64xbf16>
    %c1_146 = arith.constant 1 : index
    %c0_147 = arith.constant 0 : index
    %c0_148 = arith.constant 0 : index
    %c0_149 = arith.constant 0 : index
    %204 = vector.load %arg12[%c1_146, %c0_147, %c0_148, %c0_149] : memref<3x3x64x64xbf16, #tpu.memory_space<vmem>>, vector<1x1x64x64xbf16>
    %205 = vector.shape_cast %204 : vector<1x1x64x64xbf16> to vector<64x64xbf16>
    %cst_150 = arith.constant dense<0.000000e+00> : vector<64x64xf32>
    %206 = tpu.matmul %203, %205, %cst_150 {dimension_numbers = #tpu.dot_dimension_numbers<[1], [0], [0], [1], [0, 0, 1, 1], [], []>} : vector<64x64xbf16>, vector<64x64xbf16>, vector<64x64xf32> -> vector<64x64xf32>
    %207 = arith.addf %198, %206 : vector<64x64xf32>
    %c9_151 = arith.constant 9 : index
    %c0_152 = arith.constant 0 : index
    %208 = vector.load %arg18[%c9_151, %c0_152] : memref<82x64xbf16, #tpu.memory_space<vmem>>, vector<64x64xbf16>
    %c1_153 = arith.constant 1 : index
    %c1_154 = arith.constant 1 : index
    %c0_155 = arith.constant 0 : index
    %c0_156 = arith.constant 0 : index
    %209 = vector.load %arg12[%c1_153, %c1_154, %c0_155, %c0_156] : memref<3x3x64x64xbf16, #tpu.memory_space<vmem>>, vector<1x1x64x64xbf16>
    %210 = vector.shape_cast %209 : vector<1x1x64x64xbf16> to vector<64x64xbf16>
    %cst_157 = arith.constant dense<0.000000e+00> : vector<64x64xf32>
    %211 = tpu.matmul %208, %210, %cst_157 {dimension_numbers = #tpu.dot_dimension_numbers<[1], [0], [0], [1], [0, 0, 1, 1], [], []>} : vector<64x64xbf16>, vector<64x64xbf16>, vector<64x64xf32> -> vector<64x64xf32>
    %212 = arith.addf %207, %211 : vector<64x64xf32>
    %c10_158 = arith.constant 10 : index
    %c0_159 = arith.constant 0 : index
    %213 = vector.load %arg18[%c10_158, %c0_159] : memref<82x64xbf16, #tpu.memory_space<vmem>>, vector<64x64xbf16>
    %cst_160 = arith.constant 0.000000e+00 : bf16
    %214 = vector.broadcast %cst_160 : bf16 to vector<64x64xbf16>
    %215 = vector.shape_cast %22 : vector<64x1xi1> to vector<64x1xi1>
    %216 = vector.broadcast %215 : vector<64x1xi1> to vector<64x64xi1>
    %217 = arith.select %216, %213, %214 : vector<64x64xi1>, vector<64x64xbf16>
    %c1_161 = arith.constant 1 : index
    %c2_162 = arith.constant 2 : index
    %c0_163 = arith.constant 0 : index
    %c0_164 = arith.constant 0 : index
    %218 = vector.load %arg12[%c1_161, %c2_162, %c0_163, %c0_164] : memref<3x3x64x64xbf16, #tpu.memory_space<vmem>>, vector<1x1x64x64xbf16>
    %219 = vector.shape_cast %218 : vector<1x1x64x64xbf16> to vector<64x64xbf16>
    %cst_165 = arith.constant dense<0.000000e+00> : vector<64x64xf32>
    %220 = tpu.matmul %217, %219, %cst_165 {dimension_numbers = #tpu.dot_dimension_numbers<[1], [0], [0], [1], [0, 0, 1, 1], [], []>} : vector<64x64xbf16>, vector<64x64xbf16>, vector<64x64xf32> -> vector<64x64xf32>
    %221 = arith.addf %212, %220 : vector<64x64xf32>
    %c16_166 = arith.constant 16 : index
    %c0_167 = arith.constant 0 : index
    %222 = vector.load %arg18[%c16_166, %c0_167] : memref<82x64xbf16, #tpu.memory_space<vmem>>, vector<64x64xbf16>
    %cst_168 = arith.constant 0.000000e+00 : bf16
    %223 = vector.broadcast %cst_168 : bf16 to vector<64x64xbf16>
    %224 = vector.shape_cast %20 : vector<64x1xi1> to vector<64x1xi1>
    %225 = vector.broadcast %224 : vector<64x1xi1> to vector<64x64xi1>
    %226 = arith.select %225, %222, %223 : vector<64x64xi1>, vector<64x64xbf16>
    %c2_169 = arith.constant 2 : index
    %c0_170 = arith.constant 0 : index
    %c0_171 = arith.constant 0 : index
    %c0_172 = arith.constant 0 : index
    %227 = vector.load %arg12[%c2_169, %c0_170, %c0_171, %c0_172] : memref<3x3x64x64xbf16, #tpu.memory_space<vmem>>, vector<1x1x64x64xbf16>
    %228 = vector.shape_cast %227 : vector<1x1x64x64xbf16> to vector<64x64xbf16>
    %cst_173 = arith.constant dense<0.000000e+00> : vector<64x64xf32>
    %229 = tpu.matmul %226, %228, %cst_173 {dimension_numbers = #tpu.dot_dimension_numbers<[1], [0], [0], [1], [0, 0, 1, 1], [], []>} : vector<64x64xbf16>, vector<64x64xbf16>, vector<64x64xf32> -> vector<64x64xf32>
    %230 = arith.addf %221, %229 : vector<64x64xf32>
    %c17_174 = arith.constant 17 : index
    %c0_175 = arith.constant 0 : index
    %231 = vector.load %arg18[%c17_174, %c0_175] : memref<82x64xbf16, #tpu.memory_space<vmem>>, vector<64x64xbf16>
    %c2_176 = arith.constant 2 : index
    %c1_177 = arith.constant 1 : index
    %c0_178 = arith.constant 0 : index
    %c0_179 = arith.constant 0 : index
    %232 = vector.load %arg12[%c2_176, %c1_177, %c0_178, %c0_179] : memref<3x3x64x64xbf16, #tpu.memory_space<vmem>>, vector<1x1x64x64xbf16>
    %233 = vector.shape_cast %232 : vector<1x1x64x64xbf16> to vector<64x64xbf16>
    %cst_180 = arith.constant dense<0.000000e+00> : vector<64x64xf32>
    %234 = tpu.matmul %231, %233, %cst_180 {dimension_numbers = #tpu.dot_dimension_numbers<[1], [0], [0], [1], [0, 0, 1, 1], [], []>} : vector<64x64xbf16>, vector<64x64xbf16>, vector<64x64xf32> -> vector<64x64xf32>
    %235 = arith.addf %230, %234 : vector<64x64xf32>
    %c18_181 = arith.constant 18 : index
    %c0_182 = arith.constant 0 : index
    %236 = vector.load %arg18[%c18_181, %c0_182] : memref<82x64xbf16, #tpu.memory_space<vmem>>, vector<64x64xbf16>
    %cst_183 = arith.constant 0.000000e+00 : bf16
    %237 = vector.broadcast %cst_183 : bf16 to vector<64x64xbf16>
    %238 = vector.shape_cast %22 : vector<64x1xi1> to vector<64x1xi1>
    %239 = vector.broadcast %238 : vector<64x1xi1> to vector<64x64xi1>
    %240 = arith.select %239, %236, %237 : vector<64x64xi1>, vector<64x64xbf16>
    %c2_184 = arith.constant 2 : index
    %c2_185 = arith.constant 2 : index
    %c0_186 = arith.constant 0 : index
    %c0_187 = arith.constant 0 : index
    %241 = vector.load %arg12[%c2_184, %c2_185, %c0_186, %c0_187] : memref<3x3x64x64xbf16, #tpu.memory_space<vmem>>, vector<1x1x64x64xbf16>
    %242 = vector.shape_cast %241 : vector<1x1x64x64xbf16> to vector<64x64xbf16>
    %cst_188 = arith.constant dense<0.000000e+00> : vector<64x64xf32>
    %243 = tpu.matmul %240, %242, %cst_188 {dimension_numbers = #tpu.dot_dimension_numbers<[1], [0], [0], [1], [0, 0, 1, 1], [], []>} : vector<64x64xbf16>, vector<64x64xbf16>, vector<64x64xf32> -> vector<64x64xf32>
    %244 = arith.addf %235, %243 : vector<64x64xf32>
    %c0_189 = arith.constant 0 : index
    %c0_190 = arith.constant 0 : index
    %245 = vector.load %arg13[%c0_189, %c0_190] : memref<1x64xf32, #tpu.memory_space<vmem>>, vector<1x64xf32>
    %246 = vector.broadcast %245 : vector<1x64xf32> to vector<64x64xf32>
    %247 = arith.addf %244, %246 : vector<64x64xf32>
    %248 = arith.truncf %1 : vector<64x32xf32> to vector<64x32xbf16>
    %c0_191 = arith.constant 0 : index
    %c0_192 = arith.constant 0 : index
    %249 = vector.load %arg14[%c0_191, %c0_192] : memref<32x64xbf16, #tpu.memory_space<vmem>>, vector<32x64xbf16>
    %cst_193 = arith.constant dense<0.000000e+00> : vector<64x64xf32>
    %250 = tpu.matmul %248, %249, %cst_193 {dimension_numbers = #tpu.dot_dimension_numbers<[1], [0], [0], [1], [0, 0, 1, 1], [], []>} : vector<64x32xbf16>, vector<32x64xbf16>, vector<64x64xf32> -> vector<64x64xf32>
    %c0_194 = arith.constant 0 : index
    %c0_195 = arith.constant 0 : index
    %251 = vector.load %arg15[%c0_194, %c0_195] : memref<1x64xf32, #tpu.memory_space<vmem>>, vector<1x64xf32>
    %252 = vector.broadcast %251 : vector<1x64xf32> to vector<64x64xf32>
    %253 = arith.addf %250, %252 : vector<64x64xf32>
    %254 = arith.addf %247, %253 : vector<64x64xf32>
    %c0_196 = arith.constant 0 : index
    %c0_197 = arith.constant 0 : index
    %c0_198 = arith.constant 0 : index
    %255 = vector.load %arg16[%c0_196, %c0_197, %c0_198] : memref<1x64x64xf32, #tpu.memory_space<vmem>>, vector<1x64x64xf32>
    %256 = vector.shape_cast %255 : vector<1x64x64xf32> to vector<64x64xf32>
    %257 = vector.shape_cast %254 : vector<64x64xf32> to vector<1x64x64xf32>
    tpu.vector_store %arg16[%c0_196, %c0_197, %c0_198], %257 {strides = array<i32>} : memref<1x64x64xf32, #tpu.memory_space<vmem>>, vector<1x64x64xf32>,
    return
  }
  func.func @transform_0(%arg0: i32) -> (i32, i32, i32) {
    %c0_i32 = arith.constant 0 : i32
    %c0_i32_0 = arith.constant 0 : i32
    %c0_i32_1 = arith.constant 0 : i32
    return %arg0, %c0_i32, %c0_i32_0 : i32, i32, i32
  }
  func.func @transform_1(%arg0: i32) -> (i32, i32, i32) {
    %c0_i32 = arith.constant 0 : i32
    %c0_i32_0 = arith.constant 0 : i32
    %c0_i32_1 = arith.constant 0 : i32
    return %arg0, %c0_i32, %c0_i32_0 : i32, i32, i32
  }
  func.func @transform_2(%arg0: i32) -> (i32, i32) {
    %c0_i32 = arith.constant 0 : i32
    %c0_i32_0 = arith.constant 0 : i32
    %c0_i32_1 = arith.constant 0 : i32
    return %c0_i32, %c0_i32_0 : i32, i32
  }
  func.func @transform_3(%arg0: i32) -> (i32, i32) {
    %c0_i32 = arith.constant 0 : i32
    %c0_i32_0 = arith.constant 0 : i32
    %c0_i32_1 = arith.constant 0 : i32
    return %c0_i32, %c0_i32_0 : i32, i32
  }
  func.func @transform_4(%arg0: i32) -> (i32, i32) {
    %c0_i32 = arith.constant 0 : i32
    %c0_i32_0 = arith.constant 0 : i32
    %c0_i32_1 = arith.constant 0 : i32
    return %c0_i32, %c0_i32_0 : i32, i32
  }
  func.func @transform_5(%arg0: i32) -> (i32, i32) {
    %c0_i32 = arith.constant 0 : i32
    %c0_i32_0 = arith.constant 0 : i32
    %c0_i32_1 = arith.constant 0 : i32
    return %c0_i32, %c0_i32_0 : i32, i32
  }
  func.func @transform_6(%arg0: i32) -> (i32, i32, i32, i32) {
    %c0_i32 = arith.constant 0 : i32
    %c0_i32_0 = arith.constant 0 : i32
    %c0_i32_1 = arith.constant 0 : i32
    %c0_i32_2 = arith.constant 0 : i32
    %c0_i32_3 = arith.constant 0 : i32
    return %c0_i32, %c0_i32_0, %c0_i32_1, %c0_i32_2 : i32, i32, i32, i32
  }
  func.func @transform_7(%arg0: i32) -> (i32, i32) {
    %c0_i32 = arith.constant 0 : i32
    %c0_i32_0 = arith.constant 0 : i32
    %c0_i32_1 = arith.constant 0 : i32
    return %c0_i32, %c0_i32_0 : i32, i32
  }
  func.func @transform_8(%arg0: i32) -> (i32, i32) {
    %c0_i32 = arith.constant 0 : i32
    %c0_i32_0 = arith.constant 0 : i32
    %c0_i32_1 = arith.constant 0 : i32
    return %c0_i32, %c0_i32_0 : i32, i32
  }
  func.func @transform_9(%arg0: i32) -> (i32, i32) {
    %c0_i32 = arith.constant 0 : i32
    %c0_i32_0 = arith.constant 0 : i32
    %c0_i32_1 = arith.constant 0 : i32
    return %c0_i32, %c0_i32_0 : i32, i32
  }
  func.func @transform_10(%arg0: i32) -> (i32, i32) {
    %c0_i32 = arith.constant 0 : i32
    %c0_i32_0 = arith.constant 0 : i32
    %c0_i32_1 = arith.constant 0 : i32
    return %c0_i32, %c0_i32_0 : i32, i32
  }
  func.func @transform_11(%arg0: i32) -> (i32, i32, i32, i32) {
    %c0_i32 = arith.constant 0 : i32
    %c0_i32_0 = arith.constant 0 : i32
    %c0_i32_1 = arith.constant 0 : i32
    %c0_i32_2 = arith.constant 0 : i32
    %c0_i32_3 = arith.constant 0 : i32
    return %c0_i32, %c0_i32_0, %c0_i32_1, %c0_i32_2 : i32, i32, i32, i32
  }
  func.func @transform_12(%arg0: i32) -> (i32, i32) {
    %c0_i32 = arith.constant 0 : i32
    %c0_i32_0 = arith.constant 0 : i32
    %c0_i32_1 = arith.constant 0 : i32
    return %c0_i32, %c0_i32_0 : i32, i32
  }
  func.func @transform_13(%arg0: i32) -> (i32, i32) {
    %c0_i32 = arith.constant 0 : i32
    %c0_i32_0 = arith.constant 0 : i32
    %c0_i32_1 = arith.constant 0 : i32
    return %c0_i32, %c0_i32_0 : i32, i32
  }
  func.func @transform_14(%arg0: i32) -> (i32, i32) {
    %c0_i32 = arith.constant 0 : i32
    %c0_i32_0 = arith.constant 0 : i32
    %c0_i32_1 = arith.constant 0 : i32
    return %c0_i32, %c0_i32_0 : i32, i32
  }
  func.func @transform_15(%arg0: i32) -> (i32, i32, i32) {
    %c0_i32 = arith.constant 0 : i32
    %c0_i32_0 = arith.constant 0 : i32
    %c0_i32_1 = arith.constant 0 : i32
    return %arg0, %c0_i32, %c0_i32_0 : i32, i32, i32
  }
}

</mosaic_0001>

<bundles_post_ra>
// kernel: tpu_custom_call.1
= control target key start
LH: loop header
LB: loop body
LE: loop exit
PB: predicated region body
PF: predicated region fallthrough
CT: control target
= control target key end

     0   :  { %s8590_s0 = inlined_call_operand.vmem [shape: f32[2,64,32], index: 0, kind: input, shape index: {}]   ;;  %s8591_s1 = inlined_call_operand.hbm [shape: f32[2,1,64], index: 1, kind: input, shape index: {}]   ;;  %s8592_s2 = inlined_call_operand.vmem [shape: f32[1,32], index: 2, kind: input, shape index: {}]   ;;  %s8593_s3 = inlined_call_operand.hbm [shape: f32[1,32], index: 3, kind: input, shape index: {}]   ;;  %s8594_s4 = inlined_call_operand.vmem [shape: f32[32,32], index: 4, kind: input, shape index: {}]   ;;  %s8595_s5 = inlined_call_operand.hbm [shape: f32[32,32], index: 5, kind: input, shape index: {}]   ;;  %s8596_s6 = inlined_call_operand.hbm [shape: bf16[3,3,32,64], index: 6, kind: input, shape index: {}]   ;;  %s8597_s7 = inlined_call_operand.hbm [shape: f32[1,64], index: 7, kind: input, shape index: {}]   ;;  %s8598_s8 = inlined_call_operand.hbm [shape: f32[1,64], index: 8, kind: input, shape index: {}]   ;;  %s8599_s9 = inlined_call_operand.vmem [shape: f32[64,32], index: 9, kind: input, shape index: {}]   ;;  %s8600_s10 = inlined_call_operand.hbm [shape: f32[32,64], index: 10, kind: input, shape index: {}]   ;;  %s8601_s11 = inlined_call_operand.vmem [shape: bf16[3,3,64,64], index: 11, kind: input, shape index: {}]   ;;  %s8602_s12 = inlined_call_operand.hbm [shape: f32[1,64], index: 12, kind: input, shape index: {}]   ;;  %s8603_s13 = inlined_call_operand.vmem [shape: bf16[32,64], index: 13, kind: input, shape index: {}]   ;;  %s8604_s14 = inlined_call_operand.vmem [shape: f32[1,64], index: 14, kind: input, shape index: {}]   ;;  %s8605_s15 = inlined_call_operand.hbm [shape: f32[2,64,64], index: 15, kind: output, shape index: {}]  }
   0x1   :  { %8629 = sst [smem:[#allocation25_spill]] %s8590_s0 }
   0x2   :  { %8630 = sst [smem:[#allocation26_spill]] %s8591_s1 }
   0x3   :  { %8631 = sst [smem:[#allocation27_spill]] %s8593_s3 }
   0x4   :  { %8632 = sst [smem:[#allocation28_spill]] %s8596_s6 }
   0x5   :  { %8633 = sst [smem:[#allocation29_spill]] %s8599_s9 }
   0x6   :  { %8634 = sst [smem:[#allocation30_spill]] %s8601_s11 }
   0x7   :  { %8635 = sst [smem:[#allocation31_spill]] %s8603_s13 }
   0x8   :  { %8636 = sst [smem:[#allocation32_spill]] %s8604_s14 }
   0x9   :  { %8637 = sst [smem:[#allocation33_spill]] %s8605_s15 }
   0xa   :  { %20 = vsyncpa [#allocation5], 0 }
   0xb   :  { %22 = vsyncpa [#allocation5 + $0x1], 0 }
   0xc   :  { %23 = vsyncpa [#allocation8], 0 }
   0xd   :  { %24 = vsyncpa [#allocation11], 0 }
   0xe   :  { %25 = vsyncpa [#allocation14], 0 }
   0xf   :  { %26 = vsyncpa [#allocation17], 0 }
  0x10   :  { %27 = vsyncpa [#allocation6], 0 }
  0x11   :  { %29 = vsyncpa [#allocation6 + $0x1], 0  ;;  %s6967_s18 = smov 0   ;;  %s6969_s19 = smov 0  }
  0x12   :  { %s6971_s20 = smov 0   ;;  %s6973_s21 = smov 0  }
  0x13 LB: > { %s6868_s22 = smov [#allocation7]   ;;  %s6988_s24 = sadd.s32 4294967295, %s6866_s21   ;;  %s6866_s21 = sphi %s6973_s21, %s8802_s21   ;;  %s6862_s20 = sphi %s6971_s20, %s8801_s20   ;;  %s6858_s19 = sphi %s6969_s19, %s8800_s19   ;;  %s6854_s18 = sphi %s6967_s18, %s8799_s18  }
  0x14   : > { %s407_s23 = sshll.u32 %s6868_s22, 4  ;;  %p5138_p0 = scmp.ge.s32.totalorder %s6866_s21, 1  ;;  %s6993_s23 = int_to_ptr.vmem [resolvable:$true] %s407_s23 }
  0x15   : > { %p8610_p1 = scmp.eq.s32.totalorder %s6988_s24, 0  ;;  %p391_p2 = scmp.lt.s32.totalorder %s6866_s21, 3 }
  0x16   : > { %s6869_s26 = smov [#allocation10]   ;;  %s6870_s29 = smov [#allocation13]  }
  0x17   : > { %p6995_p3 = pnand %p5138_p0, %p391_p2  ;;  %s433_s27 = sshll.u32 %s6869_s26, 4  ;;  %s7002_s27 = int_to_ptr.vmem [resolvable:$true] %s433_s27 }
  0x18   : > { %s458_s30 = sshll.u32 %s6870_s29, 4  ;;  %s8640_s3 = sld [smem:[#allocation27_spill]]  ;;  %s7010_s30 = int_to_ptr.vmem [resolvable:$true] %s458_s30 }
  0x19   : > { %s8638_s25 = scalar_select %p6995_p3, 1, 0 }
  0x1a   : > { %p6301_p5 = pneg %p6995_p3 }
  0x1c   : > { %p7006_p6 = pnand %p6301_p5, %p8610_p1 }
  0x1e   : > { %s6558_s22 = scalar_lea.hbm %s8640_s3, 16  ;;  %p7020_p8 = pneg %p7006_p6 }
  0x1f   : > { %p6559_p7 = scmp.ne.s32.totalorder %s8640_s3, %s6558_s22  ;;  %p6565_p11 = scmp.lt.u32.totalorder %s6558_s22, %s8640_s3 }
  0x21   : > { %p6561_p9 = pnand %p7020_p8, %p6559_p7 }
  0x23   : > { %p6562_p10 = pneg %p6561_p9 }
  0x25   : > { %p6567_p12 = pnand %p6565_p11, %p6562_p10 }
  0x27   : > { %6570 = shalt.err (!%p6567_p12)
}
  0x28   : > { %s6571_s14 = scalar_lea.vmem %s6993_s23, 16  ;;  %s6578_s15 = scalar_lea.vmem %s6993_s23, 32 }
  0x29   : > { %p6572_p13 = scmp.ne.s32.totalorder %s6993_s23, %s6571_s14  ;;  %p6579_p5 = scmp.lt.s32.totalorder %s6993_s23, %s6993_s23 }
  0x2a   : > { %p6580_p7 = scmp.lt.s32.totalorder %s6578_s15, %s6571_s14 }
  0x2b   : > { %p6574_p0 = pnand %p6572_p13, %p7020_p8 }
  0x2c   : > { %p6581_p9 = por %p6580_p7, %p6579_p5 }
  0x2d   : > { %p6575_p2 = pneg %p6574_p0 }
  0x2f   : > { %p6582_p4 = pnand %p6581_p9, %p6575_p2 }
  0x31   : > { %6585 = shalt.err (!%p6582_p4)
}
  0x32   : > { %6304 = dma.hbm_to_vmem [thread:$0]  (!%p7006_p6), %s8640_s3, 16, %s6993_s23, [#allocation8]  }
  0x33   : > { %s8642_s6 = sld [smem:[#allocation28_spill]] }
  0x39   : > { %s6586_s29 = scalar_lea.hbm %s8642_s6, 2304 }
  0x3a   : > { %p6587_p10 = scmp.ne.s32.totalorder %s8642_s6, %s6586_s29  ;;  %p6593_p4 = scmp.lt.u32.totalorder %s6586_s29, %s8642_s6 }
  0x3c   : > { %p6589_p11 = pnand %p6587_p10, %p7020_p8 }
  0x3e   : > { %p6590_p12 = pneg %p6589_p11 }
  0x40   : > { %p6595_p13 = pnand %p6593_p4, %p6590_p12 }
  0x42   : > { %6598 = shalt.err (!%p6595_p13)
}
  0x43   : > { %s6599_s23 = scalar_lea.vmem %s7002_s27, 2304  ;;  %p6607_p7 = scmp.lt.s32.totalorder %s7002_s27, %s7002_s27 }
  0x44   : > { %p6600_p0 = scmp.ne.s32.totalorder %s7002_s27, %s6599_s23  ;;  %p6608_p9 = scmp.lt.s32.totalorder %s6599_s23, %s6599_s23 }
  0x46   : > { %p6602_p2 = pnand %p6600_p0, %p7020_p8  ;;  %p6609_p10 = por %p6608_p9, %p6607_p7 }
  0x48   : > { %p6603_p5 = pneg %p6602_p2 }
  0x4a   : > { %p6610_p11 = pnand %p6609_p10, %p6603_p5 }
  0x4c   : > { %6613 = shalt.err (!%p6610_p11)
}
  0x4d   : > { %s6871_s9 = smov 64   ;;  %s6872_s11 = smov 4  }
  0x4e   : > { %6310 = dma.hbm_to_vmem [thread:$0]  (!%p7006_p6), %s8642_s6, 2304, %s7002_s27, [#allocation11], %s6871_s9, %s6871_s9, %s6872_s11  }
  0x4f   : > { %s6614_s29 = scalar_lea.hbm %s8598_s8, 16 }
  0x50   : > { %p6615_p12 = scmp.ne.s32.totalorder %s8598_s8, %s6614_s29  ;;  %p6621_p0 = scmp.lt.u32.totalorder %s6614_s29, %s8598_s8 }
  0x52   : > { %p6617_p4 = pnand %p6615_p12, %p7020_p8 }
  0x54   : > { %p6618_p13 = pneg %p6617_p4 }
  0x56   : > { %p6623_p2 = pnand %p6621_p0, %p6618_p13 }
  0x58   : > { %6626 = shalt.err (!%p6623_p2)
}
  0x59   : > { %s6627_s27 = scalar_lea.vmem %s7010_s30, 16  ;;  %s6634_s9 = scalar_lea.vmem %s7010_s30, 32 }
  0x5a   : > { %p6628_p5 = scmp.ne.s32.totalorder %s7010_s30, %s6627_s27  ;;  %p6635_p10 = scmp.lt.s32.totalorder %s7010_s30, %s7010_s30 }
  0x5b   : > { %p6636_p11 = scmp.lt.s32.totalorder %s6634_s9, %s6627_s27 }
  0x5c   : > { %p6630_p7 = pnand %p6628_p5, %p7020_p8 }
  0x5d   : > { %p6637_p12 = por %p6636_p11, %p6635_p10 }
  0x5e   : > { %p6631_p9 = pneg %p6630_p7 }
  0x60   : > { %p6638_p4 = pnand %p6637_p12, %p6631_p9 }
  0x62   : > { %6641 = shalt.err (!%p6638_p4)
}
  0x63   : > { %6316 = dma.hbm_to_vmem [thread:$0]  (!%p7006_p6), %s8598_s8, 16, %s7010_s30, [#allocation14]  }
  0x64   : > { %s6873_s13 = smov [#allocation9]   ;;  %s6642_s29 = scalar_lea.hbm %s8595_s5, 512 }
  0x65   : > { %s420_s16 = sshll.u32 %s6873_s13, 4  ;;  %p6643_p13 = scmp.ne.s32.totalorder %s8595_s5, %s6642_s29  ;;  %s421_s16 = int_to_ptr.vmem [resolvable:$true] %s420_s16 }
  0x66   : > { %p6649_p5 = scmp.lt.u32.totalorder %s6642_s29, %s8595_s5 }
  0x67   : > { %p6645_p0 = pnand %p6643_p13, %p7020_p8 }
  0x69   : > { %p6646_p2 = pneg %p6645_p0 }
  0x6b   : > { %p6651_p7 = pnand %p6649_p5, %p6646_p2 }
  0x6d   : > { %6654 = shalt.err (!%p6651_p7)
}
  0x6e   : > { %s6655_s30 = scalar_lea.vmem %s421_s16, 512  ;;  %p6663_p12 = scmp.lt.s32.totalorder %s421_s16, %s421_s16 }
  0x6f   : > { %p6656_p9 = scmp.ne.s32.totalorder %s421_s16, %s6655_s30  ;;  %p6664_p4 = scmp.lt.s32.totalorder %s6655_s30, %s6655_s30 }
  0x71   : > { %p6658_p10 = pnand %p6656_p9, %p7020_p8  ;;  %p6665_p1 = por %p6664_p4, %p6663_p12 }
  0x73   : > { %p6659_p11 = pneg %p6658_p10 }
  0x75   : > { %p6666_p3 = pnand %p6665_p1, %p6659_p11 }
  0x77   : > { %6669 = shalt.err (!%p6666_p3)
}
  0x78   : > { %s6874_s9 = smov 128   ;;  %s6875_s3 = smov 8  }
  0x79   : > { %6307 = dma.hbm_to_vmem [thread:$0]  (!%p7006_p6), %s8595_s5, 512, %s421_s16, [#allocation8], %s6874_s9, %s6874_s9, %s6875_s3  }
  0x7a   : > { %s6876_s17 = smov [#allocation12]   ;;  %s6877_s29 = smov [#allocation15]  }
  0x7b   : > { %s447_s22 = sshll.u32 %s6876_s17, 4  ;;  %s471_s14 = sshll.u32 %s6877_s29, 4  ;;  %s448_s22 = int_to_ptr.vmem [resolvable:$true] %s447_s22  ;;  %s7110_s14 = int_to_ptr.vmem [resolvable:$true] %s471_s14 }
  0x7c   : > { %s6670_s27 = scalar_lea.hbm %s8597_s7, 16 }
  0x7d   : > { %p6671_p1 = scmp.ne.s32.totalorder %s8597_s7, %s6670_s27  ;;  %p6677_p0 = scmp.lt.u32.totalorder %s6670_s27, %s8597_s7 }
  0x7f   : > { %p6673_p3 = pnand %p6671_p1, %p7020_p8 }
  0x81   : > { %p6674_p13 = pneg %p6673_p3 }
  0x83   : > { %p6679_p2 = pnand %p6677_p0, %p6674_p13 }
  0x85   : > { %6682 = shalt.err (!%p6679_p2)
}
  0x86   : > { %s6683_s13 = scalar_lea.vmem %s448_s22, 16  ;;  %s6690_s17 = scalar_lea.vmem %s448_s22, 32 }
  0x87   : > { %p6684_p5 = scmp.ne.s32.totalorder %s448_s22, %s6683_s13  ;;  %p6691_p10 = scmp.lt.s32.totalorder %s448_s22, %s448_s22 }
  0x88   : > { %p6692_p11 = scmp.lt.s32.totalorder %s6690_s17, %s6683_s13 }
  0x89   : > { %p6686_p7 = pnand %p6684_p5, %p7020_p8 }
  0x8a   : > { %p6693_p12 = por %p6692_p11, %p6691_p10 }
  0x8b   : > { %p6687_p9 = pneg %p6686_p7 }
  0x8d   : > { %p6694_p4 = pnand %p6693_p12, %p6687_p9 }
  0x8f   : > { %6697 = shalt.err (!%p6694_p4)
}
  0x90   : > { %6313 = dma.hbm_to_vmem [thread:$0]  (!%p7006_p6), %s8597_s7, 16, %s448_s22, [#allocation11]  }
  0x91   : > { %s6698_s27 = scalar_lea.hbm %s8600_s10, 512 }
  0x92   : > { %p6699_p1 = scmp.ne.s32.totalorder %s8600_s10, %s6698_s27  ;;  %p6705_p0 = scmp.lt.u32.totalorder %s6698_s27, %s8600_s10 }
  0x94   : > { %p6701_p3 = pnand %p6699_p1, %p7020_p8 }
  0x96   : > { %p6702_p13 = pneg %p6701_p3 }
  0x98   : > { %p6707_p2 = pnand %p6705_p0, %p6702_p13 }
  0x9a   : > { %6710 = shalt.err (!%p6707_p2)
}
  0x9b   : > { %s6711_s22 = scalar_lea.vmem %s7110_s14, 512  ;;  %p6719_p10 = scmp.lt.s32.totalorder %s7110_s14, %s7110_s14 }
  0x9c   : > { %p6712_p5 = scmp.ne.s32.totalorder %s7110_s14, %s6711_s22  ;;  %p6720_p11 = scmp.lt.s32.totalorder %s6711_s22, %s6711_s22 }
  0x9e   : > { %p6714_p7 = pnand %p6712_p5, %p7020_p8  ;;  %p6721_p12 = por %p6720_p11, %p6719_p10 }
  0xa0   : > { %p6715_p9 = pneg %p6714_p7 }
  0xa2   : > { %p6722_p4 = pnand %p6721_p12, %p6715_p9 }
  0xa4   : > { %6725 = shalt.err (!%p6722_p4)
}
  0xa5   : > { %6319 = dma.hbm_to_vmem [thread:$0]  (!%p7006_p6), %s8600_s10, 512, %s7110_s14, [#allocation14], %s6874_s9, %s6874_s9, %s6875_s3  }
  0xa6   : > { %s6878_s29 = smov [#allocation16]   ;;  %s6726_s30 = scalar_lea.hbm %s8602_s12, 16 }
  0xa7   : > { %s488_s15 = sshll.u32 %s6878_s29, 4  ;;  %p6727_p1 = scmp.ne.s32.totalorder %s8602_s12, %s6726_s30  ;;  %s489_s15 = int_to_ptr.vmem [resolvable:$true] %s488_s15 }
  0xa8   : > { %p6733_p0 = scmp.lt.u32.totalorder %s6726_s30, %s8602_s12 }
  0xa9   : > { %p6729_p3 = pnand %p6727_p1, %p7020_p8 }
  0xab   : > { %p6730_p13 = pneg %p6729_p3 }
  0xad   : > { %p6735_p2 = pnand %p6733_p0, %p6730_p13 }
  0xaf   : > { %6738 = shalt.err (!%p6735_p2)
}
  0xb0   : > { %s6739_s9 = scalar_lea.vmem %s489_s15, 16  ;;  %s6746_s3 = scalar_lea.vmem %s489_s15, 32 }
  0xb1   : > { %p6740_p5 = scmp.ne.s32.totalorder %s489_s15, %s6739_s9  ;;  %p6747_p10 = scmp.lt.s32.totalorder %s489_s15, %s489_s15 }
  0xb2   : > { %p6748_p11 = scmp.lt.s32.totalorder %s6746_s3, %s6739_s9 }
  0xb3   : > { %p6742_p7 = pnand %p6740_p5, %p7020_p8 }
  0xb4   : > { %p6749_p12 = por %p6748_p11, %p6747_p10 }
  0xb5   : > { %p6743_p9 = pneg %p6742_p7 }
  0xb7   : > { %p6750_p4 = pnand %p6749_p12, %p6743_p9 }
  0xb9   : > { %6753 = shalt.err (!%p6750_p4)
}
  0xba   : > { %6322 = dma.hbm_to_vmem [thread:$0]  (!%p7006_p6), %s8602_s12, 16, %s489_s15, [#allocation17]  }
  0xbb   : > { %s5137_s26 = sadd.s32 4294967294, %s6866_s21   ;;  %s7176_s28 = sadd.s32 1, %s6866_s21  }
  0xbc   : > { %s68_s6 = sadd.s32 1, %s6862_s20  ;;  %s65_s29 = ssub.s32 %s6866_s21, %s7176_s28 }
  0xbd   : > { %p75_p8 = scmp.ne.s32.totalorder %s6862_s20, %s6858_s19  ;;  %p66_p1 = scmp.eq.s32.totalorder %s65_s29, 0 }
  0xbe   : > { %p76_p3 = scmp.eq.s32.totalorder %s6866_s21, 0  ;;  %p81_p13 = scmp.ne.s32.totalorder %s6858_s19, %s6854_s18 }
  0xbf   : > { %p378_p0 = scmp.eq.s32.totalorder %s6988_s24, 1  ;;  %p8643_p5 = scmp.eq.s32.totalorder %s6988_s24, 0 }
  0xc0   : > { %s7188_s23 = scalar_select %p66_p1, %s6862_s20, %s68_s6  }
  0xc1   : > { %p77_p2 = por %p76_p3, %p75_p8  ;;  %p7192_p7 = por %p8643_p5, %p81_p13 }
  0xc2   : > { %p7196_p6 = por %p378_p0, %p75_p8  ;;  %p384_p9 = scmp.eq.s32.totalorder %s5137_s26, 1 }
  0xc3   : > { %p6338_p10 = scmp.lt.s32.totalorder %s6866_s21, 2  ;;  %s513_s30 = sand.u32 1, %s6862_s20  }
  0xc4   : > { %s8645_s15 = scalar_select %p7196_p6, 1, 0 }
  0xc5   : > { %p7202_p11 = por %p384_p9, %p81_p13  ;;  %s5147_s16 = sshll.u32 %s6866_s21, 4 }
  0xc6   : > { %s8647_s1 = sld [smem:[#allocation26_spill]]  ;;  %s516_s3 = scalar_lea.vmem [#allocation4], %s513_s30 }
  0xc7   : > { %s8646_s11 = scalar_select %p7202_p11, 1, 0 }
  0xc8   : > { %s523_s14 = sshll.u32 %s516_s3, 4  ;;  %p7214_p12 = pnand %p6338_p10, %p77_p2  ;;  %s7212_s14 = int_to_ptr.vmem [resolvable:$true] %s523_s14 }
  0xc9   : > { %s514_s26 = scalar_lea.sflag [#allocation5], %s513_s30 }
  0xca   : > { %p6756_p8 = pneg %p7214_p12 }
  0xcc   : > { %s7210_s9 = scalar_lea.hbm %s8647_s1, %s5147_s16  ;;  %s6759_s13 = scalar_lea.hbm %s8647_s1, 32 }
  0xcd   : > { %s6754_s6 = scalar_lea.hbm %s7210_s9, 16  ;;  %p6760_p13 = scmp.lt.u32.totalorder %s7210_s9, %s8647_s1 }
  0xce   : > { %p6755_p4 = scmp.ne.s32.totalorder %s7210_s9, %s6754_s6  ;;  %p6761_p0 = scmp.lt.u32.totalorder %s6759_s13, %s6754_s6 }
  0xcf   : > { %p6763_p5 = scmp.lt.u32.totalorder %s6754_s6, %s7210_s9 }
  0xd0   : > { %p6757_p1 = pnand %p6756_p8, %p6755_p4  ;;  %p6762_p2 = por %p6761_p0, %p6760_p13 }
  0xd2   : > { %p6758_p3 = pneg %p6757_p1  ;;  %p6764_p9 = por %p6763_p5, %p6762_p2 }
  0xd4   : > { %p6765_p10 = pnand %p6764_p9, %p6758_p3 }
  0xd6   : > { %6768 = shalt.err (!%p6765_p10)
}
  0xd7   : > { %s6769_s30 = scalar_lea.vmem %s7212_s14, 16  ;;  %s6879_s29 = smov [#allocation4]  }
  0xd8   : > { %p6770_p4 = scmp.ne.s32.totalorder %s7212_s14, %s6769_s30  ;;  %s6774_s16 = sshll.u32 %s6879_s29, 4  ;;  %s6775_s16 = int_to_ptr.vmem [resolvable:$false] %s6774_s16 }
  0xd9   : > { %s6776_s22 = scalar_lea.vmem %s6775_s16, 32  ;;  %p6777_p6 = scmp.lt.s32.totalorder %s7212_s14, %s6775_s16 }
  0xda   : > { %p6772_p1 = pnand %p6770_p4, %p6756_p8  ;;  %p6778_p13 = scmp.lt.s32.totalorder %s6776_s22, %s6769_s30 }
  0xdc   : > { %p6773_p11 = pneg %p6772_p1  ;;  %p6779_p0 = por %p6778_p13, %p6777_p6 }
  0xde   : > { %p6780_p2 = pnand %p6779_p0, %p6773_p11 }
  0xe0   : > { %6783 = shalt.err (!%p6780_p2)
}
  0xe1   : > { %6326 = dma.hbm_to_vmem [thread:$0]  (!%p7214_p12), %s7210_s9, 16, %s7212_s14, %s514_s26  }
  0xe2   : > { %p8649_p3 = scmp.ne.s32.totalorder %s8638_s25, 0 }
  0xe3   : > { %s7246_s6 = sand.u32 (!%p8649_p3), 1, %s6858_s19  }
  0xe4   : > { %532 = sbr.rel (%p8649_p3) target bundleno = 2970 (0xb9a), region = 80  ;;  %s535_s13 = scalar_lea.sflag (!%p8649_p3), [#allocation5], %s7246_s6 }
  0xe5   : > { %s537_s3 = scalar_lea.vmem (!%p8649_p3), [#allocation4], %s7246_s6 }
  0xeb   : > { %6829 = dma.done.wait (%p7192_p7), %s535_s13, 16  }
  0xec   : > { %6831 = vsyncadd (%p7192_p7), %s535_s13, 4294967280  ;;  %p8650_p6 = scmp.eq.s32.totalorder %s6988_s24, 0 }
  0xee   : > { %6833 = dma.done.wait (%p8650_p6), [#allocation8], 528   ;;  %p8651_p11 = pmov %p8650_p6 }
  0xef   : > { %p8652_p12 = pmov %p8650_p6 }
  0xf0   : > { %6835 = vsyncadd (%p8651_p11), [#allocation8], 4294966768 }
  0xf1   : > { %6837 = dma.done.wait (%p8652_p12), [#allocation11], 2320   ;;  %p8653_p8 = pmov %p8650_p6 }
  0xf2   : > { %p8654_p5 = pmov %p8650_p6 }
  0xf3   : > { %6839 = vsyncadd (%p8653_p8), [#allocation11], 4294964976 }
  0xf4   : > { %6841 = dma.done.wait (%p8654_p5), [#allocation14], 528   ;;  %p8655_p9 = pmov %p8654_p5 }
  0xf5   : > { %p8656_p7 = pmov %p8654_p5 }
  0xf6   : > { %6843 = vsyncadd (%p8655_p9), [#allocation14], 4294966768 }
  0xf7   : > { %6845 = dma.done.wait (%p8656_p7), [#allocation17], 16   ;;  %p8657_p10 = pmov %p8654_p5 }
  0xf8   : > { %p616_p4 = scmp.lt.s32.totalorder %s6988_s24, 1  ;;  %v6880_v0 = vmov 0.0|0.0   ;;  %vm8615_vm0 = vmmov 0   ;;  %v6882_v1 = vmov 0.0   ;;  %s8658_s0 = sld [smem:[#allocation25_spill]]  ;;  %vm763_vm1 = vcmask 261120  }
  0xf9   : > { %6847 = vsyncadd (%p8657_p10), [#allocation17], 4294967280  ;;  %6057 = vmatprep.subr.bf16.mxu0 %v6880_v0  ;;  %5697 = vmatprep.mubr.msk.f32.mxu0 %vm8615_vm0, %v6882_v1  ;;  %v755_v2 = vld [vmem:[%s8594_s4] sm:$0xff]  ;;  %v756_v3 = vld [vmem:[%s8594_s4 + $0x8] sm:$0xff]  ;;  %v632_v46 = vlaneseq  ;;  %vm1220_vm2 = vcmask 253952   ;;  %vm1218_vm5 = vcmask 257024  }
  0xfa   : > { %s617_s25 = scalar_select %p616_p4, %s6988_s24, 1  ;;  %6075 = vmatprep.subr.bf16.mxu1 %v6880_v0  ;;  %5730 = vmatprep.mubr.msk.f32.mxu1 %vm8615_vm0, %v6882_v1  ;;  %v757_v4 = vld [vmem:[%s8594_s4 + $0x10] sm:$0xff]  ;;  %v6058_v5 = vpack.c.bf16 %v756_v3, %v755_v2  ;;  %v758_v6 = vld [vmem:[%s8594_s4 + $0x18] sm:$0xff]  ;;  %v760_v26 = vld [vmem:[#allocation9 + $0x8] sm:$0xff]  ;;  %vm8614_vm3 = vsmask.f32 256 }
  0xfb   : > { %v6061_v14 = vpack.c.bf16 %v758_v6, %v757_v4  ;;  %v759_v25 = vld [vmem:[#allocation9] sm:$0xff]  ;;  %v761_v40 = vld [vmem:[#allocation9 + $0x10] sm:$0xff]  ;;  %v762_v41 = vld [vmem:[#allocation9 + $0x18] sm:$0xff]  ;;  %v7348_v47 = vshrl.u32 %v632_v46, 7  ;;  %vm8613_vm6 = vsmask.f32 7938 }
  0xfc   : > { %s5491_s27 = sshll.u32 %s617_s25, 6  ;;  %6059 = vmatpush3.bf16.msra.mxu0 %v6058_v5  ;;  %v6064_v28 = vpack.c.bf16 %v760_v26, %v759_v25  ;;  %v6067_v42 = vpack.c.bf16 %v762_v41, %v761_v40  ;;  %vm7407_vm4 = vmand %vm1220_vm2, %vm8614_vm3  ;;  %vm1258_vm8 = vsmask.f32 4368  ;;  %s8737_s29 = sld [smem:[#allocation29_spill]] }
  0xfd   : > { %6060 = vmatprep.subr.bf16.mxu0 %v6880_v0  ;;  %v7351_v48 = vsub.s32 0, %v7348_v47  ;;  %vm7418_vm7 = vmand %vm1218_vm5, %vm8613_vm6  ;;  %s8738_s14 = sld [smem:[#allocation30_spill]]  ;;  %s8788_s26 = sld [smem:[#allocation31_spill]] }
  0xfe   : > { %s7281_s17 = scalar_lea.vmem %s8658_s0, %s5491_s27  ;;  %6077 = vmatpush3.bf16.msra.mxu1 %v6064_v28  ;;  %vm7462_vm9 = vmor %vm8614_vm3, %vm1258_vm8  ;;  %vm1694_vm3 = vcmask 1040384   ;;  %s8793_s25 = sld [smem:[#allocation32_spill]] }
  0xff   : > { %v7296_v7 = vld [vmem:[%s7281_s17] sm:$0xff]  ;;  %v7299_v8 = vld [vmem:[%s7281_s17 + $0x8] sm:$0xff]  ;;  %v7302_v9 = vld [vmem:[%s7281_s17 + $0x10] sm:$0xff]  ;;  %6078 = vmatprep.subr.bf16.mxu1 %v6880_v0  ;;  %s5156_s27 = sshll.u32 %s7246_s6, 6  ;;  %s8794_s22 = sld [smem:[#allocation33_spill]] }
 0x100   : > { %v7305_v10 = vld [vmem:[%s7281_s17 + $0x18] sm:$0xff]  ;;  %v7308_v11 = vld [vmem:[%s7281_s17 + $0x20] sm:$0xff]  ;;  %v764_v12 = vsel %vm763_vm1, %v7296_v7, 0.0  ;;  %v765_v13 = vsel %vm763_vm1, %v7299_v8, 0.0  ;;  %v7315_v15 = vld [vmem:[%s7281_s17 + $0x28] sm:$0xff]  ;;  %v767_v19 = vsel %vm763_vm1, %v7302_v9, 0.0  ;;  %6062 = vmatpush3.bf16.msra.mxu0 %v6061_v14 }
 0x101   : > { %v7318_v16 = vld [vmem:[%s7281_s17 + $0x30] sm:$0xff]  ;;  %v7321_v17 = vld [vmem:[%s7281_s17 + $0x38] sm:$0xff]  ;;  %v766_v18 = vadd.f32 %v765_v13, %v764_v12  ;;  %v769_v20 = vsel %vm763_vm1, %v7305_v10, 0.0  ;;  %v771_v21 = vsel %vm763_vm1, %v7308_v11, 0.0  ;;  %v773_v22 = vsel %vm763_vm1, %v7315_v15, 0.0  ;;  %6063 = vmatprep.subr.bf16.mxu0 %v6880_v0  ;;  %p8795_p13 = scmp.ne.s32.totalorder %s8645_s15, 0 }
 0x102   : > { %v775_v23 = vsel %vm763_vm1, %v7318_v16, 0.0  ;;  %v777_v24 = vsel %vm763_vm1, %v7321_v17, 0.0  ;;  %6080 = vmatpush3.bf16.msra.mxu1 %v6067_v42 }
 0x103   : > { %v768_v27 = vadd.f32 %v767_v19, %v766_v18  ;;  %6093 = vmatprep.subr.bf16.mxu1 %v6880_v0 }
 0x105   : > { %v770_v29 = vadd.f32 %v769_v20, %v768_v27 }
 0x107   : > { %v772_v30 = vadd.f32 %v771_v21, %v770_v29 }
 0x109   : > { %v774_v31 = vadd.f32 %v773_v22, %v772_v30 }
 0x10b   : > { %v776_v32 = vadd.f32 %v775_v23, %v774_v31  ;;  %v1223_v31 = vld [vmem:[#allocation2 + $0x4] sm:$0x1] }
 0x10d   : > { %v778_v33 = vadd.f32 %v777_v24, %v776_v32  ;;  %v1224_v32 = vsel %vm7407_vm4, 0, %v1223_v31 }
 0x10e   : > { %1225 = vst [vmem:[#allocation2 + $0x4] sm:$0x1] %v1224_v32 }
 0x10f   : > { %v779_v34 = vrot.slane %v778_v33, 4 }
 0x111   : > { %v780_v35 = vadd.f32 %v779_v34, %v778_v33  ;;  %v6396_v33 = vld [vmem:[#allocation10 + $0x10] sm:$0xff]   ;;  %v6397_v34 = vld [vmem:[#allocation10 + $0x18] sm:$0xff]  }
 0x113   : > { %v781_v36 = vrot.slane %v780_v35, 2 }
 0x115   : > { %v782_v37 = vadd.f32 %v781_v36, %v780_v35  ;;  %v6883_v35 = vmov 0  }
 0x116   : > { %1219 = vst.msk [vmem:[#allocation2] sm:$0xf] %vm1218_vm5, %v6883_v35 }
 0x117   : > { %v783_v38 = vrot.slane %v782_v37, 1  ;;  %1233 = vst.msk [vmem:[#allocation2 + $0x28] sm:$0x1] %vm1220_vm2, %v6883_v35 }
 0x119   : > { %v784_v39 = vadd.f32 %v783_v38, %v782_v37  ;;  %v1229_v37 = vld [vmem:[#allocation2 + $0x24] sm:$0xf] }
 0x11a   : > { %v1230_v38 = vsel %vm7418_vm7, 0, %v1229_v37 }
 0x11b   : > { %5698 = vmatmul.mubr.msk.f32.vlgmr.msra.gmra.mrb[0].mxu0 %vm763_vm1, %v784_v39  ;;  %1231 = vst [vmem:[#allocation2 + $0x24] sm:$0xf] %v1230_v38  ;;  %v7424_v39 = vld [vmem:[#allocation10] sm:$0xff]  }
 0x11c   : > { %6065 = vmatpush3.bf16.msra.mxu0 %v6064_v28  ;;  %5708 = vmatprep.mubr.msk.f32.mxu0 %vm8615_vm0, %v6882_v1 }
 0x11d   : > { %6066 = vmatprep.subr.bf16.mxu0 %v6880_v0 }
 0x120   : > { %6068 = vmatpush3.bf16.msra.mxu0 %v6067_v42 }
 0x121   : > { %6069 = vmatprep.subr.bf16.mxu0 %v6880_v0 }
 0x1ee   : > { %v854_v43 = vpop.f32.mrb[0].mxu0 }
 0x1ef   : > { %v859_v44 = vmul.f32 0.015625, %v854_v43  ;;  %v5699_v45 = vpop.f32.mrb[1].mxu0 }
 0x1f0   : > { %v5163_v45 = vld [vmem:[%s8592_s2] ss:$0 sm:$0xff] }
 0x1f1   : > { %5709 = vmatmul.mubr.msk.f32.vlgmr.msra.gmra.mrb[2].mxu0 %vm763_vm1, %v859_v44 }
 0x1f2   : > { %6071 = vmatpush3.bf16.msra.mxu0 %v6058_v5  ;;  %5719 = vmatprep.mubr.msk.f32.mxu0 %vm8615_vm0, %v6882_v1 }
 0x1f3   : > { %6072 = vmatprep.subr.bf16.mxu0 %v6880_v0 }
 0x1f6   : > { %6074 = vmatpush3.bf16.msra.mxu0 %v6061_v14 }
 0x1f7   : > { %5733 = vmatprep.subr.bf16.mxu0 %v6396_v33 }
 0x2c4   : > { %v929_v49 = vpop.f32.mrb[2].mxu0 }
 0x2c5   : > { %v936_v50 = vrot.slane %v929_v49, %v7351_v48  ;;  %v5710_v51 = vpop.f32.mrb[3].mxu0 }
 0x2c7   : > { %v7355_v52 = vsub.f32 %v7296_v7, %v936_v50  ;;  %v7358_v53 = vsub.f32 %v7299_v8, %v936_v50  ;;  %v7361_v54 = vsub.f32 %v7302_v9, %v936_v50  ;;  %v7364_v55 = vsub.f32 %v7305_v10, %v936_v50 }
 0x2c8   : > { %v7367_v56 = vsub.f32 %v7308_v11, %v936_v50  ;;  %v7376_v60 = vsub.f32 %v7315_v15, %v936_v50  ;;  %v7383_v3 = vsub.f32 %v7318_v16, %v936_v50  ;;  %v7389_v7 = vsub.f32 %v7321_v17, %v936_v50 }
 0x2c9   : > { %v945_v57 = vmul.f32 %v7355_v52, %v7355_v52  ;;  %v946_v58 = vmul.f32 %v7358_v53, %v7358_v53  ;;  %v947_v59 = vmul.f32 %v7361_v54, %v7361_v54  ;;  %v948_v61 = vmul.f32 %v7364_v55, %v7364_v55 }
 0x2ca   : > { %v949_v4 = vmul.f32 %v7367_v56, %v7367_v56  ;;  %v950_v8 = vmul.f32 %v7376_v60, %v7376_v60  ;;  %v951_v11 = vmul.f32 %v7383_v3, %v7383_v3  ;;  %v952_v14 = vmul.f32 %v7389_v7, %v7389_v7 }
 0x2cb   : > { %v953_v62 = vsel %vm763_vm1, %v945_v57, 0.0  ;;  %v954_v63 = vsel %vm763_vm1, %v946_v58, 0.0  ;;  %v956_v5 = vsel %vm763_vm1, %v947_v59, 0.0  ;;  %v958_v9 = vsel %vm763_vm1, %v948_v61, 0.0  ;;  %v5164_v57 = vld [vmem:[#allocation7] ss:$0 sm:$0xff] }
 0x2cc   : > { %v955_v2 = vadd.f32 %v954_v63, %v953_v62  ;;  %v960_v12 = vsel %vm763_vm1, %v949_v4, 0.0  ;;  %v962_v15 = vsel %vm763_vm1, %v950_v8, 0.0  ;;  %v964_v17 = vsel %vm763_vm1, %v951_v11, 0.0 }
 0x2cd   : > { %v966_v19 = vsel %vm763_vm1, %v952_v14, 0.0 }
 0x2ce   : > { %v957_v6 = vadd.f32 %v956_v5, %v955_v2 }
 0x2d0   : > { %v959_v10 = vadd.f32 %v958_v9, %v957_v6 }
 0x2d2   : > { %v961_v13 = vadd.f32 %v960_v12, %v959_v10 }
 0x2d4   : > { %v963_v16 = vadd.f32 %v962_v15, %v961_v13 }
 0x2d6   : > { %v965_v18 = vadd.f32 %v964_v17, %v963_v16 }
 0x2d8   : > { %v967_v20 = vadd.f32 %v966_v19, %v965_v18 }
 0x2da   : > { %v968_v21 = vrot.slane %v967_v20, 4 }
 0x2dc   : > { %v969_v22 = vadd.f32 %v968_v21, %v967_v20 }
 0x2de   : > { %v970_v23 = vrot.slane %v969_v22, 2 }
 0x2e0   : > { %v971_v24 = vadd.f32 %v970_v23, %v969_v22 }
 0x2e2   : > { %v972_v25 = vrot.slane %v971_v24, 1 }
 0x2e4   : > { %v973_v26 = vadd.f32 %v972_v25, %v971_v24 }
 0x2e6   : > { %5720 = vmatmul.mubr.msk.f32.vlgmr.msra.gmra.mrb[4].mxu0 %vm763_vm1, %v973_v26 }
 0x2e7   : > { %5734 = vmatpush3.bf16.msra.mxu0 %v6396_v33 }
 0x2e8   : > { %5735 = vmatprep.subr.bf16.mxu0 %v6397_v34 }
 0x2eb   : > { %5736 = vmatpush3.bf16.msra.mxu0 %v6397_v34 }
 0x2ec   : > { %5745 = vmatprep.subr.bf16.mxu0 %v7424_v39 }
 0x3b9   : > { %v1043_v27 = vpop.f32.mrb[4].mxu0 }
 0x3ba   : > { %v1047_v28 = vmul.f32 0.015625, %v1043_v27  ;;  %v5721_v29 = vpop.f32.mrb[5].mxu0 }
 0x3bc   : > { %5731 = vmatmul.mubr.msk.f32.vlgmr.msra.gmra.mrb[0].mxu1 %vm763_vm1, %v1047_v28 }
 0x3bd   : > { %5868 = vmatprep.mubr.msk.f32.mxu1 %vm8615_vm0, %v6882_v1  ;;  %vm1695_vm0 = vcmask 1044484  }
 0x48f   : > { %v1117_v40 = vpop.f32.mrb[0].mxu1 }
 0x490   : > { %v1118_v41 = vadd.f32 1e-05, %v1117_v40  ;;  %v5732_v42 = vpop.f32.mrb[1].mxu1 }
 0x492   : > { %6482 = vrsqrt.f32 %v1118_v41 }
 0x49c   : > { %v6483_v43 = vpop.eup %6482 }
 0x49d   : > { %v1125_v44 = vrot.slane %v6483_v43, %v7351_v48 }
 0x49f   : > { %v1126_v46 = vmul.f32 %v1125_v44, %v7355_v52  ;;  %v1127_v49 = vmul.f32 %v1125_v44, %v7358_v53  ;;  %v1128_v50 = vmul.f32 %v1125_v44, %v7361_v54  ;;  %v1129_v51 = vmul.f32 %v1125_v44, %v7364_v55 }
 0x4a0   : > { %v1130_v58 = vmul.f32 %v1125_v44, %v7367_v56  ;;  %v1131_v59 = vmul.f32 %v1125_v44, %v7376_v60  ;;  %v1132_v61 = vmul.f32 %v1125_v44, %v7383_v3  ;;  %v1133_v62 = vmul.f32 %v1125_v44, %v7389_v7 }
 0x4a1   : > { %v1140_v63 = vmul.f32 %v5163_v45, %v1126_v46  ;;  %v1141_v2 = vmul.f32 %v5163_v45, %v1127_v49  ;;  %v1142_v4 = vmul.f32 %v5163_v45, %v1128_v50  ;;  %v1143_v5 = vmul.f32 %v5163_v45, %v1129_v51 }
 0x4a2   : > { %v1144_v52 = vmul.f32 %v5163_v45, %v1130_v58  ;;  %v1145_v6 = vmul.f32 %v5163_v45, %v1131_v59  ;;  %v1146_v53 = vmul.f32 %v5163_v45, %v1132_v61  ;;  %v1147_v8 = vmul.f32 %v5163_v45, %v1133_v62 }
 0x4a3   : > { %v1154_v54 = vadd.f32 %v5164_v57, %v1140_v63  ;;  %v1155_v9 = vadd.f32 %v5164_v57, %v1141_v2  ;;  %v1156_v55 = vadd.f32 %v5164_v57, %v1142_v4  ;;  %v1157_v10 = vadd.f32 %v5164_v57, %v1143_v5 }
 0x4a4   : > { %v1158_v11 = vadd.f32 %v5164_v57, %v1144_v52  ;;  %v7439_v56 = vadd.f32 %v5164_v57, %v1145_v6  ;;  %v7441_v60 = vadd.f32 %v5164_v57, %v1146_v53  ;;  %v7443_v13 = vadd.f32 %v5164_v57, %v1147_v8 }
 0x4a5   : > { %v5165_v3 = vmul.f32 -1.442695, %v1154_v54  ;;  %v5166_v12 = vmul.f32 -1.442695, %v1155_v9  ;;  %v5167_v7 = vmul.f32 -1.442695, %v1156_v55 }
 0x4a6   : > { %v5168_v14 = vmul.f32 -1.442695, %v1157_v10  ;;  %v5169_v15 = vmul.f32 -1.442695, %v1158_v11  ;;  %v5170_v16 = vmul.f32 -1.442695, %v7439_v56 }
 0x4a7   : > { %6484 = vpow2.f32 %v5165_v3  ;;  %v5171_v17 = vmul.f32 -1.442695, %v7441_v60  ;;  %v5172_v18 = vmul.f32 -1.442695, %v7443_v13  ;;  %v7449_v49 = vadd.s32 8, %v7348_v47 }
 0x4a8   : > { %6486 = vpow2.f32 %v5166_v12  ;;  %v7452_v58 = vadd.s32 16, %v7348_v47  ;;  %v7455_v59 = vadd.s32 24, %v7348_v47 }
 0x4a9   : > { %6488 = vpow2.f32 %v5167_v7 }
 0x4aa   : > { %6490 = vpow2.f32 %v5168_v14 }
 0x4ab   : > { %6492 = vpow2.f32 %v5169_v15 }
 0x4ac   : > { %6494 = vpow2.f32 %v5170_v16 }
 0x4ad   : > { %6496 = vpow2.f32 %v5171_v17 }
 0x4ae   : > { %6498 = vpow2.f32 %v5172_v18 }
 0x4b1   : > { %v6485_v19 = vpop.eup %6484 }
 0x4b2   : > { %v6487_v20 = vpop.eup %6486  ;;  %v1186_v21 = vadd.f32 1.0, %v6485_v19 }
 0x4b3   : > { %v6489_v22 = vpop.eup %6488  ;;  %v1187_v23 = vadd.f32 1.0, %v6487_v20 }
 0x4b4   : > { %v6491_v24 = vpop.eup %6490  ;;  %v1188_v25 = vadd.f32 1.0, %v6489_v22  ;;  %6500 = vrcp.f32 %v1186_v21 }
 0x4b5   : > { %v6493_v26 = vpop.eup %6492  ;;  %v1189_v27 = vadd.f32 1.0, %v6491_v24  ;;  %6502 = vrcp.f32 %v1187_v23 }
 0x4b6   : > { %v6495_v28 = vpop.eup %6494  ;;  %v1190_v29 = vadd.f32 1.0, %v6493_v26  ;;  %6504 = vrcp.f32 %v1188_v25 }
 0x4b7   : > { %v6497_v31 = vpop.eup %6496  ;;  %v1191_v32 = vadd.f32 1.0, %v6495_v28  ;;  %6506 = vrcp.f32 %v1189_v27 }
 0x4b8   : > { %v6499_v33 = vpop.eup %6498  ;;  %v1192_v34 = vadd.f32 1.0, %v6497_v31  ;;  %6508 = vrcp.f32 %v1190_v29  ;;  %v1340_v29 = vld [vmem:[#allocation2 + $0x4] sm:$0xf] }
 0x4b9   : > { %v1193_v37 = vadd.f32 1.0, %v6499_v33  ;;  %6510 = vrcp.f32 %v1191_v32 }
 0x4ba   : > { %6512 = vrcp.f32 %v1192_v34 }
 0x4bb   : > { %6514 = vrcp.f32 %v1193_v37 }
 0x4be   : > { %v6501_v38 = vpop.eup %6500 }
 0x4bf   : > { %v6503_v40 = vpop.eup %6502  ;;  %v1210_v41 = vmul.f32 %v6501_v38, %v1154_v54 }
 0x4c0   : > { %v6505_v42 = vpop.eup %6504  ;;  %v1211_v43 = vmul.f32 %v6503_v40, %v1155_v9 }
 0x4c1   : > { %v6507_v44 = vpop.eup %6506  ;;  %v1212_v45 = vmul.f32 %v6505_v42, %v1156_v55  ;;  %v5492_v46 = vpack.c.bf16 %v1210_v41, %v1210_v41 }
 0x4c2   : > { %v6509_v50 = vpop.eup %6508  ;;  %v1213_v51 = vmul.f32 %v6507_v44, %v1157_v10  ;;  %v5493_v57 = vpack.c.bf16 %v1211_v43, %v1211_v43 }
 0x4c3   : > { %v6511_v61 = vpop.eup %6510  ;;  %v1214_v62 = vmul.f32 %v6509_v50, %v1158_v11  ;;  %v5494_v63 = vpack.c.bf16 %v1212_v45, %v1212_v45  ;;  %v1261_v2 = vshrl.u32 %v5492_v46, 16  ;;  %v1264_v4 = vshll.u32 %v5492_v46, 16 }
 0x4c4   : > { %v6513_v5 = vpop.eup %6512  ;;  %v1215_v52 = vmul.f32 %v6511_v61, %v7439_v56  ;;  %v5495_v6 = vpack.c.bf16 %v1213_v51, %v1213_v51  ;;  %v1269_v53 = vshrl.u32 %v5493_v57, 16  ;;  %v1272_v8 = vshll.u32 %v5493_v57, 16 }
 0x4c5   : > { %v6515_v54 = vpop.eup %6514  ;;  %v1216_v9 = vmul.f32 %v6513_v5, %v7441_v60  ;;  %v5496_v55 = vpack.c.bf16 %v1214_v62, %v1214_v62  ;;  %v1263_v10 = vrot.slane %v1261_v2, 7  ;;  %v1278_v3 = vshrl.u32 %v5494_v63, 16 }
 0x4c6   : > { %v1217_v12 = vmul.f32 %v6515_v54, %v7443_v13  ;;  %v5497_v7 = vpack.c.bf16 %v1215_v52, %v1215_v52  ;;  %v1271_v14 = vrot.slane %v1269_v53, 7  ;;  %v1281_v11 = vshll.u32 %v5494_v63, 16 }
 0x4c7   : > { %v5498_v15 = vpack.c.bf16 %v1216_v9, %v1216_v9  ;;  %v1266_v16 = vor.u32 %v1264_v4, %v1263_v10  ;;  %v1280_v17 = vrot.slane %v1278_v3, 7  ;;  %v1287_v18 = vshrl.u32 %v5495_v6, 16  ;;  %v7501_v3 = vld [vmem:[#allocation2] sm:$0xf] }
 0x4c8   : > { %v5499_v19 = vpack.c.bf16 %v1217_v12, %v1217_v12  ;;  %v1290_v56 = vshll.u32 %v5495_v6, 16  ;;  %v1296_v20 = vshrl.u32 %v5496_v55, 16  ;;  %v1299_v21 = vshll.u32 %v5496_v55, 16 }
 0x4c9   : > { %v1285_v22 = vrot.slane %v1280_v17, 4  ;;  %v1289_v23 = vrot.slane %v1287_v18, 7  ;;  %v1305_v24 = vshrl.u32 %v5497_v7, 16  ;;  %v1308_v60 = vshll.u32 %v5497_v7, 16 }
 0x4ca   : > { %v1298_v25 = vrot.slane %v1296_v20, 7  ;;  %v1314_v26 = vshrl.u32 %v5498_v15, 16  ;;  %v1317_v27 = vshll.u32 %v5498_v15, 16  ;;  %v1267_v28 = vrot.slane %v1263_v10, 4  ;;  %v1350_v10 = vld [vmem:[#allocation2 + $0x24] sm:$0x1] }
 0x4cb   : > { %v1292_v31 = vor.u32 %v1290_v56, %v1289_v23  ;;  %v1294_v32 = vrot.slane %v1289_v23, 4  ;;  %v1307_v33 = vrot.slane %v1305_v24, 7  ;;  %v1274_v34 = vor.u32 %v1272_v8, %v1271_v14  ;;  %v6403_v15 = vld [vmem:[#allocation10 + $0x8] sm:$0xff]  }
 0x4cc   : > { %v1301_v37 = vor.u32 %v1299_v21, %v1298_v25  ;;  %v1316_v38 = vrot.slane %v1314_v26, 7  ;;  %v1276_v40 = vrot.slane %v1271_v14, 4  ;;  %v1283_v41 = vor.u32 %v1281_v11, %v1280_v17 }
 0x4cd   : > { %v1275_v42 = vsel %vm7462_vm9, %v1267_v28, %v1274_v34  ;;  %v1341_v43 = vsel %vm7418_vm7, %v1266_v16, %v1340_v29  ;;  %v1293_v44 = vsel %vm7462_vm9, %v1285_v22, %v1292_v31  ;;  %v1303_v45 = vrot.slane %v1298_v25, 4 }
 0x4ce   : > { %v1284_v46 = vsel %vm7462_vm9, %v1276_v40, %v1283_v41  ;;  %1342 = vst [vmem:[#allocation2 + $0x4] sm:$0xf] %v1341_v43  ;;  %1343 = vst.msk [vmem:[#allocation2 + $0x8] sm:$0xf] %vm1218_vm5, %v1275_v42  ;;  %v1302_v50 = vsel %vm7462_vm9, %v1294_v32, %v1301_v37  ;;  %v1310_v51 = vor.u32 %v1308_v60, %v1307_v33  ;;  %v1312_v57 = vrot.slane %v1307_v33, 4 }
 0x4cf   : > { %1345 = vst.msk [vmem:[#allocation2 + $0x10] sm:$0xf] %vm1218_vm5, %v1293_v44  ;;  %1344 = vst.msk [vmem:[#allocation2 + $0xc] sm:$0xf] %vm1218_vm5, %v1284_v46  ;;  %v1319_v36 = vor.u32 %v1317_v27, %v1316_v38  ;;  %v1323_v61 = vshrl.u32 %v5499_v19, 16  ;;  %v7481_v62 = vadd.s32 32, %v7348_v47 }
 0x4d0   : > { %1346 = vst.msk [vmem:[#allocation2 + $0x14] sm:$0xf] %vm1218_vm5, %v1302_v50  ;;  %v7484_v63 = vadd.s32 40, %v7348_v47  ;;  %v1311_v2 = vsel %vm7462_vm9, %v1303_v45, %v1310_v51  ;;  %v645_v4 = vand.u32 7, %v7348_v47  ;;  %v652_v5 = vand.u32 7, %v7449_v49 }
 0x4d1   : > { %v7491_v52 = vadd.s32 48, %v7348_v47  ;;  %v1320_v6 = vsel %vm7462_vm9, %v1312_v57, %v1319_v36  ;;  %1347 = vst.msk [vmem:[#allocation2 + $0x18] sm:$0xf] %vm1218_vm5, %v1311_v2  ;;  %v1321_v53 = vrot.slane %v1316_v38, 4  ;;  %v1325_v8 = vrot.slane %v1323_v61, 7 }
 0x4d2   : > { %v1326_v54 = vshll.u32 %v5499_v19, 16  ;;  %1348 = vst.msk [vmem:[#allocation2 + $0x1c] sm:$0xf] %vm1218_vm5, %v1320_v6  ;;  %v659_v9 = vand.u32 7, %v7452_v58  ;;  %v7499_v55 = vadd.s32 56, %v7348_v47  ;;  %v666_v7 = vand.u32 7, %v7455_v59 }
 0x4d3   : > { %v673_v14 = vand.u32 7, %v7481_v62  ;;  %v1330_v11 = vrot.slane %v1325_v8, 4  ;;  %vm7507_vm10 = vcmp.ne.s32.totalorder %v645_v4, 7  ;;  %vm7513_vm11 = vcmp.ne.s32.totalorder %v652_v5, 7 }
 0x4d4   : > { %v1328_v12 = vor.u32 %v1326_v54, %v1325_v8  ;;  %v680_v17 = vand.u32 7, %v7484_v63  ;;  %v687_v18 = vand.u32 7, %v7491_v52  ;;  %vm7538_vm12 = vcmp.ne.s32.totalorder %v659_v9, 7  ;;  %vm1678_vm14 = vmpackc.low %vm7507_vm10, %vm7507_vm10 }
 0x4d5   : > { %v7519_v19 = vld [vmem:[#allocation2 + $0x4] sm:$0xf]  ;;  %v7521_v56 = vld [vmem:[#allocation2 + $0x8] sm:$0xf]  ;;  %v1351_v22 = vsel %vm7407_vm4, %v1330_v11, %v1350_v10  ;;  %v694_v27 = vand.u32 7, %v7499_v55  ;;  %vm7549_vm13 = vcmp.ne.s32.totalorder %v666_v7, 7  ;;  %vm1679_vm15 = vmpackc.low %vm7513_vm11, %vm7513_vm11 }
 0x4d6   : > { %v7523_v20 = vld [vmem:[#allocation2 + $0x10] sm:$0xf]  ;;  %v1329_v21 = vsel %vm7462_vm9, %v1321_v53, %v1328_v12  ;;  %v7529_v23 = vld [vmem:[#allocation2 + $0xc] sm:$0xf]  ;;  %v5181_v24 = vcombine.low %v7501_v3, %v7519_v19  ;;  %1352 = vst [vmem:[#allocation2 + $0x24] sm:$0x1] %v1351_v22  ;;  %vm1680_vm8 = vmpackc.low %vm7538_vm12, %vm7538_vm12 }
 0x4d7   : > { %v7533_v60 = vld [vmem:[#allocation2 + $0x14] sm:$0xf]  ;;  %1349 = vst.msk [vmem:[#allocation2 + $0x20] sm:$0xf] %vm1218_vm5, %v1329_v21  ;;  %v5182_v30 = vcombine.low %v7521_v56, %v7529_v23  ;;  %vm7563_vm2 = vcmp.ne.s32.totalorder %v673_v14, 7  ;;  %vm7569_vm4 = vcmp.ne.s32.totalorder %v680_v17, 7 }
 0x4d8   : > { %v5183_v26 = vcombine.low %v7523_v20, %v7533_v60  ;;  %v1430_v29 = vshll.u32 %v5181_v24, 16  ;;  %v7556_v31 = vld [vmem:[#allocation2 + $0x18] sm:$0xf]  ;;  %vm7575_vm5 = vcmp.ne.s32.totalorder %v687_v18, 7  ;;  %vm8620_vm7 = vsmask.f32 7424  ;;  %vm1682_vm10 = vmpackc.low %vm7563_vm2, %vm7563_vm2 }
 0x4d9   : > { %v1435_v37 = vshll.u32 %v5182_v30, 16  ;;  %v7579_v40 = vld [vmem:[#allocation2 + $0x1c] sm:$0xf]  ;;  %v1428_v41 = vshrl.u32 %v5181_v24, 16  ;;  %v7587_v44 = vsel %vm1678_vm14, 65537, %v6883_v35  ;;  %v1439_v46 = vshrl.u32 %v5182_v30, 16  ;;  %vm1683_vm14 = vmpackc.low %vm7569_vm4, %vm7569_vm4 }
 0x4da   : > { %v1443_v38 = vshll.u32 %v5183_v26, 16  ;;  %v1432_v42 = vrot.slane %v1430_v29, 1  ;;  %v5184_v43 = vcombine.low %v7556_v31, %v7579_v40  ;;  %v1447_v51 = vshrl.u32 %v5183_v26, 16  ;;  %v7658_v29 = vld [vmem:[#allocation10 + $0x20] sm:$0xff]   ;;  %vm8689_vm2 = vmpackc.low %vm7549_vm13, %vm7549_vm13 }
 0x4db   : > { %v1437_v45 = vrot.slane %v1435_v37, 1  ;;  %v1687_v61 = vsel %vm1679_vm15, 65537, %v6883_v35  ;;  %v1688_v2 = vsel %vm1680_vm8, 65537, %v6883_v35  ;;  %vm7603_vm12 = vcmp.ne.s32.totalorder %v645_v4, 0  ;;  %vm1684_vm15 = vmpackc.low %vm7575_vm5, %vm7575_vm5  ;;  %v6467_v30 = vld [vmem:[%s8738_s14 + $0xe0] sm:$0xff]  }
 0x4dc   : > { %v1445_v50 = vrot.slane %v1443_v38, 1  ;;  %v1433_v57 = vor.u32 %v1432_v42, %v1428_v41  ;;  %v1451_v36 = vshll.u32 %v5184_v43, 16  ;;  %vm7609_vm11 = vcmp.ne.s32.totalorder %v652_v5, 0  ;;  %vm7633_vm6 = vmpackc.low %vm7603_vm12, %vm7603_vm12 }
 0x4dd   : > { %v1441_v6 = vor.u32 %v1439_v46, %v1437_v45  ;;  %v1697_v49 = vrot.slane %v7587_v44, 7  ;;  %v1699_v5 = vrot.slane %v1687_v61, 7  ;;  %v1702_v16 = vrot.slane %v1688_v2, 7  ;;  %vm7642_vm8 = vmpackc.low %vm7609_vm11, %vm7609_vm11 }
 0x4de   : > { %v1449_v53 = vor.u32 %v1447_v51, %v1445_v50  ;;  %v7599_v8 = vld [vmem:[#allocation2 + $0x20] sm:$0x1]  ;;  %v1438_v12 = vsel %vm8620_vm7, %v1433_v57, %v1437_v45  ;;  %v1453_v11 = vrot.slane %v1451_v36, 1  ;;  %v1455_v24 = vshrl.u32 %v5184_v43, 16 }
 0x4df   : > { %v5185_v47 = vcombine.low %v7599_v8, %v7599_v8  ;;  %5737 = vmatprep.mubr.msk.bf16.mxu0 %vm763_vm1, %v1438_v12  ;;  %v1446_v4 = vsel %vm8620_vm7, %v1441_v6, %v1445_v50  ;;  %v1690_v26 = vsel %vm1682_vm10, 65537, %v6883_v35  ;;  %vm7654_vm12 = vcmp.ne.s32.totalorder %v694_v27, 7  ;;  %vm7682_vm10 = vmor %vm1694_vm3, %vm1695_vm0  ;;  %v6468_v50 = vld [vmem:[%s8738_s14 + $0xe8] sm:$0xff]  }
 0x4e0   : > { %5738 = vmatmul.mubr.msk.bf16.vlgmr.msra.gmra.mrb[8].mxu0 %vm763_vm1, %v1446_v4  ;;  %v1454_v21 = vsel %vm8620_vm7, %v1449_v53, %v1453_v11  ;;  %v1691_v37 = vsel %vm1683_vm14, 65537, %v6883_v35  ;;  %v1692_v32 = vsel %vm1684_vm15, 65537, %v6883_v35  ;;  %v1689_v38 = vsel %vm8689_vm2, 65537, %v6883_v35  ;;  %vm1685_vm3 = vmpackc.low %vm7654_vm12, %vm7654_vm12  ;;  %v1661_v53 = vld [vmem:[#allocation2] sm:$0xe] }
 0x4e1   : > { %5746 = vmatpush3.bf16.msra.mxu0 %v7424_v39  ;;  %5741 = vmatprep.mubr.msk.bf16.mxu0 %vm763_vm1, %v1454_v21  ;;  %v1459_v25 = vshll.u32 %v5185_v47, 16  ;;  %v1698_v41 = vrot.slane %v1697_v49, 4  ;;  %v1457_v42 = vor.u32 %v1455_v24, %v1453_v11  ;;  %vm739_vm4 = vcmp.ne.s32.totalorder %v659_v9, 0 }
 0x4e2   : > { %5747 = vmatprep.subr.bf16.mxu0 %v6403_v15  ;;  %v1701_v34 = vrot.slane %v1699_v5, 4  ;;  %v1704_v43 = vrot.slane %v1702_v16, 4  ;;  %v1385_v44 = vsel %vm7633_vm6, %v7501_v3, 0  ;;  %v1386_v28 = vsel %vm7642_vm8, %v7519_v19, 0  ;;  %vm7700_vm5 = vmpackc.low %vm739_vm4, %vm739_vm4 }
 0x4e3   : > { %vm740_vm13 = vcmp.ne.s32.totalorder %v666_v7, 0  ;;  %v1708_v58 = vrot.slane %v1690_v26, 7  ;;  %v1461_v9 = vrot.slane %v1459_v25, 1  ;;  %vm741_vm0 = vcmp.ne.s32.totalorder %v673_v14, 0 }
 0x4e4   : > { %v1711_v45 = vrot.slane %v1691_v37, 7  ;;  %v1705_v46 = vrot.slane %v1689_v38, 7  ;;  %vm742_vm11 = vcmp.ne.s32.totalorder %v680_v17, 0  ;;  %v7708_v59 = vsel %vm7682_vm10, %v1698_v41, %v1699_v5  ;;  %vm7711_vm14 = vmpackc.low %vm740_vm13, %vm740_vm13  ;;  %v6407_v41 = vld [vmem:[#allocation10 + $0x30] sm:$0xff]  }
 0x4e5   : > { %5748 = vmatpush3.bf16.msra.mxu0 %v6403_v15  ;;  %v1714_v62 = vrot.slane %v1692_v32, 7  ;;  %v1462_v7 = vsel %vm8620_vm7, %v1457_v42, %v1461_v9  ;;  %v5192_v14 = vcombine.low %v1385_v44, %v1386_v28  ;;  %v7717_v51 = vsel %vm7682_vm10, %v1701_v34, %v1702_v16  ;;  %vm7724_vm15 = vmpackc.low %vm741_vm0, %vm741_vm0 }
 0x4e6   : > { %5757 = vmatprep.subr.bf16.mxu0 %v7658_v29  ;;  %v7721_v63 = vsel %vm7682_vm10, %v1704_v43, %v1705_v46  ;;  %v1693_v57 = vsel %vm1685_vm3, 65537, %v6883_v35  ;;  %vm7730_vm12 = vmpackc.low %vm742_vm11, %vm742_vm11  ;;  %v1710_v61 = vrot.slane %v1708_v58, 4  ;;  %vm7734_vm2 = vcmp.ne.s16.totalorder %v1697_v49, 0 }
 0x4e7   : > { %v1713_v6 = vrot.slane %v1711_v45, 4  ;;  %v1707_v54 = vrot.slane %v1705_v46, 4  ;;  %vm8617_vm4 = vcmp.ne.s16.totalorder %v7708_v59, 0  ;;  %vm8619_vm13 = vcmp.ne.s16.totalorder %v7717_v51, 0 }
 0x4e8   : > { %5742 = vmatmul.mubr.msk.bf16.gmra.mrb[12].mxu0 %vm763_vm1, %v1462_v7  ;;  %vm8618_vm0 = vcmp.ne.s16.totalorder %v7721_v63, 0  ;;  %v1387_v10 = vsel %vm7700_vm5, %v7521_v56, 0  ;;  %v1388_v12 = vsel %vm7711_vm14, %v7529_v23, 0  ;;  %v1716_v11 = vrot.slane %v1714_v62, 4 }
 0x4e9   : > { %5749 = vmatprep.mubr.msk.bf16.mxu0 %vm763_vm1, %v5192_v14  ;;  %v1717_v15 = vrot.slane %v1693_v57, 7  ;;  %v1389_v47 = vsel %vm7724_vm15, %v7523_v20, 0  ;;  %v1390_v49 = vsel %vm7730_vm12, %v7533_v60, 0  ;;  %vm743_vm3 = vcmp.ne.s32.totalorder %v687_v18, 0  ;;  %v6406_v18 = vld [vmem:[#allocation10 + $0x28] sm:$0xff]  }
 0x4ea   : > { %vm744_vm11 = vcmp.ne.s32.totalorder %v694_v27, 0  ;;  %v1729_v4 = vsel %vm7734_vm2, %v1661_v53, 0  ;;  %v1730_v5 = vsel %vm8617_vm4, %v7519_v19, 0  ;;  %v1731_v16 = vsel %vm8619_vm13, %v7521_v56, 0  ;;  %vm7776_vm4 = vmpackc.low %vm743_vm3, %vm743_vm3 }
 0x4eb   : > { %v1732_v21 = vsel %vm8618_vm0, %v7529_v23, 0  ;;  %v5193_v52 = vcombine.low %v1387_v10, %v1388_v12  ;;  %v7770_v55 = vsel %vm7682_vm10, %v1707_v54, %v1708_v58  ;;  %v7774_v27 = vsel %vm7682_vm10, %v1710_v61, %v1711_v45  ;;  %vm7789_vm0 = vmpackc.low %vm744_vm11, %vm744_vm11  ;;  %v6409_v12 = vld [vmem:[#allocation10 + $0x40] sm:$0xff]  }
 0x4ec   : > { %v5194_v24 = vcombine.low %v1389_v47, %v1390_v49  ;;  %v7782_v26 = vsel %vm7682_vm10, %v1713_v6, %v1714_v62  ;;  %v7786_v39 = vsel %vm7682_vm10, %v1716_v11, %v1717_v15  ;;  %v8704_v37 = vmov 0  ;;  %v6408_v6 = vld [vmem:[#allocation10 + $0x38] sm:$0xff]   ;;  %v2004_v47 = vld [vmem:[#allocation2 + $0x4] sm:$0xf]  ;;  %v7836_v49 = vld [vmem:[#allocation2 + $0x8] sm:$0xf] }
 0x4ed   : > { %v8705_v37 = vsel %vm7789_vm0, 4294967295, %v8704_v37  ;;  %v5202_v32 = vcombine.low %v1729_v4, %v1730_v5  ;;  %v5203_v38 = vcombine.low %v1731_v16, %v1732_v21  ;;  %vm8626_vm3 = vcmp.ne.s16.totalorder %v7770_v55, 0  ;;  %v7848_v21 = vld [vmem:[#allocation2 + $0xc] sm:$0xf] }
 0x4ee   : > { %vm8621_vm13 = vcmp.ne.s16.totalorder %v7774_v27, 0  ;;  %vm8625_vm10 = vcmp.ne.s16.totalorder %v7782_v26, 0  ;;  %vm8624_vm7 = vcmp.ne.s16.totalorder %v7786_v39, 0  ;;  %v1391_v42 = vsel %vm7776_vm4, %v7556_v31, 0 }
 0x4ef   : > { %v1767_v33 = vrot.slane %v5202_v32, 1  ;;  %v1768_v34 = vrot.slane %v5203_v38, 1  ;;  %v1733_v43 = vsel %vm8626_vm3, %v7523_v20, 0  ;;  %v1734_v44 = vsel %vm8621_vm13, %v7533_v60, 0  ;;  %v7858_v38 = vld [vmem:[#allocation2 + $0x14] sm:$0xf] }
 0x4f0   : > { %5750 = vmatmul.mubr.msk.bf16.vlgmr.msra.gmra.mrb[8].mxu0 %vm763_vm1, %v5193_v52  ;;  %vm8623_vm11 = vcmask 1046528   ;;  %v1735_v28 = vsel %vm8625_vm10, %v7556_v31, 0  ;;  %v1736_v58 = vsel %vm8624_vm7, %v7579_v40, 0  ;;  %v7817_v9 = vrot.slane %v1717_v15, 4  ;;  %v7850_v52 = vld [vmem:[#allocation2 + $0x10] sm:$0xf] }
 0x4f1   : > { %5758 = vmatpush3.bf16.msra.mxu0 %v7658_v29  ;;  %5753 = vmatprep.mubr.msk.bf16.mxu0 %vm763_vm1, %v5194_v24  ;;  %v1392_v29 = vsel %vm7789_vm0, %v7579_v40, 0  ;;  %v5204_v46 = vcombine.low %v1733_v43, %v1734_v44  ;;  %v1769_v62 = vsel %vm8623_vm11, %v1767_v33, %v1768_v34  ;;  %v5205_v7 = vcombine.low %v1735_v28, %v1736_v58  ;;  %v1873_v33 = vld [vmem:[#allocation2 + $0x20] sm:$0xf]  ;;  %v6413_v44 = vld [vmem:[#allocation10 + $0x50] sm:$0xff]  }
 0x4f2   : > { %5759 = vmatprep.subr.bf16.mxu0 %v6406_v18  ;;  %v5195_v45 = vcombine.low %v1391_v42, %v1392_v29  ;;  %vm8622_vm13 = vcmp.ne.s16.totalorder %v7817_v9, 0  ;;  %v1874_v15 = vsel %vm7633_vm6, %v7519_v19, 0  ;;  %v5223_v16 = vcombine.low %v2004_v47, %v7836_v49  ;;  %v6410_v42 = vld [vmem:[#allocation10 + $0x48] sm:$0xff]  }
 0x4f3   : > { %v1770_v14 = vrot.slane %v5204_v46, 1  ;;  %v1772_v57 = vrot.slane %v5205_v7, 1  ;;  %v1737_v61 = vsel %vm8622_vm13, %v7599_v8, 0  ;;  %v1875_v8 = vsel %vm7642_vm8, %v7521_v56, 0  ;;  %v7875_v46 = vld [vmem:[#allocation2 + $0x20] sm:$0xf] }
 0x4f4   : > { %v5206_v54 = vcombine.low %v1737_v61, %v1737_v61  ;;  %v5213_v5 = vcombine.low %v1874_v15, %v1875_v8  ;;  %v1876_v19 = vsel %vm7700_vm5, %v7529_v23, 0  ;;  %v1877_v56 = vsel %vm7711_vm14, %v7523_v20, 0  ;;  %v7860_v23 = vld [vmem:[#allocation2 + $0x18] sm:$0xf] }
 0x4f5   : > { %5760 = vmatpush3.bf16.msra.mxu0 %v6406_v18  ;;  %v1771_v53 = vsel %vm8623_vm11, %v1768_v34, %v1770_v14  ;;  %v1773_v10 = vsel %vm8623_vm11, %v1770_v14, %v1772_v57  ;;  %v1878_v18 = vsel %vm7724_vm15, %v7533_v60, 0  ;;  %v1879_v24 = vsel %vm7730_vm12, %v7556_v31, 0 }
 0x4f6   : > { %5769 = vmatprep.subr.bf16.mxu0 %v6407_v41  ;;  %v1774_v11 = vrot.slane %v5206_v54, 1  ;;  %v2044_v32 = vshll.u32 %v5223_v16, 16  ;;  %v5224_v20 = vcombine.low %v7848_v21, %v7850_v52  ;;  %v5215_v29 = vcombine.low %v1878_v18, %v1879_v24  ;;  %v2012_v54 = vld [vmem:[#allocation2 + $0x24] sm:$0x1]  ;;  %v6416_v18 = vld [vmem:[#allocation10 + $0x58] sm:$0xff]  }
 0x4f7   : > { %v5225_v60 = vcombine.low %v7858_v38, %v7860_v23  ;;  %v2042_v31 = vshrl.u32 %v5223_v16, 16  ;;  %v1880_v28 = vsel %vm7776_vm4, %v7579_v40, 0  ;;  %v1881_v58 = vsel %vm7789_vm0, %v1873_v33, 0  ;;  %v6418_v33 = vld [vmem:[#allocation10 + $0x60] sm:$0xff]  }
 0x4f8   : > { %5754 = vmatmul.mubr.msk.bf16.gmra.mrb[12].mxu0 %vm763_vm1, %v5195_v45  ;;  %v1775_v4 = vsel %vm8623_vm11, %v1772_v57, %v1774_v11  ;;  %v2046_v34 = vrot.slane %v2044_v32, 1  ;;  %v2049_v43 = vshll.u32 %v5224_v20, 16  ;;  %v7873_v45 = vld [vmem:[#allocation2 + $0x1c] sm:$0xf]  ;;  %v5216_v14 = vcombine.low %v1880_v28, %v1881_v58  ;;  %v2174_v11 = vld [vmem:[#allocation2 + $0x4] sm:$0xe] }
 0x4f9   : > { %5761 = vmatprep.mubr.msk.bf16.mxu0 %vm763_vm1, %v1769_v62  ;;  %v2057_v7 = vshll.u32 %v5225_v60, 16  ;;  %v5226_v61 = vcombine.low %v7873_v45, %v7875_v46  ;;  %vm8706_vm13 = vsmask.f32 7424  ;;  %v5227_v47 = vcombine.low %v2012_v54, %v2012_v54 }
 0x4fa   : > { %v2047_v62 = vor.u32 %v2046_v34, %v2042_v31  ;;  %v2051_v57 = vrot.slane %v2049_v43, 1  ;;  %vm8707_vm11 = vcmp.ne.s16.totalorder %v7708_v59, 0  ;;  %vm8709_vm7 = vcmp.ne.s16.totalorder %v7721_v63, 0 }
 0x4fb   : > { %vm8710_vm10 = vsmask.f32 7424 }
 0x4fc   : > { %v2052_v40 = vsel %vm8706_vm13, %v2047_v62, %v2051_v57  ;;  %vm8708_vm13 = vcmp.ne.s16.totalorder %v7717_v51, 0  ;;  %vm8711_vm3 = vmmov %vm8710_vm10 }
 0x4fd   : > { %v2177_v16 = vsel %vm8708_vm13, %v7848_v21, 0  ;;  %vm8716_vm13 = vsmask.f32 7424 }
 0x500   : > { %5762 = vmatmul.mubr.msk.bf16.vlgmr.msra.gmra.mrb[8].mxu0 %vm763_vm1, %v1771_v53  ;;  %v2053_v53 = vshrl.u32 %v5224_v20, 16  ;;  %v2069_v20 = vshrl.u32 %v5226_v61, 16 }
 0x501   : > { %5770 = vmatpush3.bf16.msra.mxu0 %v6407_v41  ;;  %5765 = vmatprep.mubr.msk.bf16.mxu0 %vm763_vm1, %v1773_v10  ;;  %v5214_v41 = vcombine.low %v1876_v19, %v1877_v56  ;;  %v2061_v10 = vshrl.u32 %v5225_v60, 16  ;;  %v2178_v19 = vsel %vm8709_vm7, %v7850_v52, 0  ;;  %vm8712_vm7 = vcmp.ne.s16.totalorder %v7770_v55, 0 }
 0x502   : > { %5771 = vmatprep.subr.bf16.mxu0 %v6408_v6  ;;  %v2055_v15 = vor.u32 %v2053_v53, %v2051_v57  ;;  %v2179_v43 = vsel %vm8712_vm7, %v7858_v38, 0  ;;  %vm8717_vm7 = vcmask 1046528  }
 0x505   : > { %5772 = vmatpush3.bf16.msra.mxu0 %v6408_v6  ;;  %v2059_v6 = vrot.slane %v2057_v7, 1 }
 0x506   : > { %5781 = vmatprep.subr.bf16.mxu0 %v6409_v12 }
 0x507   : > { %v2063_v8 = vor.u32 %v2061_v10, %v2059_v6  ;;  %v2060_v24 = vsel %vm8710_vm10, %v2055_v15, %v2059_v6  ;;  %vm8713_vm10 = vcmp.ne.s16.totalorder %v7774_v27, 0  ;;  %v6419_v10 = vld [vmem:[#allocation10 + $0x68] sm:$0xff]  }
 0x508   : > { %5766 = vmatmul.mubr.msk.bf16.gmra.mrb[12].mxu0 %vm763_vm1, %v1775_v4  ;;  %v2175_v4 = vsel %vm7734_vm2, %v2174_v11, 0  ;;  %v2180_v28 = vsel %vm8713_vm10, %v7860_v23, 0  ;;  %vm8718_vm10 = vcmp.ne.s16.totalorder %v7817_v9, 0 }
 0x509   : > { %5773 = vmatprep.mubr.msk.bf16.mxu0 %vm763_vm1, %v5213_v5  ;;  %v2176_v5 = vsel %vm8707_vm11, %v7836_v49, 0  ;;  %vm8715_vm11 = vcmp.ne.s16.totalorder %v7786_v39, 0  ;;  %v2183_v53 = vsel %vm8718_vm10, %v2012_v54, 0  ;;  %v2320_v54 = vsel %vm7642_vm8, %v7848_v21, 0 }
 0x50a   : > { %v2182_v62 = vsel %vm8715_vm11, %v7875_v46, 0  ;;  %v5238_v11 = vcombine.low %v2183_v53, %v2183_v53  ;;  %v2322_v21 = vsel %vm7711_vm14, %v7858_v38, 0  ;;  %v2318_v38 = vld [vmem:[#allocation2 + $0x24] sm:$0xf]  ;;  %vm8723_vm10 = vcmp.ne.s16.totalorder %v7708_v59, 0 }
 0x510   : > { %5774 = vmatmul.mubr.msk.bf16.vlgmr.msra.gmra.mrb[8].mxu0 %vm763_vm1, %v5214_v41  ;;  %v5234_v41 = vcombine.low %v2175_v4, %v2176_v5  ;;  %v2319_v4 = vsel %vm7633_vm6, %v7836_v49, 0  ;;  %v2449_v5 = vld [vmem:[#allocation2 + $0x8] sm:$0xf]  ;;  %v2321_v49 = vsel %vm7700_vm5, %v7850_v52, 0 }
 0x511   : > { %5782 = vmatpush3.bf16.msra.mxu0 %v6409_v12  ;;  %5777 = vmatprep.mubr.msk.bf16.mxu0 %vm763_vm1, %v5215_v29  ;;  %v2065_v12 = vshll.u32 %v5226_v61, 16  ;;  %v2073_v29 = vshll.u32 %v5227_v47, 16  ;;  %v2219_v47 = vrot.slane %v5238_v11, 1 }
 0x512   : > { %5783 = vmatprep.subr.bf16.mxu0 %v6410_v42  ;;  %v2212_v60 = vrot.slane %v5234_v41, 1  ;;  %v2323_v41 = vsel %vm7724_vm15, %v7860_v23, 0 }
 0x513   : > { %v2067_v56 = vrot.slane %v2065_v12, 1  ;;  %v2075_v58 = vrot.slane %v2073_v29, 1  ;;  %v2453_v29 = vld [vmem:[#allocation2 + $0x18] sm:$0xf] }
 0x515   : > { %5784 = vmatpush3.bf16.msra.mxu0 %v6410_v42  ;;  %v2068_v32 = vsel %vm8711_vm3, %v2063_v8, %v2067_v56  ;;  %v5235_v42 = vcombine.low %v2177_v16, %v2178_v19  ;;  %v2071_v34 = vor.u32 %v2069_v20, %v2067_v56  ;;  %vm8714_vm3 = vcmp.ne.s16.totalorder %v7782_v26, 0  ;;  %v6420_v8 = vld [vmem:[#allocation10 + $0x70] sm:$0xff]  }
 0x516   : > { %5793 = vmatprep.subr.bf16.mxu0 %v6413_v44  ;;  %v2450_v16 = vld [vmem:[#allocation2 + $0xc] sm:$0xf]  ;;  %v5245_v56 = vcombine.low %v2319_v4, %v2320_v54 }
 0x517   : > { %v2213_v31 = vrot.slane %v5235_v42, 1  ;;  %v2076_v7 = vsel %vm8716_vm13, %v2071_v34, %v2075_v58  ;;  %v2324_v42 = vsel %vm7730_vm12, %v7873_v45, 0  ;;  %v5246_v34 = vcombine.low %v2321_v49, %v2322_v21 }
 0x518   : > { %5778 = vmatmul.mubr.msk.bf16.gmra.mrb[12].mxu0 %vm763_vm1, %v5216_v14  ;;  %v5236_v14 = vcombine.low %v2179_v43, %v2180_v28 }
 0x519   : > { %5785 = vmatprep.mubr.msk.bf16.mxu0 %vm763_vm1, %v2052_v40  ;;  %v2214_v57 = vsel %vm8717_vm7, %v2212_v60, %v2213_v31  ;;  %v6421_v60 = vld [vmem:[#allocation10 + $0x78] sm:$0xff]  }
 0x51a   : > { %v2215_v40 = vrot.slane %v5236_v14, 1  ;;  %v2456_v14 = vld [vmem:[#allocation2 + $0x24] sm:$0xf] }
 0x520   : > { %5786 = vmatmul.mubr.msk.bf16.vlgmr.msra.gmra.mrb[8].mxu0 %vm763_vm1, %v2060_v24  ;;  %v2451_v24 = vld [vmem:[#allocation2 + $0x10] sm:$0xf] }
 0x521   : > { %5794 = vmatpush3.bf16.msra.mxu0 %v6413_v44  ;;  %5789 = vmatprep.mubr.msk.bf16.mxu0 %vm763_vm1, %v2068_v32  ;;  %v2181_v44 = vsel %vm8714_vm3, %v7873_v45, 0  ;;  %vm8719_vm3 = vmmov %vm8717_vm7  ;;  %v2452_v32 = vld [vmem:[#allocation2 + $0x14] sm:$0xf]  ;;  %v2325_v45 = vsel %vm7776_vm4, %v7875_v46, 0  ;;  %vm8722_vm7 = vsmask.f32 7424 }
 0x522   : > { %5795 = vmatprep.subr.bf16.mxu0 %v6416_v18  ;;  %v5237_v61 = vcombine.low %v2181_v44, %v2182_v62  ;;  %v2216_v12 = vsel %vm8719_vm3, %v2213_v31, %v2215_v40  ;;  %vm8720_vm11 = vmmov %vm8719_vm3  ;;  %v5256_v52 = vcombine.low %v2451_v24, %v2452_v32  ;;  %v5247_v31 = vcombine.low %v2323_v41, %v2324_v42  ;;  %v6424_v44 = vld [vmem:[#allocation10 + $0x80] sm:$0xff]   ;;  %v6427_v41 = vld [vmem:[#allocation10 + $0x88] sm:$0xff]  }
 0x523   : > { %vm8721_vm13 = vmmov %vm8719_vm3  ;;  %v2326_v62 = vsel %vm7789_vm0, %v2318_v38, 0  ;;  %vm8724_vm3 = vcmp.ne.s16.totalorder %v7717_v51, 0  ;;  %vm8731_vm0 = vcmask 1046528  }
 0x524   : > { %v2217_v6 = vrot.slane %v5237_v61, 1  ;;  %v2494_v58 = vshll.u32 %v5256_v52, 16  ;;  %v2498_v11 = vshrl.u32 %v5256_v52, 16 }
 0x525   : > { %5796 = vmatpush3.bf16.msra.mxu0 %v6416_v18  ;;  %v5255_v18 = vcombine.low %v2449_v5, %v2450_v16 }
 0x526   : > { %5805 = vmatprep.subr.bf16.mxu0 %v6418_v33  ;;  %v2218_v15 = vsel %vm8720_vm11, %v2215_v40, %v2217_v6  ;;  %v2220_v19 = vsel %vm8721_vm13, %v2217_v6, %v2219_v47  ;;  %v5248_v40 = vcombine.low %v2325_v45, %v2326_v62  ;;  %v2496_v6 = vrot.slane %v2494_v58, 1  ;;  %v2619_v47 = vld [vmem:[#allocation2 + $0x8] sm:$0xe]  ;;  %vm8726_vm13 = vmmov %vm8722_vm7 }
 0x527   : > { %v2489_v20 = vshll.u32 %v5255_v18, 16  ;;  %v2487_v23 = vshrl.u32 %v5255_v18, 16  ;;  %v2622_v18 = vsel %vm8724_vm3, %v2451_v24, 0  ;;  %vm8725_vm11 = vcmp.ne.s16.totalorder %v7721_v63, 0 }
 0x528   : > { %5790 = vmatmul.mubr.msk.bf16.gmra.mrb[12].mxu0 %vm763_vm1, %v2076_v7  ;;  %v2455_v7 = vld [vmem:[#allocation2 + $0x20] sm:$0xf]  ;;  %v2500_v4 = vor.u32 %v2498_v11, %v2496_v6  ;;  %v2623_v49 = vsel %vm8725_vm11, %v2452_v32, 0  ;;  %vm8728_vm3 = vcmp.ne.s16.totalorder %v7774_v27, 0  ;;  %vm8729_vm11 = vcmp.ne.s16.totalorder %v7782_v26, 0  ;;  %v2782_v11 = vld [vmem:[%s8737_s29 + $0x10] sm:$0xff] }
 0x529   : > { %5797 = vmatprep.mubr.msk.bf16.mxu0 %vm763_vm1, %v2214_v57  ;;  %v2491_v43 = vrot.slane %v2489_v20, 1  ;;  %v5258_v53 = vcombine.low %v2455_v7, %v2456_v14  ;;  %v5267_v52 = vcombine.low %v2622_v18, %v2623_v49  ;;  %v2786_v18 = vld [vmem:[%s8737_s29 + $0x30] sm:$0xff]  ;;  %v2787_v49 = vld [vmem:[%s8737_s29 + $0x38] sm:$0xff] }
 0x52b   : > { %v2492_v57 = vor.u32 %v2491_v43, %v2487_v23  ;;  %v2658_v32 = vrot.slane %v5267_v52, 1  ;;  %v2626_v23 = vsel %vm8729_vm11, %v2455_v7, 0  ;;  %vm8734_vm11 = vmmov %vm8731_vm0 }
 0x530   : > { %5798 = vmatmul.mubr.msk.bf16.vlgmr.msra.gmra.mrb[8].mxu0 %vm763_vm1, %v2216_v12 }
 0x531   : > { %5806 = vmatpush3.bf16.msra.mxu0 %v6418_v33  ;;  %5801 = vmatprep.mubr.msk.bf16.mxu0 %vm763_vm1, %v2218_v15  ;;  %v2454_v33 = vld [vmem:[#allocation2 + $0x1c] sm:$0xf]  ;;  %v2510_v15 = vshll.u32 %v5258_v53, 16 }
 0x532   : > { %5807 = vmatprep.subr.bf16.mxu0 %v6419_v10  ;;  %v5257_v28 = vcombine.low %v2453_v29, %v2454_v33 }
 0x533   : > { %v2512_v21 = vrot.slane %v2510_v15, 1  ;;  %v2783_v15 = vld [vmem:[%s8737_s29 + $0x18] sm:$0xff] }
 0x534   : > { %v2502_v61 = vshll.u32 %v5257_v28, 16  ;;  %v2506_v46 = vshrl.u32 %v5257_v28, 16  ;;  %v2625_v28 = vsel %vm8728_vm3, %v2454_v33, 0  ;;  %vm8733_vm3 = vmmov %vm8731_vm0 }
 0x535   : > { %5808 = vmatpush3.bf16.msra.mxu0 %v6419_v10  ;;  %v2497_v10 = vsel %vm8722_vm7, %v2492_v57, %v2496_v6 }
 0x536   : > { %5817 = vmatprep.subr.bf16.mxu0 %v6420_v8  ;;  %v2504_v12 = vrot.slane %v2502_v61, 1 }
 0x538   : > { %5802 = vmatmul.mubr.msk.bf16.gmra.mrb[12].mxu0 %vm763_vm1, %v2220_v19  ;;  %v2508_v5 = vor.u32 %v2506_v46, %v2504_v12  ;;  %v2620_v19 = vsel %vm7734_vm2, %v2619_v47, 0  ;;  %v2505_v42 = vsel %vm8726_vm13, %v2500_v4, %v2504_v12  ;;  %vm8730_vm13 = vcmp.ne.s16.totalorder %v7786_v39, 0  ;;  %v2781_v12 = vld [vmem:[%s8737_s29 + $0x8] sm:$0xff]  ;;  %v2789_v4 = vld [vmem:[#allocation15 + $0x8] sm:$0xff] }
 0x539   : > { %5809 = vmatprep.mubr.msk.bf16.mxu0 %vm763_vm1, %v5245_v56  ;;  %v2621_v56 = vsel %vm8723_vm10, %v2450_v16, 0  ;;  %v2514_v16 = vshrl.u32 %v5258_v53, 16  ;;  %vm8727_vm10 = vcmp.ne.s16.totalorder %v7770_v55, 0  ;;  %v2627_v58 = vsel %vm8730_vm13, %v2456_v14, 0  ;;  %vm8735_vm13 = vmmov %vm8731_vm0 }
 0x53a   : > { %v2624_v43 = vsel %vm8727_vm10, %v2453_v29, 0  ;;  %v5269_v29 = vcombine.low %v2626_v23, %v2627_v58  ;;  %vm8732_vm10 = vcmp.ne.s16.totalorder %v7817_v9, 0  ;;  %v6085_v47 = vpack.c.bf16 %v2783_v15, %v2782_v11 }
 0x53b   : > { %v2516_v24 = vor.u32 %v2514_v16, %v2512_v21  ;;  %v5268_v45 = vcombine.low %v2624_v43, %v2625_v28 }
 0x53c   : > { %v2662_v57 = vrot.slane %v5269_v29, 1 }
 0x53d   : > { %v2660_v33 = vrot.slane %v5268_v45, 1 }
 0x53f   : > { %v2661_v61 = vsel %vm8733_vm3, %v2658_v32, %v2660_v33  ;;  %vm3249_vm3 = vcmask 516096  }
 0x540   : > { %5810 = vmatmul.mubr.msk.bf16.vlgmr.msra.gmra.mrb[8].mxu0 %vm763_vm1, %v5246_v34  ;;  %v2513_v34 = vsel %vm8722_vm7, %v2508_v5, %v2512_v21  ;;  %v2785_v5 = vld [vmem:[%s8737_s29 + $0x28] sm:$0xff]  ;;  %v6091_v21 = vpack.c.bf16 %v2787_v49, %v2786_v18  ;;  %3260 = vst.msk [vmem:[#allocation3 + $0x28] sm:$0x1] %vm3249_vm3, %v6883_v35 }
 0x541   : > { %5818 = vmatpush3.bf16.msra.mxu0 %v6420_v8  ;;  %5813 = vmatprep.mubr.msk.bf16.mxu0 %vm763_vm1, %v5247_v31  ;;  %v2457_v8 = vld [vmem:[#allocation2 + $0x28] sm:$0x1] }
 0x542   : > { %5819 = vmatprep.subr.bf16.mxu0 %v6421_v60  ;;  %v5259_v54 = vcombine.low %v2457_v8, %v2457_v8  ;;  %v2628_v7 = vsel %vm8732_vm10, %v2457_v8, 0  ;;  %v2788_v8 = vld [vmem:[#allocation15] sm:$0xff]  ;;  %vm3247_vm10 = vcmask 519168  }
 0x543   : > { %v5270_v14 = vcombine.low %v2628_v7, %v2628_v7  ;;  %3248 = vst.msk [vmem:[#allocation3] sm:$0xf] %vm3247_vm10, %v6883_v35  ;;  %v8107_v35 = vld [vmem:[%s8738_s14] sm:$0xff]  }
 0x544   : > { %v2518_v20 = vshll.u32 %v5259_v54, 16  ;;  %v2784_v54 = vld [vmem:[%s8737_s29 + $0x20] sm:$0xff] }
 0x545   : > { %5820 = vmatpush3.bf16.msra.mxu0 %v6421_v60  ;;  %v5266_v60 = vcombine.low %v2620_v19, %v2621_v56  ;;  %v2664_v6 = vrot.slane %v5270_v14, 1  ;;  %v8004_v19 = vpack.c.bf16 %v2789_v4, %v2788_v8  ;;  %v6088_v56 = vpack.c.bf16 %v2785_v5, %v2784_v54 }
 0x546   : > { %5829 = vmatprep.subr.bf16.mxu0 %v6424_v44  ;;  %v2520_v31 = vrot.slane %v2518_v20, 1 }
 0x547   : > { %v2657_v38 = vrot.slane %v5266_v60, 1  ;;  %v2665_v53 = vsel %vm8735_vm13, %v2662_v57, %v2664_v6  ;;  %6095 = vmatpush3.bf16.msra.mxu1 %v8004_v19 }
 0x548   : > { %5814 = vmatmul.mubr.msk.bf16.gmra.mrb[12].mxu0 %vm763_vm1, %v5248_v40  ;;  %v2663_v40 = vsel %vm8734_vm11, %v2660_v33, %v2662_v57  ;;  %6096 = vmatprep.subr.bf16.mxu1 %v6880_v0  ;;  %vm8739_vm11 = vsmask.f32 256 }
 0x549   : > { %5821 = vmatprep.mubr.msk.bf16.mxu0 %vm763_vm1, %v2497_v10  ;;  %v2659_v62 = vsel %vm8731_vm0, %v2657_v38, %v2658_v32  ;;  %vm8736_vm0 = vmmov 0   ;;  %v2780_v10 = vld [vmem:[%s8737_s29] sm:$0xff]  ;;  %vm8091_vm13 = vmand %vm3249_vm3, %vm8739_vm11 }
 0x54a   : > { %v6082_v46 = vpack.c.bf16 %v2781_v12, %v2780_v10 }
 0x550   : > { %5822 = vmatmul.mubr.msk.bf16.vlgmr.msra.gmra.mrb[8].mxu0 %vm763_vm1, %v2505_v42 }
 0x551   : > { %5830 = vmatpush3.bf16.msra.mxu0 %v6424_v44  ;;  %5825 = vmatprep.mubr.msk.bf16.mxu0 %vm763_vm1, %v2513_v34  ;;  %v2521_v44 = vsel %vm8722_vm7, %v2516_v24, %v2520_v31  ;;  %vm2792_vm7 = vcmask 523264  }
 0x552   : > { %5831 = vmatprep.subr.bf16.mxu0 %v6427_v41 }
 0x555   : > { %5832 = vmatpush3.bf16.msra.mxu0 %v6427_v41  ;;  %v5277_v41 = vld [vmem:[%s537_s3] ss:$0 sm:$0xff]  ;;  %s5508_s3 = sshll.u32 %s6988_s24, 10 }
 0x556   : > { %6081 = vmatprep.subr.bf16.mxu0 %v6880_v0  ;;  %s8541_s13 = scalar_lea.hbm %s8794_s22, %s5508_s3 }
 0x558   : > { %5826 = vmatmul.mubr.msk.bf16.gmra.mrb[12].mxu0 %vm763_vm1, %v2521_v44 }
 0x559   : > { %5833 = vmatprep.mubr.msk.bf16.mxu0 %vm763_vm1, %v2659_v62 }
 0x560   : > { %5834 = vmatmul.mubr.msk.bf16.vlgmr.msra.gmra.mrb[8].mxu0 %vm763_vm1, %v2661_v61 }
 0x561   : > { %5837 = vmatprep.mubr.msk.bf16.mxu0 %vm763_vm1, %v2663_v40  ;;  %6083 = vmatpush3.bf16.msra.mxu0 %v6082_v46 }
 0x562   : > { %6084 = vmatprep.subr.bf16.mxu0 %v6880_v0 }
 0x565   : > { %6086 = vmatpush3.bf16.msra.mxu0 %v6085_v47 }
 0x566   : > { %6087 = vmatprep.subr.bf16.mxu0 %v6880_v0 }
 0x568   : > { %5838 = vmatmul.mubr.msk.bf16.gmra.mrb[12].mxu0 %vm763_vm1, %v2665_v53 }
 0x569   : > { %5857 = vmatprep.mubr.msk.f32.mxu0 %vm8736_vm0, %v6882_v1  ;;  %6089 = vmatpush3.bf16.msra.mxu0 %v6088_v56 }
 0x56a   : > { %6090 = vmatprep.subr.bf16.mxu0 %v6880_v0 }
 0x56d   : > { %6092 = vmatpush3.bf16.msra.mxu0 %v6091_v21 }
 0x56e   : > { %6099 = vmatprep.subr.bf16.mxu0 %v6880_v0 }
 0x633   : > { %v5835_v42 = vpop.f32.mrb[8].mxu0 }
 0x634   : > { %v2724_v20 = vpop.f32.mrb[9].mxu0  ;;  %v2772_v16 = vadd.f32 %v5835_v42, %v5277_v41 }
 0x635   : > { %v2770_v34 = vadd.f32 %v5277_v41, %v2724_v20  ;;  %v5836_v60 = vpop.f32.mrb[10].mxu0  ;;  %v2791_v20 = vld [vmem:[#allocation15 + $0x18] sm:$0xff] }
 0x636   : > { %v2727_v52 = vpop.f32.mrb[11].mxu0  ;;  %v2773_v38 = vadd.f32 %v5836_v60, %v5277_v41  ;;  %v2796_v28 = vsel %vm2792_vm7, %v2772_v16, 0.0 }
 0x637   : > { %v2771_v24 = vadd.f32 %v5277_v41, %v2727_v52  ;;  %v2793_v31 = vsel %vm2792_vm7, %v2770_v34, 0.0 }
 0x638   : > { %v2798_v45 = vsel %vm2792_vm7, %v2773_v38, 0.0 }
 0x639   : > { %v2794_v32 = vsel %vm2792_vm7, %v2771_v24, 0.0 }
 0x63a   : > { %v2795_v43 = vadd.f32 %v2794_v32, %v2793_v31 }
 0x63b   : > { %v5839_v23 = vpop.f32.mrb[12].mxu0 }
 0x63c   : > { %v2797_v58 = vadd.f32 %v2796_v28, %v2795_v43  ;;  %v2740_v44 = vpop.f32.mrb[13].mxu0  ;;  %v2776_v7 = vadd.f32 %v5839_v23, %v5277_v41 }
 0x63d   : > { %v2774_v62 = vadd.f32 %v5277_v41, %v2740_v44  ;;  %v5840_v29 = vpop.f32.mrb[14].mxu0 }
 0x63e   : > { %v2799_v33 = vadd.f32 %v2798_v45, %v2797_v58  ;;  %v2743_v57 = vpop.f32.mrb[15].mxu0  ;;  %v2777_v6 = vadd.f32 %v5840_v29, %v5277_v41  ;;  %v2804_v12 = vsel %vm2792_vm7, %v2776_v7, 0.0 }
 0x63f   : > { %v2800_v61 = vsel %vm2792_vm7, %v2774_v62, 0.0  ;;  %v2775_v14 = vadd.f32 %v5277_v41, %v2743_v57  ;;  %v2790_v41 = vld [vmem:[#allocation15 + $0x10] sm:$0xff] }
 0x640   : > { %v2801_v40 = vadd.f32 %v2800_v61, %v2799_v33  ;;  %v2806_v15 = vsel %vm2792_vm7, %v2777_v6, 0.0  ;;  %v6097_v60 = vpack.c.bf16 %v2791_v20, %v2790_v41 }
 0x641   : > { %v2802_v53 = vsel %vm2792_vm7, %v2775_v14, 0.0 }
 0x642   : > { %v2803_v10 = vadd.f32 %v2802_v53, %v2801_v40  ;;  %6098 = vmatpush3.bf16.msra.mxu1 %v6097_v60 }
 0x643   : > { %6111 = vmatprep.subr.bf16.mxu1 %v6880_v0 }
 0x644   : > { %v2805_v11 = vadd.f32 %v2804_v12, %v2803_v10 }
 0x646   : > { %v2807_v8 = vadd.f32 %v2806_v15, %v2805_v11 }
 0x648   : > { %v2808_v4 = vrot.slane %v2807_v8, 4 }
 0x64a   : > { %v2809_v54 = vadd.f32 %v2808_v4, %v2807_v8 }
 0x64c   : > { %v2810_v5 = vrot.slane %v2809_v54, 2 }
 0x64e   : > { %v2811_v18 = vadd.f32 %v2810_v5, %v2809_v54 }
 0x650   : > { %v2812_v49 = vrot.slane %v2811_v18, 1 }
 0x652   : > { %v2813_v42 = vadd.f32 %v2812_v49, %v2811_v18 }
 0x654   : > { %5858 = vmatmul.mubr.msk.f32.vlgmr.msra.gmra.mrb[6].mxu0 %vm2792_vm7, %v2813_v42 }
 0x655   : > { %6101 = vmatpush3.bf16.msra.mxu0 %v6082_v46  ;;  %5887 = vmatprep.mubr.msk.f32.mxu0 %vm8736_vm0, %v6882_v1 }
 0x656   : > { %6102 = vmatprep.subr.bf16.mxu0 %v6880_v0 }
 0x659   : > { %6104 = vmatpush3.bf16.msra.mxu0 %v6085_v47 }
 0x65a   : > { %6105 = vmatprep.subr.bf16.mxu0 %v6880_v0 }
 0x65d   : > { %6107 = vmatpush3.bf16.msra.mxu0 %v6088_v56 }
 0x65e   : > { %6108 = vmatprep.subr.bf16.mxu0 %v6880_v0 }
 0x661   : > { %6110 = vmatpush3.bf16.msra.mxu0 %v6091_v21 }
 0x727   : > { %v2883_v52 = vpop.f32.mrb[6].mxu0 }
 0x728   : > { %v2888_v46 = vmul.f32 0.0078125, %v2883_v52  ;;  %v5859_v31 = vpop.f32.mrb[7].mxu0 }
 0x729   : > { %v6429_v31 = vld [vmem:[%s8738_s14 + $0x20] sm:$0xff]  }
 0x72a   : > { %5869 = vmatmul.mubr.msk.f32.vlgmr.msra.gmra.mrb[2].mxu1 %vm763_vm1, %v2888_v46 }
 0x72b   : > { %6113 = vmatpush3.bf16.msra.mxu1 %v8004_v19  ;;  %5898 = vmatprep.mubr.msk.f32.mxu1 %vm8736_vm0, %v6882_v1  ;;  %vm8742_vm0 = vsmask.f32 7938 }
 0x72c   : > { %6114 = vmatprep.subr.bf16.mxu1 %v6880_v0  ;;  %vm8112_vm3 = vmand %vm3247_vm10, %vm8742_vm0  ;;  %vm8749_vm0 = vcmp.ne.s16.totalorder %v7708_v59, 0 }
 0x72f   : > { %6116 = vmatpush3.bf16.msra.mxu1 %v6097_v60 }
 0x730   : > { %5901 = vmatprep.subr.bf16.mxu1 %v6429_v31 }
 0x7fd   : > { %v2958_v47 = vpop.f32.mrb[2].mxu1 }
 0x7fe   : > { %v2965_v56 = vrot.slane %v2958_v47, %v7351_v48  ;;  %v5870_v21 = vpop.f32.mrb[3].mxu1  ;;  %v6430_v47 = vld [vmem:[%s8738_s14 + $0x28] sm:$0xff]  }
 0x7ff   : > { %v3251_v21 = vld [vmem:[#allocation3 + $0x4] sm:$0x1] }
 0x800   : > { %v8040_v32 = vsub.f32 %v2770_v34, %v2965_v56  ;;  %v8042_v43 = vsub.f32 %v2771_v24, %v2965_v56  ;;  %v8044_v28 = vsub.f32 %v2772_v16, %v2965_v56  ;;  %v8046_v23 = vsub.f32 %v2773_v38, %v2965_v56 }
 0x801   : > { %v8048_v58 = vsub.f32 %v2774_v62, %v2965_v56  ;;  %v8056_v44 = vsub.f32 %v2775_v14, %v2965_v56  ;;  %v8062_v45 = vsub.f32 %v2776_v7, %v2965_v56  ;;  %v8067_v57 = vsub.f32 %v2777_v6, %v2965_v56 }
 0x802   : > { %v2974_v1 = vmul.f32 %v8040_v32, %v8040_v32  ;;  %v2975_v0 = vmul.f32 %v8042_v43, %v8042_v43  ;;  %v2976_v19 = vmul.f32 %v8044_v28, %v8044_v28  ;;  %v2977_v34 = vmul.f32 %v8046_v23, %v8046_v23 }
 0x803   : > { %v2978_v62 = vmul.f32 %v8048_v58, %v8048_v58  ;;  %v2979_v61 = vmul.f32 %v8056_v44, %v8056_v44  ;;  %v2980_v53 = vmul.f32 %v8062_v45, %v8062_v45  ;;  %v2981_v12 = vmul.f32 %v8067_v57, %v8067_v57 }
 0x804   : > { %v2982_v16 = vsel %vm2792_vm7, %v2974_v1, 0.0  ;;  %v2983_v24 = vsel %vm2792_vm7, %v2975_v0, 0.0  ;;  %v2985_v29 = vsel %vm2792_vm7, %v2976_v19, 0.0  ;;  %v2987_v14 = vsel %vm2792_vm7, %v2977_v34, 0.0  ;;  %v6431_v0 = vld [vmem:[%s8738_s14 + $0x30] sm:$0xff]   ;;  %v6432_v19 = vld [vmem:[%s8738_s14 + $0x38] sm:$0xff]  }
 0x805   : > { %v2984_v38 = vadd.f32 %v2983_v24, %v2982_v16  ;;  %v2989_v7 = vsel %vm2792_vm7, %v2978_v62, 0.0  ;;  %v2991_v11 = vsel %vm2792_vm7, %v2979_v61, 0.0  ;;  %v2993_v6 = vsel %vm2792_vm7, %v2980_v53, 0.0  ;;  %v3256_v16 = vld [vmem:[#allocation3 + $0x24] sm:$0xf] }
 0x806   : > { %v2995_v4 = vsel %vm2792_vm7, %v2981_v12, 0.0  ;;  %v3252_v1 = vsel %vm8091_vm13, 0, %v3251_v21  ;;  %v3257_v24 = vsel %vm8112_vm3, 0, %v3256_v16  ;;  %v5283_v12 = vld [vmem:[#allocation13] ss:$0 sm:$0xff] }
 0x807   : > { %v2986_v33 = vadd.f32 %v2985_v29, %v2984_v38  ;;  %3253 = vst [vmem:[#allocation3 + $0x4] sm:$0x1] %v3252_v1  ;;  %3258 = vst [vmem:[#allocation3 + $0x24] sm:$0xf] %v3257_v24 }
 0x809   : > { %v2988_v40 = vadd.f32 %v2987_v14, %v2986_v33  ;;  %v5282_v14 = vld [vmem:[#allocation12] ss:$0 sm:$0xff] }
 0x80b   : > { %v2990_v10 = vadd.f32 %v2989_v7, %v2988_v40 }
 0x80d   : > { %v2992_v15 = vadd.f32 %v2991_v11, %v2990_v10 }
 0x80f   : > { %v2994_v8 = vadd.f32 %v2993_v6, %v2992_v15 }
 0x811   : > { %v2996_v54 = vadd.f32 %v2995_v4, %v2994_v8 }
 0x813   : > { %v2997_v5 = vrot.slane %v2996_v54, 4 }
 0x815   : > { %v2998_v18 = vadd.f32 %v2997_v5, %v2996_v54 }
 0x817   : > { %v2999_v49 = vrot.slane %v2998_v18, 2 }
 0x819   : > { %v3000_v42 = vadd.f32 %v2999_v49, %v2998_v18 }
 0x81b   : > { %v3001_v41 = vrot.slane %v3000_v42, 1 }
 0x81d   : > { %v3002_v20 = vadd.f32 %v3001_v41, %v3000_v42 }
 0x81f   : > { %5888 = vmatmul.mubr.msk.f32.vlgmr.msra.gmra.mrb[16].mxu0 %vm2792_vm7, %v3002_v20 }
 0x8f2   : > { %v3072_v60 = vpop.f32.mrb[16].mxu0 }
 0x8f3   : > { %v3076_v52 = vmul.f32 0.0078125, %v3072_v60  ;;  %v5889_v46 = vpop.f32.mrb[17].mxu0 }
 0x8f5   : > { %5899 = vmatmul.mubr.msk.f32.vlgmr.msra.gmra.mrb[4].mxu1 %vm763_vm1, %v3076_v52 }
 0x8f6   : > { %5902 = vmatpush3.bf16.msra.mxu1 %v6429_v31 }
 0x8f7   : > { %5903 = vmatprep.subr.bf16.mxu1 %v6430_v47 }
 0x8fa   : > { %5904 = vmatpush3.bf16.msra.mxu1 %v6430_v47 }
 0x8fb   : > { %5905 = vmatprep.subr.bf16.mxu1 %v6431_v0 }
 0x8fe   : > { %5906 = vmatpush3.bf16.msra.mxu1 %v6431_v0 }
 0x8ff   : > { %5907 = vmatprep.subr.bf16.mxu1 %v6432_v19 }
 0x902   : > { %5908 = vmatpush3.bf16.msra.mxu1 %v6432_v19 }
 0x903   : > { %5917 = vmatprep.subr.bf16.mxu1 %v8107_v35 }
 0x9c8   : > { %v3146_v38 = vpop.f32.mrb[4].mxu1 }
 0x9c9   : > { %v3147_v62 = vadd.f32 1e-05, %v3146_v38  ;;  %v5900_v29 = vpop.f32.mrb[5].mxu1 }
 0x9cb   : > { %6516 = vrsqrt.f32 %v3147_v62 }
 0x9d5   : > { %v6517_v33 = vpop.eup %6516 }
 0x9d6   : > { %v3154_v61 = vrot.slane %v6517_v33, %v7351_v48 }
 0x9d8   : > { %v3155_v40 = vmul.f32 %v3154_v61, %v8040_v32  ;;  %v3156_v53 = vmul.f32 %v3154_v61, %v8042_v43  ;;  %v3157_v7 = vmul.f32 %v3154_v61, %v8044_v28  ;;  %v3158_v10 = vmul.f32 %v3154_v61, %v8046_v23 }
 0x9d9   : > { %v3159_v11 = vmul.f32 %v3154_v61, %v8048_v58  ;;  %v3160_v15 = vmul.f32 %v3154_v61, %v8056_v44  ;;  %v3161_v6 = vmul.f32 %v3154_v61, %v8062_v45  ;;  %v3162_v8 = vmul.f32 %v3154_v61, %v8067_v57 }
 0x9da   : > { %v3169_v4 = vmul.f32 %v5282_v14, %v3155_v40  ;;  %v3170_v48 = vmul.f32 %v5282_v14, %v3156_v53  ;;  %v3171_v54 = vmul.f32 %v5282_v14, %v3157_v7  ;;  %v3172_v5 = vmul.f32 %v5282_v14, %v3158_v10 }
 0x9db   : > { %v3173_v32 = vmul.f32 %v5282_v14, %v3159_v11  ;;  %v3174_v18 = vmul.f32 %v5282_v14, %v3160_v15  ;;  %v3175_v43 = vmul.f32 %v5282_v14, %v3161_v6  ;;  %v3176_v49 = vmul.f32 %v5282_v14, %v3162_v8 }
 0x9dc   : > { %v3183_v28 = vadd.f32 %v5283_v12, %v3169_v4  ;;  %v3184_v42 = vadd.f32 %v5283_v12, %v3170_v48  ;;  %v3185_v23 = vadd.f32 %v5283_v12, %v3171_v54  ;;  %v3186_v41 = vadd.f32 %v5283_v12, %v3172_v5 }
 0x9dd   : > { %v3187_v20 = vadd.f32 %v5283_v12, %v3173_v32  ;;  %v3188_v58 = vadd.f32 %v5283_v12, %v3174_v18  ;;  %v8127_v60 = vadd.f32 %v5283_v12, %v3175_v43  ;;  %v8129_v57 = vadd.f32 %v5283_v12, %v3176_v49 }
 0x9de   : > { %v5284_v44 = vmul.f32 -1.442695, %v3183_v28  ;;  %v5285_v45 = vmul.f32 -1.442695, %v3184_v42  ;;  %v5286_v52 = vmul.f32 -1.442695, %v3185_v23 }
 0x9df   : > { %v5287_v46 = vmul.f32 -1.442695, %v3186_v41  ;;  %v5288_v31 = vmul.f32 -1.442695, %v3187_v20  ;;  %v5289_v47 = vmul.f32 -1.442695, %v3188_v58 }
 0x9e0   : > { %6518 = vpow2.f32 %v5284_v44  ;;  %v5290_v21 = vmul.f32 -1.442695, %v8127_v60  ;;  %v5291_v1 = vmul.f32 -1.442695, %v8129_v57 }
 0x9e1   : > { %6520 = vpow2.f32 %v5285_v45 }
 0x9e2   : > { %6522 = vpow2.f32 %v5286_v52 }
 0x9e3   : > { %6524 = vpow2.f32 %v5287_v46 }
 0x9e4   : > { %6526 = vpow2.f32 %v5288_v31 }
 0x9e5   : > { %6528 = vpow2.f32 %v5289_v47 }
 0x9e6   : > { %6530 = vpow2.f32 %v5290_v21 }
 0x9e7   : > { %6532 = vpow2.f32 %v5291_v1 }
 0x9ea   : > { %v6519_v0 = vpop.eup %6518 }
 0x9eb   : > { %v6521_v19 = vpop.eup %6520  ;;  %v3215_v16 = vadd.f32 1.0, %v6519_v0 }
 0x9ec   : > { %v6523_v24 = vpop.eup %6522  ;;  %v3216_v38 = vadd.f32 1.0, %v6521_v19 }
 0x9ed   : > { %v6525_v62 = vpop.eup %6524  ;;  %v3217_v29 = vadd.f32 1.0, %v6523_v24  ;;  %6534 = vrcp.f32 %v3215_v16 }
 0x9ee   : > { %v6527_v33 = vpop.eup %6526  ;;  %v3218_v61 = vadd.f32 1.0, %v6525_v62  ;;  %6536 = vrcp.f32 %v3216_v38 }
 0x9ef   : > { %v6529_v14 = vpop.eup %6528  ;;  %v3219_v40 = vadd.f32 1.0, %v6527_v33  ;;  %6538 = vrcp.f32 %v3217_v29 }
 0x9f0   : > { %v6531_v53 = vpop.eup %6530  ;;  %v3220_v7 = vadd.f32 1.0, %v6529_v14  ;;  %6540 = vrcp.f32 %v3218_v61 }
 0x9f1   : > { %v6533_v10 = vpop.eup %6532  ;;  %v3221_v12 = vadd.f32 1.0, %v6531_v53  ;;  %6542 = vrcp.f32 %v3219_v40 }
 0x9f2   : > { %v3222_v11 = vadd.f32 1.0, %v6533_v10  ;;  %6544 = vrcp.f32 %v3220_v7 }
 0x9f3   : > { %6546 = vrcp.f32 %v3221_v12 }
 0x9f4   : > { %6548 = vrcp.f32 %v3222_v11 }
 0x9f7   : > { %v6535_v15 = vpop.eup %6534 }
 0x9f8   : > { %v6537_v6 = vpop.eup %6536  ;;  %v3239_v8 = vmul.f32 %v6535_v15, %v3183_v28 }
 0x9f9   : > { %v6539_v4 = vpop.eup %6538  ;;  %v3240_v48 = vmul.f32 %v6537_v6, %v3184_v42 }
 0x9fa   : > { %v6541_v54 = vpop.eup %6540  ;;  %v3241_v5 = vmul.f32 %v6539_v4, %v3185_v23  ;;  %v5500_v32 = vpack.c.bf16 %v3239_v8, %v3239_v8 }
 0x9fb   : > { %v6543_v18 = vpop.eup %6542  ;;  %v3242_v43 = vmul.f32 %v6541_v54, %v3186_v41  ;;  %v5501_v49 = vpack.c.bf16 %v3240_v48, %v3240_v48 }
 0x9fc   : > { %v6545_v44 = vpop.eup %6544  ;;  %v3243_v45 = vmul.f32 %v6543_v18, %v3187_v20  ;;  %v5502_v52 = vpack.c.bf16 %v3241_v5, %v3241_v5  ;;  %v3286_v46 = vshrl.u32 %v5500_v32, 16  ;;  %v3289_v31 = vshll.u32 %v5500_v32, 16 }
 0x9fd   : > { %v6547_v47 = vpop.eup %6546  ;;  %v3244_v21 = vmul.f32 %v6545_v44, %v3188_v58  ;;  %v5503_v1 = vpack.c.bf16 %v3242_v43, %v3242_v43  ;;  %v3294_v0 = vshrl.u32 %v5501_v49, 16  ;;  %v3297_v19 = vshll.u32 %v5501_v49, 16 }
 0x9fe   : > { %v6549_v16 = vpop.eup %6548  ;;  %v3245_v28 = vmul.f32 %v6547_v47, %v8127_v60  ;;  %v5504_v42 = vpack.c.bf16 %v3243_v45, %v3243_v45  ;;  %v3288_v24 = vrot.slane %v3286_v46, 7  ;;  %v3303_v23 = vshrl.u32 %v5502_v52, 16 }
 0x9ff   : > { %v3246_v38 = vmul.f32 %v6549_v16, %v8129_v57  ;;  %v5505_v41 = vpack.c.bf16 %v3244_v21, %v3244_v21  ;;  %v3296_v62 = vrot.slane %v3294_v0, 7  ;;  %v3306_v29 = vshll.u32 %v5502_v52, 16  ;;  %v3365_v57 = vld [vmem:[#allocation3 + $0x4] sm:$0xf] }
 0xa00   : > { %v5506_v20 = vpack.c.bf16 %v3245_v28, %v3245_v28  ;;  %v3291_v33 = vor.u32 %v3289_v31, %v3288_v24  ;;  %v3305_v61 = vrot.slane %v3303_v23, 7  ;;  %v3312_v14 = vshrl.u32 %v5503_v1, 16 }
 0xa01   : > { %v5507_v40 = vpack.c.bf16 %v3246_v38, %v3246_v38  ;;  %v3315_v58 = vshll.u32 %v5503_v1, 16  ;;  %v3321_v53 = vshrl.u32 %v5504_v42, 16  ;;  %v3324_v7 = vshll.u32 %v5504_v42, 16  ;;  %v3375_v38 = vld [vmem:[#allocation3 + $0x24] sm:$0x1] }
 0xa02   : > { %v3310_v10 = vrot.slane %v3305_v61, 4  ;;  %v3314_v12 = vrot.slane %v3312_v14, 7  ;;  %v3330_v11 = vshrl.u32 %v5505_v41, 16  ;;  %v3333_v60 = vshll.u32 %v5505_v41, 16  ;;  %v3378_v41 = vld [vmem:[#allocation3] sm:$0xf] }
 0xa03   : > { %v3323_v15 = vrot.slane %v3321_v53, 7  ;;  %v3339_v6 = vshrl.u32 %v5506_v20, 16  ;;  %v3342_v8 = vshll.u32 %v5506_v20, 16  ;;  %v3292_v4 = vrot.slane %v3288_v24, 4 }
 0xa04   : > { %v3317_v48 = vor.u32 %v3315_v58, %v3314_v12  ;;  %v3319_v54 = vrot.slane %v3314_v12, 4  ;;  %v3332_v5 = vrot.slane %v3330_v11, 7  ;;  %v3299_v32 = vor.u32 %v3297_v19, %v3296_v62 }
 0xa05   : > { %v3326_v18 = vor.u32 %v3324_v7, %v3323_v15  ;;  %v3341_v43 = vrot.slane %v3339_v6, 7  ;;  %v3301_v49 = vrot.slane %v3296_v62, 4  ;;  %v3308_v44 = vor.u32 %v3306_v29, %v3305_v61 }
 0xa06   : > { %v3300_v45 = vsel %vm7462_vm9, %v3292_v4, %v3299_v32  ;;  %v3366_v52 = vsel %vm8112_vm3, %v3291_v33, %v3365_v57  ;;  %v3318_v46 = vsel %vm7462_vm9, %v3310_v10, %v3317_v48  ;;  %v3328_v31 = vrot.slane %v3323_v15, 4 }
 0xa07   : > { %v3309_v47 = vsel %vm7462_vm9, %v3301_v49, %v3308_v44  ;;  %3367 = vst [vmem:[#allocation3 + $0x4] sm:$0xf] %v3366_v52  ;;  %3368 = vst.msk [vmem:[#allocation3 + $0x8] sm:$0xf] %vm3247_vm10, %v3300_v45  ;;  %v3327_v21 = vsel %vm7462_vm9, %v3319_v54, %v3326_v18  ;;  %v3335_v1 = vor.u32 %v3333_v60, %v3332_v5  ;;  %v3337_v0 = vrot.slane %v3332_v5, 4 }
 0xa08   : > { %3370 = vst.msk [vmem:[#allocation3 + $0x10] sm:$0xf] %vm3247_vm10, %v3318_v46  ;;  %3369 = vst.msk [vmem:[#allocation3 + $0xc] sm:$0xf] %vm3247_vm10, %v3309_v47  ;;  %v3344_v34 = vor.u32 %v3342_v8, %v3341_v43  ;;  %v3348_v19 = vshrl.u32 %v5507_v40, 16  ;;  %v3346_v42 = vrot.slane %v3341_v43, 4 }
 0xa09   : > { %3371 = vst.msk [vmem:[#allocation3 + $0x14] sm:$0xf] %vm3247_vm10, %v3327_v21  ;;  %v3336_v16 = vsel %vm7462_vm9, %v3328_v31, %v3335_v1  ;;  %v3351_v23 = vshll.u32 %v5507_v40, 16  ;;  %v6438_v46 = vld [vmem:[%s8738_s14 + $0x8] sm:$0xff]   ;;  %vm8750_vm3 = vcmp.ne.s16.totalorder %v7717_v51, 0 }
 0xa0a   : > { %v3345_v28 = vsel %vm7462_vm9, %v3337_v0, %v3344_v34  ;;  %3372 = vst.msk [vmem:[#allocation3 + $0x18] sm:$0xf] %vm3247_vm10, %v3336_v16  ;;  %v3350_v24 = vrot.slane %v3348_v19, 7  ;;  %v6439_v34 = vld [vmem:[%s8738_s14 + $0x10] sm:$0xff]   ;;  %v3386_v16 = vsel %vm7633_vm6, %v3378_v41, 0 }
 0xa0b   : > { %3373 = vst.msk [vmem:[#allocation3 + $0x1c] sm:$0xf] %vm3247_vm10, %v3345_v28 }
 0xa0c   : > { %v3353_v62 = vor.u32 %v3351_v23, %v3350_v24  ;;  %v3355_v29 = vrot.slane %v3350_v24, 4 }
 0xa0e   : > { %v8155_v20 = vld [vmem:[#allocation3 + $0x4] sm:$0xf]  ;;  %v8157_v33 = vld [vmem:[#allocation3 + $0x8] sm:$0xf]  ;;  %v3354_v14 = vsel %vm7462_vm9, %v3346_v42, %v3353_v62  ;;  %v3376_v58 = vsel %vm8091_vm13, %v3355_v29, %v3375_v38  ;;  %vm8745_vm9 = vsmask.f32 7424 }
 0xa0f   : > { %v8159_v61 = vld [vmem:[#allocation3 + $0x10] sm:$0xf]  ;;  %v8165_v53 = vld [vmem:[#allocation3 + $0xc] sm:$0xf]  ;;  %v5308_v40 = vcombine.low %v3378_v41, %v8155_v20  ;;  %3374 = vst.msk [vmem:[#allocation3 + $0x20] sm:$0xf] %vm3247_vm10, %v3354_v14  ;;  %vm8746_vm10 = vmmov %vm8745_vm9 }
 0xa10   : > { %v8168_v7 = vld [vmem:[#allocation3 + $0x14] sm:$0xf]  ;;  %3377 = vst [vmem:[#allocation3 + $0x24] sm:$0x1] %v3376_v58  ;;  %v5309_v10 = vcombine.low %v8157_v33, %v8165_v53  ;;  %vm8747_vm11 = vmmov %vm8745_vm9  ;;  %v3387_v28 = vsel %vm7642_vm8, %v8155_v20, 0  ;;  %v3388_v62 = vsel %vm7700_vm5, %v8157_v33, 0 }
 0xa11   : > { %v5310_v12 = vcombine.low %v8159_v61, %v8168_v7  ;;  %v3438_v13 = vshll.u32 %v5308_v40, 16  ;;  %v8175_v11 = vld [vmem:[#allocation3 + $0x18] sm:$0xf]  ;;  %v3436_v6 = vshrl.u32 %v5308_v40, 16  ;;  %vm8748_vm13 = vmmov %vm8745_vm9  ;;  %v5321_v23 = vcombine.low %v3386_v16, %v3387_v28  ;;  %v3693_v41 = vld [vmem:[#allocation3] sm:$0xe] }
 0xa12   : > { %v3443_v56 = vshll.u32 %v5309_v10, 16  ;;  %v8177_v15 = vld [vmem:[#allocation3 + $0x1c] sm:$0xf]  ;;  %v3447_v48 = vshrl.u32 %v5309_v10, 16  ;;  %v6442_v38 = vld [vmem:[%s8738_s14 + $0x40] sm:$0xff]   ;;  %v3389_v29 = vsel %vm7711_vm14, %v8165_v53, 0 }
 0xa13   : > { %v3451_v60 = vshll.u32 %v5310_v12, 16  ;;  %v3440_v8 = vrot.slane %v3438_v13, 1  ;;  %v5311_v4 = vcombine.low %v8175_v11, %v8177_v15  ;;  %v3455_v5 = vshrl.u32 %v5310_v12, 16  ;;  %v6447_v16 = vld [vmem:[%s8738_s14 + $0x68] sm:$0xff]  }
 0xa14   : > { %v3445_v57 = vrot.slane %v3443_v56, 1  ;;  %v3390_v14 = vsel %vm7724_vm15, %v8159_v61, 0  ;;  %v3391_v58 = vsel %vm7730_vm12, %v8168_v7, 0  ;;  %v3694_v40 = vsel %vm7734_vm2, %v3693_v41, 0  ;;  %v4000_v41 = vld [vmem:[#allocation3 + $0x4] sm:$0xf] }
 0xa15   : > { %v3453_v54 = vrot.slane %v3451_v60, 1  ;;  %v3441_v32 = vor.u32 %v3440_v8, %v3436_v6  ;;  %v3459_v18 = vshll.u32 %v5311_v4, 16  ;;  %v3463_v1 = vshrl.u32 %v5311_v4, 16  ;;  %v6443_v60 = vld [vmem:[%s8738_s14 + $0x48] sm:$0xff]  }
 0xa16   : > { %v3449_v43 = vor.u32 %v3447_v48, %v3445_v57  ;;  %v8181_v44 = vld [vmem:[#allocation3 + $0x20] sm:$0x1]  ;;  %v3695_v10 = vsel %vm8749_vm0, %v8155_v20, 0  ;;  %v3696_v12 = vsel %vm8750_vm3, %v8157_v33, 0  ;;  %v5322_v56 = vcombine.low %v3388_v62, %v3389_v29  ;;  %v8289_v62 = vld [vmem:[#allocation3 + $0x8] sm:$0xf] }
 0xa17   : > { %v3457_v49 = vor.u32 %v3455_v5, %v3453_v54  ;;  %v3446_v45 = vsel %vm8745_vm9, %v3441_v32, %v3445_v57  ;;  %v3461_v52 = vrot.slane %v3459_v18, 1  ;;  %v5312_v31 = vcombine.low %v8181_v44, %v8181_v44  ;;  %v6444_v57 = vld [vmem:[%s8738_s14 + $0x50] sm:$0xff]   ;;  %v6449_v29 = vld [vmem:[%s8738_s14 + $0x78] sm:$0xff]   ;;  %v8440_v3 = vld [vmem:[#allocation3 + $0x1c] sm:$0xf] }
 0xa18   : > { %5909 = vmatprep.mubr.msk.bf16.mxu1 %vm2792_vm7, %v3446_v45  ;;  %v3454_v47 = vsel %vm8746_vm10, %v3449_v43, %v3453_v54  ;;  %vm8751_vm9 = vcmp.ne.s16.totalorder %v7721_v63, 0  ;;  %v5323_v6 = vcombine.low %v3390_v14, %v3391_v58  ;;  %v5341_v8 = vcombine.low %v3694_v40, %v3695_v10  ;;  %v4346_v17 = vld [vmem:[#allocation3 + $0x24] sm:$0xf] }
 0xa19   : > { %5910 = vmatmul.mubr.msk.bf16.vlgmr.msra.gmra.mrb[8].mxu1 %vm2792_vm7, %v3454_v47  ;;  %v3462_v21 = vsel %vm8747_vm11, %v3457_v49, %v3461_v52  ;;  %v3467_v0 = vshll.u32 %v5312_v31, 16  ;;  %v3465_v19 = vor.u32 %v3463_v1, %v3461_v52  ;;  %v3697_v13 = vsel %vm8751_vm9, %v8165_v53, 0  ;;  %v6446_v1 = vld [vmem:[%s8738_s14 + $0x60] sm:$0xff]  }
 0xa1a   : > { %5918 = vmatpush3.bf16.msra.mxu1 %v8107_v35  ;;  %5913 = vmatprep.mubr.msk.bf16.mxu1 %vm2792_vm7, %v3462_v21  ;;  %v6441_v35 = vld [vmem:[%s8738_s14 + $0x18] sm:$0xff]   ;;  %v5342_v4 = vcombine.low %v3696_v12, %v3697_v13  ;;  %v3392_v48 = vsel %vm7776_vm4, %v8175_v11, 0  ;;  %vm8752_vm10 = vnez %v8705_v37  ;;  %v3735_v5 = vrot.slane %v5341_v8, 1  ;;  %v8317_v8 = vld [vmem:[#allocation3 + $0x14] sm:$0xf] }
 0xa1b   : > { %5919 = vmatprep.subr.bf16.mxu1 %v6438_v46  ;;  %v3469_v42 = vrot.slane %v3467_v0, 1  ;;  %v3393_v54 = vsel %vm8752_vm10, %v8177_v15, 0  ;;  %vm8753_vm11 = vcmp.ne.s16.totalorder %v7770_v55, 0  ;;  %vm8755_vm0 = vcmp.ne.s16.totalorder %v7782_v26, 0  ;;  %v8307_v12 = vld [vmem:[#allocation3 + $0xc] sm:$0xf] }
 0xa1c   : > { %v3736_v32 = vrot.slane %v5342_v4, 1  ;;  %v3698_v18 = vsel %vm8753_vm11, %v8159_v61, 0  ;;  %v3700_v49 = vsel %vm8755_vm0, %v8175_v11, 0  ;;  %vm8756_vm3 = vcmp.ne.s16.totalorder %v7786_v39, 0  ;;  %v8309_v13 = vld [vmem:[#allocation3 + $0x10] sm:$0xf] }
 0xa1d   : > { %v3470_v24 = vsel %vm8748_vm13, %v3465_v19, %v3469_v42  ;;  %vm8754_vm13 = vcmp.ne.s16.totalorder %v7774_v27, 0  ;;  %v3701_v45 = vsel %vm8756_vm3, %v8177_v15, 0  ;;  %v5324_v52 = vcombine.low %v3392_v48, %v3393_v54  ;;  %v6451_v4 = vld [vmem:[%s8738_s14 + $0x88] sm:$0xff]  }
 0xa1e   : > { %5920 = vmatpush3.bf16.msra.mxu1 %v6438_v46  ;;  %v3699_v43 = vsel %vm8754_vm13, %v8168_v7, 0  ;;  %v6445_v46 = vld [vmem:[%s8738_s14 + $0x58] sm:$0xff]   ;;  %vm8757_vm9 = vcmask 1046528   ;;  %v5344_v21 = vcombine.low %v3700_v49, %v3701_v45  ;;  %vm8758_vm11 = vcmp.ne.s16.totalorder %v7817_v9, 0  ;;  %v3853_v48 = vld [vmem:[#allocation3 + $0x20] sm:$0xf] }
 0xa1f   : > { %5921 = vmatprep.subr.bf16.mxu1 %v6439_v34  ;;  %v5343_v31 = vcombine.low %v3698_v18, %v3699_v43  ;;  %v3737_v47 = vsel %vm8757_vm9, %v3735_v5, %v3736_v32  ;;  %v3702_v19 = vsel %vm8758_vm11, %v8181_v44, 0  ;;  %vm8759_vm13 = vmmov %vm8757_vm9  ;;  %v6448_v44 = vld [vmem:[%s8738_s14 + $0x70] sm:$0xff]   ;;  %v3856_v40 = vsel %vm7700_vm5, %v8165_v53, 0  ;;  %v8319_v53 = vld [vmem:[#allocation3 + $0x18] sm:$0xf] }
 0xa20   : > { %v5345_v42 = vcombine.low %v3702_v19, %v3702_v19  ;;  %vm8760_vm0 = vmmov %vm8757_vm9  ;;  %v3857_v10 = vsel %vm7711_vm14, %v8159_v61, 0  ;;  %v5384_v54 = vcombine.low %v8317_v8, %v8319_v53  ;;  %v6452_v5 = vld [vmem:[%s8738_s14 + $0x90] sm:$0xff]   ;;  %v3860_v43 = vsel %vm7776_vm4, %v8177_v15, 0  ;;  %v8338_v45 = vld [vmem:[#allocation3 + $0x1c] sm:$0xf] }
 0xa21   : > { %5914 = vmatmul.mubr.msk.bf16.gmra.mrb[12].mxu1 %vm2792_vm7, %v3470_v24  ;;  %v3738_v0 = vrot.slane %v5343_v31, 1  ;;  %vm8761_vm3 = vmmov %vm8760_vm0  ;;  %v5363_v61 = vcombine.low %v3856_v40, %v3857_v10  ;;  %v3861_v49 = vsel %vm8752_vm10, %v3853_v48, 0  ;;  %vm8762_vm9 = vsmask.f32 7424 }
 0xa22   : > { %5922 = vmatpush3.bf16.msra.mxu1 %v6439_v34  ;;  %5925 = vmatprep.mubr.msk.bf16.mxu1 %vm2792_vm7, %v5321_v23  ;;  %v3740_v34 = vrot.slane %v5344_v21, 1  ;;  %v3742_v24 = vrot.slane %v5345_v42, 1  ;;  %v3854_v23 = vsel %vm7633_vm6, %v8155_v20, 0  ;;  %v5382_v20 = vcombine.low %v4000_v41, %v8289_v62 }
 0xa23   : > { %5923 = vmatprep.subr.bf16.mxu1 %v6441_v35  ;;  %v3739_v28 = vsel %vm8759_vm13, %v3736_v32, %v3738_v0  ;;  %v4057_v31 = vshll.u32 %v5384_v54, 16  ;;  %v4061_v42 = vshrl.u32 %v5384_v54, 16  ;;  %vm8763_vm11 = vcmp.ne.s16.totalorder %v7708_v59, 0 }
 0xa24   : > { %v3743_v14 = vsel %vm8761_vm3, %v3740_v34, %v3742_v24  ;;  %v4042_v32 = vshrl.u32 %v5382_v20, 16  ;;  %vm8764_vm13 = vcmp.ne.s16.totalorder %v7717_v51, 0  ;;  %vm8766_vm3 = vmmov %vm8762_vm9 }
 0xa26   : > { %5924 = vmatpush3.bf16.msra.mxu1 %v6441_v35  ;;  %v3741_v35 = vsel %vm8760_vm0, %v3738_v0, %v3740_v34  ;;  %v4059_v34 = vrot.slane %v4057_v31, 1  ;;  %vm8765_vm0 = vcmp.ne.s16.totalorder %v7721_v63, 0 }
 0xa27   : > { %5933 = vmatprep.subr.bf16.mxu1 %v6442_v38 }
 0xa29   : > { %5926 = vmatmul.mubr.msk.bf16.vlgmr.msra.gmra.mrb[8].mxu1 %vm2792_vm7, %v5322_v56  ;;  %v3858_v56 = vsel %vm7724_vm15, %v8168_v7, 0 }
 0xa2a   : > { %5934 = vmatpush3.bf16.msra.mxu1 %v6442_v38  ;;  %5929 = vmatprep.mubr.msk.bf16.mxu1 %vm2792_vm7, %v5323_v6  ;;  %v3855_v38 = vsel %vm7642_vm8, %v8157_v33, 0  ;;  %v6450_v33 = vld [vmem:[%s8738_s14 + $0x80] sm:$0xff]   ;;  %v4044_v6 = vshll.u32 %v5382_v20, 16 }
 0xa2b   : > { %5935 = vmatprep.subr.bf16.mxu1 %v6443_v60  ;;  %v5362_v58 = vcombine.low %v3854_v23, %v3855_v38  ;;  %v4063_v23 = vor.u32 %v4061_v42, %v4059_v34 }
 0xa2e   : > { %5936 = vmatpush3.bf16.msra.mxu1 %v6443_v60  ;;  %v3859_v60 = vsel %vm7730_vm12, %v8175_v11, 0  ;;  %v4046_v11 = vrot.slane %v4044_v6, 1 }
 0xa2f   : > { %5937 = vmatprep.subr.bf16.mxu1 %v6444_v57  ;;  %v5364_v7 = vcombine.low %v3858_v56, %v3859_v60 }
 0xa31   : > { %5930 = vmatmul.mubr.msk.bf16.gmra.mrb[12].mxu1 %vm2792_vm7, %v5324_v52  ;;  %v8340_v52 = vld [vmem:[#allocation3 + $0x20] sm:$0xf] }
 0xa32   : > { %5938 = vmatpush3.bf16.msra.mxu1 %v6444_v57  ;;  %5941 = vmatprep.mubr.msk.bf16.mxu1 %vm2792_vm7, %v3737_v47  ;;  %v5383_v57 = vcombine.low %v8307_v12, %v8309_v13  ;;  %v5365_v47 = vcombine.low %v3860_v43, %v3861_v49  ;;  %v5385_v15 = vcombine.low %v8338_v45, %v8340_v52  ;;  %v6462_v43 = vld [vmem:[%s8738_s14 + $0xb8] sm:$0xff]  }
 0xa33   : > { %5939 = vmatprep.subr.bf16.mxu1 %v6445_v46 }
 0xa34   : > { %v4049_v18 = vshll.u32 %v5383_v57, 16  ;;  %v4053_v19 = vshrl.u32 %v5383_v57, 16  ;;  %v4069_v6 = vshrl.u32 %v5385_v15, 16 }
 0xa36   : > { %5940 = vmatpush3.bf16.msra.mxu1 %v6445_v46  ;;  %v4047_v46 = vor.u32 %v4046_v11, %v4042_v32  ;;  %v4051_v21 = vrot.slane %v4049_v18, 1 }
 0xa37   : > { %5949 = vmatprep.subr.bf16.mxu1 %v6446_v1 }
 0xa38   : > { %v4052_v0 = vsel %vm8762_vm9, %v4047_v46, %v4051_v21  ;;  %v4055_v24 = vor.u32 %v4053_v19, %v4051_v21  ;;  %vm8767_vm9 = vmmov %vm8766_vm3  ;;  %v6463_v21 = vld [vmem:[%s8738_s14 + $0xc0] sm:$0xff]  }
 0xa39   : > { %5942 = vmatmul.mubr.msk.bf16.vlgmr.msra.gmra.mrb[8].mxu1 %vm2792_vm7, %v3739_v28  ;;  %v6456_v28 = vld [vmem:[%s8738_s14 + $0xa0] sm:$0xff]  }
 0xa3a   : > { %5950 = vmatpush3.bf16.msra.mxu1 %v6446_v1  ;;  %5945 = vmatprep.mubr.msk.bf16.mxu1 %vm2792_vm7, %v3741_v35  ;;  %v6455_v1 = vld [vmem:[%s8738_s14 + $0x98] sm:$0xff]   ;;  %v4065_v35 = vshll.u32 %v5385_v15, 16  ;;  %v4060_v40 = vsel %vm8766_vm3, %v4055_v24, %v4059_v34  ;;  %vm8771_vm3 = vcmp.ne.s16.totalorder %v7786_v39, 0  ;;  %v6464_v34 = vld [vmem:[%s8738_s14 + $0xc8] sm:$0xff]   ;;  %v4348_v24 = vsel %vm7642_vm8, %v8307_v12, 0 }
 0xa3b   : > { %5951 = vmatprep.subr.bf16.mxu1 %v6447_v16  ;;  %v4194_v18 = vsel %vm8771_vm3, %v8340_v52, 0  ;;  %vm8778_vm8 = vcmp.ne.s16.totalorder %v7708_v59, 0 }
 0xa3c   : > { %v4067_v20 = vrot.slane %v4065_v35, 1 }
 0xa3e   : > { %5952 = vmatpush3.bf16.msra.mxu1 %v6447_v16  ;;  %v4008_v16 = vld [vmem:[#allocation3 + $0x24] sm:$0x1]  ;;  %v4068_v10 = vsel %vm8767_vm9, %v4063_v23, %v4067_v20  ;;  %v4071_v57 = vor.u32 %v4069_v6, %v4067_v20  ;;  %v4493_v23 = vld [vmem:[#allocation3 + $0x8] sm:$0xf]  ;;  %v4496_v20 = vld [vmem:[#allocation3 + $0x14] sm:$0xf] }
 0xa3f   : > { %5953 = vmatprep.subr.bf16.mxu1 %v6448_v44  ;;  %v5386_v38 = vcombine.low %v4008_v16, %v4008_v16 }
 0xa41   : > { %5946 = vmatmul.mubr.msk.bf16.gmra.mrb[12].mxu1 %vm2792_vm7, %v3743_v14  ;;  %v4189_v14 = vsel %vm8764_vm13, %v8307_v12, 0  ;;  %vm8769_vm13 = vcmp.ne.s16.totalorder %v7774_v27, 0  ;;  %v4350_v12 = vsel %vm7711_vm14, %v8317_v8, 0  ;;  %vm8780_vm14 = vcmp.ne.s16.totalorder %v7721_v63, 0  ;;  %v6477_v63 = vld [vmem:[%s8738_s14 + $0x110] sm:$0xff]  }
 0xa42   : > { %5954 = vmatpush3.bf16.msra.mxu1 %v6448_v44  ;;  %5957 = vmatprep.mubr.msk.bf16.mxu1 %vm2792_vm7, %v5362_v58  ;;  %v4186_v44 = vld [vmem:[#allocation3 + $0x4] sm:$0xe]  ;;  %v4190_v58 = vsel %vm8765_vm0, %v8309_v13, 0  ;;  %v4192_v54 = vsel %vm8769_vm13, %v8319_v53, 0  ;;  %vm8770_vm0 = vcmp.ne.s16.totalorder %v7782_v26, 0  ;;  %vm8773_vm13 = vcmp.ne.s16.totalorder %v7817_v9, 0 }
 0xa43   : > { %5955 = vmatprep.subr.bf16.mxu1 %v6449_v29  ;;  %v4187_v41 = vsel %vm7734_vm2, %v4186_v44, 0  ;;  %v5404_v60 = vcombine.low %v4189_v14, %v4190_v58  ;;  %v4193_v32 = vsel %vm8770_vm0, %v8338_v45, 0  ;;  %v4347_v44 = vsel %vm7633_vm6, %v8289_v62, 0  ;;  %v4495_v58 = vld [vmem:[#allocation3 + $0x10] sm:$0xf] }
 0xa44   : > { %v5424_v14 = vcombine.low %v4347_v44, %v4348_v24  ;;  %vm8777_vm6 = vsmask.f32 7424 }
 0xa45   : > { %v4229_v48 = vrot.slane %v5404_v60, 1 }
 0xa46   : > { %5956 = vmatpush3.bf16.msra.mxu1 %v6449_v29  ;;  %v4188_v29 = vsel %vm8763_vm11, %v8289_v62, 0  ;;  %vm8768_vm11 = vcmp.ne.s16.totalorder %v7770_v55, 0  ;;  %v4349_v62 = vsel %vm7700_vm5, %v8309_v13, 0  ;;  %vm8779_vm5 = vcmp.ne.s16.totalorder %v7717_v51, 0 }
 0xa47   : > { %5965 = vmatprep.subr.bf16.mxu1 %v6450_v33  ;;  %v5403_v56 = vcombine.low %v4187_v41, %v4188_v29  ;;  %v4191_v11 = vsel %vm8768_vm11, %v8317_v8, 0  ;;  %vm8772_vm11 = vcmask 1046528   ;;  %v6466_v41 = vld [vmem:[%s8738_s14 + $0xd8] sm:$0xff]   ;;  %v5425_v13 = vcombine.low %v4349_v62, %v4350_v12 }
 0xa48   : > { %v5405_v46 = vcombine.low %v4191_v11, %v4192_v54  ;;  %vm8774_vm0 = vmmov %vm8772_vm11  ;;  %v5445_v8 = vcombine.low %v4495_v58, %v4496_v20 }
 0xa49   : > { %5958 = vmatmul.mubr.msk.bf16.vlgmr.msra.gmra.mrb[8].mxu1 %vm2792_vm7, %v5363_v61  ;;  %v4073_v61 = vshll.u32 %v5386_v38, 16  ;;  %vm8775_vm3 = vmmov %vm8774_vm0  ;;  %v8414_v38 = vld [vmem:[#allocation3 + $0xc] sm:$0xf] }
 0xa4a   : > { %5966 = vmatpush3.bf16.msra.mxu1 %v6450_v33  ;;  %5961 = vmatprep.mubr.msk.bf16.mxu1 %vm2792_vm7, %v5364_v7  ;;  %v6459_v33 = vld [vmem:[%s8738_s14 + $0xa8] sm:$0xff]   ;;  %v4228_v7 = vrot.slane %v5403_v56, 1  ;;  %v5444_v22 = vcombine.low %v4493_v23, %v8414_v38  ;;  %v8438_v56 = vld [vmem:[#allocation3 + $0x18] sm:$0xf]  ;;  %v4546_v37 = vshrl.u32 %v5445_v8, 16 }
 0xa4b   : > { %5967 = vmatprep.subr.bf16.mxu1 %v6451_v4  ;;  %v5446_v36 = vcombine.low %v8438_v56, %v8440_v3 }
 0xa4c   : > { %v4230_v31 = vsel %vm8772_vm11, %v4228_v7, %v4229_v48  ;;  %v4535_v6 = vshrl.u32 %v5444_v22, 16  ;;  %v4499_v7 = vld [vmem:[#allocation3 + $0x20] sm:$0xf]  ;;  %vm8786_vm11 = vcmp.ne.s16.totalorder %v7786_v39, 0 }
 0xa4d   : > { %v4550_v54 = vshll.u32 %v5446_v36, 16 }
 0xa4e   : > { %5968 = vmatpush3.bf16.msra.mxu1 %v6451_v4  ;;  %v6460_v4 = vld [vmem:[%s8738_s14 + $0xb0] sm:$0xff]  }
 0xa4f   : > { %5969 = vmatprep.subr.bf16.mxu1 %v6452_v5 }
 0xa51   : > { %5962 = vmatmul.mubr.msk.bf16.gmra.mrb[12].mxu1 %vm2792_vm7, %v5365_v47  ;;  %v5406_v47 = vcombine.low %v4193_v32, %v4194_v18  ;;  %v6472_v18 = vld [vmem:[%s8738_s14 + $0xf8] sm:$0xff]  }
 0xa52   : > { %5970 = vmatpush3.bf16.msra.mxu1 %v6452_v5  ;;  %5973 = vmatprep.mubr.msk.bf16.mxu1 %vm2792_vm7, %v4052_v0  ;;  %v4075_v5 = vrot.slane %v4073_v61, 1  ;;  %v4195_v0 = vsel %vm8773_vm13, %v4008_v16, 0  ;;  %v6465_v16 = vld [vmem:[%s8738_s14 + $0xd0] sm:$0xff]   ;;  %v4542_v61 = vshll.u32 %v5445_v8, 16  ;;  %vm8787_vm13 = vmmov %vm8777_vm6  ;;  %v6550_v8 = vld [vmem:[%s7281_s17] sm:$0xff] }
 0xa53   : > { %5971 = vmatprep.subr.bf16.mxu1 %v6455_v1  ;;  %v4233_v15 = vrot.slane %v5406_v47, 1 }
 0xa54   : > { %v4076_v49 = vsel %vm8767_vm9, %v4071_v57, %v4075_v5  ;;  %vm8776_vm9 = vmmov %vm8774_vm0  ;;  %v4354_v57 = vsel %vm8752_vm10, %v4346_v17, 0  ;;  %v4544_v32 = vrot.slane %v4542_v61, 1  ;;  %vm8785_vm10 = vcmp.ne.s16.totalorder %v7782_v26, 0  ;;  %v6480_v26 = vld [vmem:[%s8788_s26] sm:$0xff]  }
 0xa55   : > { %v4686_v62 = vsel %vm8785_vm10, %v4499_v7, 0  ;;  %v6554_v61 = vld [vmem:[%s7281_s17 + $0x20] sm:$0xff] }
 0xa56   : > { %5972 = vmatpush3.bf16.msra.mxu1 %v6455_v1  ;;  %v4231_v1 = vrot.slane %v5405_v46, 1  ;;  %v6473_v46 = vld [vmem:[%s8738_s14 + $0x100] sm:$0xff]  }
 0xa57   : > { %5981 = vmatprep.subr.bf16.mxu1 %v6456_v28 }
 0xa58   : > { %v4232_v19 = vsel %vm8774_vm0, %v4229_v48, %v4231_v1  ;;  %v4234_v42 = vsel %vm8775_vm3, %v4231_v1, %v4233_v15  ;;  %v4500_v48 = vld [vmem:[#allocation3 + $0x24] sm:$0xf]  ;;  %v4548_v1 = vor.u32 %v4546_v37, %v4544_v32  ;;  %vm8789_vm3 = vcmp.ne.s16.totalorder %v7817_v9, 0 }
 0xa59   : > { %5974 = vmatmul.mubr.msk.bf16.vlgmr.msra.gmra.mrb[8].mxu1 %vm2792_vm7, %v4060_v40  ;;  %v4352_v40 = vsel %vm7730_vm12, %v8338_v45, 0  ;;  %v6469_v45 = vld [vmem:[%s8738_s14 + $0xf0] sm:$0xff]   ;;  %vm8782_vm12 = vmmov %vm8777_vm6  ;;  %v4687_v12 = vsel %vm8786_vm11, %v4500_v48, 0 }
 0xa5a   : > { %5982 = vmatpush3.bf16.msra.mxu1 %v6456_v28  ;;  %5977 = vmatprep.mubr.msk.bf16.mxu1 %vm2792_vm7, %v4068_v10  ;;  %v5407_v28 = vcombine.low %v4195_v0, %v4195_v0  ;;  %v4537_v10 = vshll.u32 %v5444_v22, 16 }
 0xa5b   : > { %5983 = vmatprep.subr.bf16.mxu1 %v6459_v33 }
 0xa5c   : > { %v4235_v35 = vrot.slane %v5407_v28, 1  ;;  %v4682_v28 = vsel %vm8779_vm5, %v4495_v58, 0  ;;  %v6479_v58 = vld [vmem:[%s8738_s14 + $0x118] sm:$0xff]  }
 0xa5e   : > { %5984 = vmatpush3.bf16.msra.mxu1 %v6459_v33  ;;  %v4236_v29 = vsel %vm8776_vm9, %v4233_v15, %v4235_v35  ;;  %v4351_v33 = vsel %vm7724_vm15, %v8319_v53, 0  ;;  %v4539_v53 = vrot.slane %v4537_v10, 1  ;;  %v6476_v35 = vld [vmem:[%s8738_s14 + $0x108] sm:$0xff]   ;;  %vm8781_vm15 = vmmov %vm8777_vm6 }
 0xa5f   : > { %5985 = vmatprep.subr.bf16.mxu1 %v6460_v4  ;;  %v5426_v60 = vcombine.low %v4351_v33, %v4352_v40  ;;  %v5468_v33 = vcombine.low %v4686_v62, %v4687_v12  ;;  %vm8790_vm9 = vmmov %vm8774_vm0 }
 0xa60   : > { %v4540_v11 = vor.u32 %v4539_v53, %v4535_v6 }
 0xa61   : > { %5978 = vmatmul.mubr.msk.bf16.gmra.mrb[12].mxu1 %vm2792_vm7, %v4076_v49  ;;  %v4501_v49 = vld [vmem:[#allocation3 + $0x28] sm:$0x1]  ;;  %v4726_v40 = vrot.slane %v5468_v33, 1 }
 0xa62   : > { %5986 = vmatpush3.bf16.msra.mxu1 %v6460_v4  ;;  %5989 = vmatprep.mubr.msk.bf16.mxu1 %vm2792_vm7, %v4230_v31  ;;  %v4353_v4 = vsel %vm7776_vm4, %v8340_v52, 0  ;;  %v4545_v25 = vsel %vm8777_vm6, %v4540_v11, %v4544_v32  ;;  %v4552_v52 = vrot.slane %v4550_v54, 1  ;;  %v4554_v31 = vshrl.u32 %v5446_v36, 16  ;;  %vm8791_vm6 = vmmov %vm8774_vm0  ;;  %v6552_v36 = vld [vmem:[%s7281_s17 + $0x10] sm:$0xff] }
 0xa63   : > { %5987 = vmatprep.subr.bf16.mxu1 %v6462_v43  ;;  %v5427_v5 = vcombine.low %v4353_v4, %v4354_v57  ;;  %v5448_v15 = vcombine.low %v4501_v49, %v4501_v49  ;;  %vm8784_vm4 = vcmp.ne.s16.totalorder %v7774_v27, 0  ;;  %v4688_v10 = vsel %vm8789_vm3, %v4501_v49, 0  ;;  %v6555_v4 = vld [vmem:[%s7281_s17 + $0x28] sm:$0xff]  ;;  %v5478_v54 = vld [vmem:[#allocation16] ss:$0 sm:$0xff] }
 0xa64   : > { %v4556_v0 = vor.u32 %v4554_v31, %v4552_v52  ;;  %v4553_v44 = vsel %vm8781_vm15, %v4548_v1, %v4552_v52  ;;  %v4856_v57 = vpack.c.bf16 %v6555_v4, %v6554_v61 }
 0xa65   : > { %v4566_v2 = vshll.u32 %v5448_v15, 16 }
 0xa66   : > { %5988 = vmatpush3.bf16.msra.mxu1 %v6462_v43  ;;  %v5447_v43 = vcombine.low %v4499_v7, %v4500_v48  ;;  %v6556_v7 = vld [vmem:[%s7281_s17 + $0x30] sm:$0xff]  ;;  %v6557_v48 = vld [vmem:[%s7281_s17 + $0x38] sm:$0xff] }
 0xa67   : > { %5997 = vmatprep.subr.bf16.mxu1 %v6463_v21  ;;  %v4857_v11 = vpack.c.bf16 %v6557_v48, %v6556_v7 }
 0xa68   : > { %v4558_v47 = vshll.u32 %v5447_v43, 16  ;;  %v4562_v51 = vshrl.u32 %v5447_v43, 16 }
 0xa69   : > { %5990 = vmatmul.mubr.msk.bf16.vlgmr.msra.gmra.mrb[8].mxu1 %vm2792_vm7, %v4232_v19  ;;  %v4681_v19 = vsel %vm8778_vm8, %v8414_v38, 0  ;;  %vm8792_vm8 = vmmov %vm8774_vm0 }
 0xa6a   : > { %5998 = vmatpush3.bf16.msra.mxu1 %v6463_v21  ;;  %5993 = vmatprep.mubr.msk.bf16.mxu1 %vm2792_vm7, %v4234_v42  ;;  %v4679_v21 = vld [vmem:[#allocation3 + $0x8] sm:$0xe]  ;;  %v4683_v42 = vsel %vm8780_vm14, %v4496_v20, 0 }
 0xa6b   : > { %5999 = vmatprep.subr.bf16.mxu1 %v6464_v34  ;;  %v5466_v23 = vcombine.low %v4682_v28, %v4683_v42 }
 0xa6e   : > { %6000 = vmatpush3.bf16.msra.mxu1 %v6464_v34  ;;  %v4680_v34 = vsel %vm7734_vm2, %v4679_v21, 0  ;;  %vm8783_vm2 = vcmp.ne.s16.totalorder %v7770_v55, 0 }
 0xa6f   : > { %6001 = vmatprep.subr.bf16.mxu1 %v6465_v16  ;;  %v5465_v24 = vcombine.low %v4680_v34, %v4681_v19  ;;  %v4684_v22 = vsel %vm8783_vm2, %v8438_v56, 0  ;;  %v6481_v56 = vld [vmem:[%s8788_s26 + $0x8] sm:$0xff]  }
 0xa71   : > { %5994 = vmatmul.mubr.msk.bf16.gmra.mrb[12].mxu1 %vm2792_vm7, %v4236_v29  ;;  %v4721_v29 = vrot.slane %v5465_v24, 1 }
 0xa72   : > { %6002 = vmatpush3.bf16.msra.mxu1 %v6465_v16  ;;  %6005 = vmatprep.mubr.msk.bf16.mxu1 %vm2792_vm7, %v5424_v14  ;;  %v4560_v16 = vrot.slane %v4558_v47, 1  ;;  %v4722_v14 = vrot.slane %v5466_v23, 1 }
 0xa73   : > { %6003 = vmatprep.subr.bf16.mxu1 %v6466_v41 }
 0xa74   : > { %v4561_v59 = vsel %vm8782_vm12, %v4556_v0, %v4560_v16  ;;  %v4564_v38 = vor.u32 %v4562_v51, %v4560_v16  ;;  %v4723_v27 = vsel %vm8774_vm0, %v4721_v29, %v4722_v14 }
 0xa76   : > { %6004 = vmatpush3.bf16.msra.mxu1 %v6466_v41  ;;  %v4568_v41 = vrot.slane %v4566_v2, 1 }
 0xa77   : > { %6013 = vmatprep.subr.bf16.mxu1 %v6467_v30 }
 0xa78   : > { %v4569_v20 = vsel %vm8787_vm13, %v4564_v38, %v4568_v41 }
 0xa79   : > { %6006 = vmatmul.mubr.msk.bf16.vlgmr.msra.gmra.mrb[8].mxu1 %vm2792_vm7, %v5425_v13  ;;  %v5469_v13 = vcombine.low %v4688_v10, %v4688_v10 }
 0xa7a   : > { %6014 = vmatpush3.bf16.msra.mxu1 %v6467_v30  ;;  %6009 = vmatprep.mubr.msk.bf16.mxu1 %vm2792_vm7, %v5426_v60  ;;  %v4685_v30 = vsel %vm8784_vm4, %v8440_v3, 0  ;;  %v6551_v60 = vld [vmem:[%s7281_s17 + $0x8] sm:$0xff] }
 0xa7b   : > { %6015 = vmatprep.subr.bf16.mxu1 %v6468_v50  ;;  %v5467_v55 = vcombine.low %v4684_v22, %v4685_v30  ;;  %v4728_v9 = vrot.slane %v5469_v13, 1  ;;  %v4854_v17 = vpack.c.bf16 %v6551_v60, %v6550_v8 }
 0xa7d   : > { %v4724_v39 = vrot.slane %v5467_v55, 1  ;;  %v4729_v53 = vsel %vm8792_vm8, %v4726_v40, %v4728_v9 }
 0xa7e   : > { %6016 = vmatpush3.bf16.msra.mxu1 %v6468_v50 }
 0xa7f   : > { %6017 = vmatprep.subr.bf16.mxu1 %v6469_v45  ;;  %v4725_v3 = vsel %vm8790_vm9, %v4722_v14, %v4724_v39  ;;  %v4727_v50 = vsel %vm8791_vm6, %v4724_v39, %v4726_v40 }
 0xa81   : > { %6010 = vmatmul.mubr.msk.bf16.gmra.mrb[12].mxu1 %vm2792_vm7, %v5427_v5  ;;  %v5479_v5 = vld [vmem:[%s8793_s25] ss:$0 sm:$0xff] }
 0xa82   : > { %6018 = vmatpush3.bf16.msra.mxu1 %v6469_v45  ;;  %6021 = vmatprep.mubr.msk.bf16.mxu1 %vm2792_vm7, %v4545_v25  ;;  %v6553_v45 = vld [vmem:[%s7281_s17 + $0x18] sm:$0xff]  ;;  %v6123_v32 = vadd.f32 %v5479_v5, %v5478_v54  ;;  %s615_s17 = scalar_lea.vmem [#allocation18], %s5156_s27  ;;  %s6884_s27 = smov [#allocation18]  }
 0xa83   : > { %6019 = vmatprep.subr.bf16.mxu1 %v6472_v18  ;;  %v4855_v6 = vpack.c.bf16 %v6553_v45, %v6552_v36  ;;  %s4988_s9 = sshll.u32 %s615_s17, 4  ;;  %s6788_s3 = sshll.u32 %s6884_s27, 4  ;;  %s8543_s9 = int_to_ptr.vmem [resolvable:$true] %s4988_s9  ;;  %s6789_s3 = int_to_ptr.vmem [resolvable:$false] %s6788_s3 }
 0xa84   : > { %s6784_s25 = scalar_lea.vmem %s8543_s9, 1024  ;;  %s6790_s30 = scalar_lea.vmem %s6789_s3, 2048 }
 0xa85   : > { %p6785_p1 = scmp.ne.s32.totalorder %s8543_s9, %s6784_s25  ;;  %p6791_p3 = scmp.lt.s32.totalorder %s8543_s9, %s6789_s3 }
 0xa86   : > { %6020 = vmatpush3.bf16.msra.mxu1 %v6472_v18  ;;  %p6792_p6 = scmp.lt.s32.totalorder %s6790_s30, %s6784_s25 }
 0xa87   : > { %6029 = vmatprep.subr.bf16.mxu1 %v6473_v46  ;;  %p6786_p0 = pnand %p6785_p1, %p8795_p13 }
 0xa88   : > { %p6793_p11 = por %p6792_p6, %p6791_p3 }
 0xa89   : > { %6022 = vmatmul.mubr.msk.bf16.vlgmr.msra.gmra.mrb[8].mxu1 %vm2792_vm7, %v4553_v44  ;;  %p6787_p2 = pneg %p6786_p0 }
 0xa8a   : > { %6030 = vmatpush3.bf16.msra.mxu1 %v6473_v46  ;;  %6025 = vmatprep.mubr.msk.bf16.mxu1 %vm2792_vm7, %v4561_v59 }
 0xa8b   : > { %6031 = vmatprep.subr.bf16.mxu1 %v6476_v35  ;;  %p6794_p12 = pnand %p6793_p11, %p6787_p2 }
 0xa8e   : > { %6032 = vmatpush3.bf16.msra.mxu1 %v6476_v35 }
 0xa8f   : > { %6033 = vmatprep.subr.bf16.mxu1 %v6477_v63 }
 0xa91   : > { %6026 = vmatmul.mubr.msk.bf16.gmra.mrb[12].mxu1 %vm2792_vm7, %v4569_v20 }
 0xa92   : > { %6034 = vmatpush3.bf16.msra.mxu1 %v6477_v63  ;;  %6037 = vmatprep.mubr.msk.bf16.mxu1 %vm2792_vm7, %v4723_v27 }
 0xa93   : > { %6035 = vmatprep.subr.bf16.mxu1 %v6479_v58 }
 0xa96   : > { %6036 = vmatpush3.bf16.msra.mxu1 %v6479_v58 }
 0xa97   : > { %6045 = vmatprep.subr.bf16.mxu1 %v6480_v26 }
 0xa99   : > { %6038 = vmatmul.mubr.msk.bf16.vlgmr.msra.gmra.mrb[8].mxu1 %vm2792_vm7, %v4725_v3 }
 0xa9a   : > { %6046 = vmatpush3.bf16.msra.mxu1 %v6480_v26  ;;  %6041 = vmatprep.mubr.msk.bf16.mxu1 %vm2792_vm7, %v4727_v50 }
 0xa9b   : > { %6047 = vmatprep.subr.bf16.mxu1 %v6481_v56 }
 0xa9e   : > { %6048 = vmatpush3.bf16.msra.mxu1 %v6481_v56 }
 0xaa1   : > { %6042 = vmatmul.mubr.msk.bf16.gmra.mrb[12].mxu1 %vm2792_vm7, %v4729_v53 }
 0xaa2   : > { %6049 = vmatprep.mubr.msk.bf16.mxu1 %vm763_vm1, %v4854_v17 }
 0xaa9   : > { %6050 = vmatmul.mubr.msk.bf16.vlgmr.msra.gmra.mrb[8].mxu1 %vm763_vm1, %v4855_v6 }
 0xaaa   : > { %6053 = vmatprep.mubr.msk.bf16.mxu1 %vm763_vm1, %v4856_v57 }
 0xab1   : > { %6054 = vmatmul.mubr.msk.bf16.gmra.mrb[12].mxu1 %vm763_vm1, %v4857_v11 }
 0xb7c   : > { %v6051_v18 = vpop.f32.mrb[8].mxu1 }
 0xb7d   : > { %v6117_v43 = vadd.f32 %v6051_v18, %v5478_v54  ;;  %v4927_v25 = vpop.f32.mrb[9].mxu1 }
 0xb7e   : > { %v6119_v52 = vadd.f32 %v5478_v54, %v4927_v25  ;;  %v6052_v37 = vpop.f32.mrb[10].mxu1 }
 0xb7f   : > { %v6118_v49 = vadd.f32 %v6117_v43, %v5479_v5  ;;  %v6122_v46 = vadd.f32 %v6123_v32, %v6052_v37  ;;  %v4930_v31 = vpop.f32.mrb[11].mxu1 }
 0xb80   : > { %v6120_v47 = vadd.f32 %v6119_v52, %v5479_v5  ;;  %v6124_v21 = vadd.f32 %v6123_v32, %v4930_v31 }
 0xb81   : > { %4968 = vst.msk [vmem:[%s615_s17 + $0x10] sm:$0xff] %vm2792_vm7, %v6118_v49  ;;  %4969 = vst.msk [vmem:[%s615_s17 + $0x18] sm:$0xff] %vm2792_vm7, %v6122_v46 }
 0xb82   : > { %4966 = vst.msk [vmem:[%s615_s17] sm:$0xff] %vm2792_vm7, %v6120_v47  ;;  %4967 = vst.msk [vmem:[%s615_s17 + $0x8] sm:$0xff] %vm2792_vm7, %v6124_v21 }
 0xb84   : > { %v6055_v1 = vpop.f32.mrb[12].mxu1 }
 0xb85   : > { %v6126_v15 = vadd.f32 %v6123_v32, %v6055_v1  ;;  %v4943_v0 = vpop.f32.mrb[13].mxu1 }
 0xb86   : > { %v6128_v34 = vadd.f32 %v6123_v32, %v4943_v0  ;;  %v6056_v19 = vpop.f32.mrb[14].mxu1 }
 0xb87   : > { %4972 = vst.msk [vmem:[%s615_s17 + $0x30] sm:$0xff] %vm2792_vm7, %v6126_v15  ;;  %v6130_v28 = vadd.f32 %v6123_v32, %v6056_v19  ;;  %v4946_v42 = vpop.f32.mrb[15].mxu1 }
 0xb88   : > { %4970 = vst.msk [vmem:[%s615_s17 + $0x20] sm:$0xff] %vm2792_vm7, %v6128_v34  ;;  %v6132_v16 = vadd.f32 %v6123_v32, %v4946_v42 }
 0xb89   : > { %4973 = vst.msk [vmem:[%s615_s17 + $0x38] sm:$0xff] %vm2792_vm7, %v6130_v28 }
 0xb8a   : > { %4971 = vst.msk [vmem:[%s615_s17 + $0x28] sm:$0xff] %vm2792_vm7, %v6132_v16 }
 0xb8b   : > { %6797 = shalt.err (!%p6794_p12)
}
 0xb8c   : > { %s6798_s17 = scalar_lea.hbm %s8541_s13, 1024  ;;  %s6802_s27 = scalar_lea.hbm %s8794_s22, 2048 }
 0xb8d   : > { %p6799_p8 = scmp.ne.s32.totalorder %s8541_s13, %s6798_s17  ;;  %p6803_p7 = scmp.lt.u32.totalorder %s8541_s13, %s8794_s22 }
 0xb8e   : > { %p6804_p10 = scmp.lt.u32.totalorder %s6802_s27, %s6798_s17  ;;  %p6806_p1 = scmp.lt.u32.totalorder %s6798_s17, %s8541_s13 }
 0xb8f   : > { %p6800_p5 = pnand %p6799_p8, %p8795_p13 }
 0xb90   : > { %p6805_p4 = por %p6804_p10, %p6803_p7 }
 0xb91   : > { %p6801_p9 = pneg %p6800_p5 }
 0xb92   : > { %p6807_p0 = por %p6806_p1, %p6805_p4 }
 0xb94   : > { %p6808_p2 = pnand %p6807_p0, %p6801_p9 }
 0xb96   : > { %6811 = shalt.err (!%p6808_p2)
}
 0xb97   : > { %s6885_s25 = smov 128   ;;  %s6886_s30 = smov 8  }
 0xb98   : > { %s8796_s1 = scalar_lea.sflag [#allocation6], %s7246_s6 }
 0xb99   : > { %6299 = dma.vmem_to_hbm [thread:$0]  (%p8795_p13), %s8543_s9, 1024, %s8541_s13, %s8796_s1, %s6885_s25, %s6885_s25, %s6886_s30  }
 0xb9a PF: > { %s5003_s0 = sand.u32 1, %s6854_s18   ;;  %p8797_p3 = scmp.ne.s32.totalorder %s8646_s11, 0 }
 0xb9b   : > { %p8798_p6 = scmp.ge.s32.totalorder %s6866_s21, 2  ;;  %s5004_s24 = scalar_lea.sflag [#allocation6], %s5003_s0 }
 0xb9d   : > { %p6328_p11 = pnand %p8798_p6, %p8797_p3 }
 0xb9f   : > { %6849 = dma.done.wait (!%p6328_p11), %s5004_s24, 1024  }
 0xba0   : > { %6851 = vsyncadd (!%p6328_p11), %s5004_s24, 4294966272  ;;  %p32_p12 = scmp.ge.s32.totalorder %s7176_s28, 4   ;;  %s8799_s18 = smov %s6858_s19 }
 0xba1   : > { %s8800_s19 = smov %s6862_s20  ;;  %s8801_s20 = smov %s7188_s23 }
 0xba2   : > { %s8802_s21 = smov %s7176_s28  ;;  %34 = sbr.rel (!%p32_p12) target bundleno = 19 (0x13), region = 172 }
 0xba9   :  { %5009 = vsyncpa [#allocation5], 1 }
 0xbaa   :  { %5011 = vsyncpa [#allocation5 + $0x1], 1 }
 0xbab   :  { %5012 = vsyncpa [#allocation8], 1 }
 0xbac   :  { %5013 = vsyncpa [#allocation11], 1 }
 0xbad   :  { %5014 = vsyncpa [#allocation14], 1 }
 0xbae   :  { %5015 = vsyncpa [#allocation17], 1 }
 0xbaf   :  { %5016 = vsyncpa [#allocation6], 1 }
 0xbb0   :  { %5018 = vsyncpa [#allocation6 + $0x1], 1 }

</bundles_post_ra>
